<compile_context>
chip_gen: v7x
topology: tpu7x:2x2x1
jax: 0.10.0
libtpu: 0.0.40
codegen_flags: <defaults>
</compile_context>

<pallas_src>
import functools

import jax
import jax.numpy as jnp
from jax import lax
from jax.experimental import pallas as pl
from jax.experimental.pallas import tpu as pltpu


def _sigmoid(x):
    # explicit form (exp + divide) so kernel and reference use identical math
    return 1.0 / (1.0 + jnp.exp(-x))


# ----------------------------------------------------------------------------
# Pallas kernel: whole forward pass fused
# ----------------------------------------------------------------------------
def _fall_lstm_kernel(*refs, num_layers):
    # ---- unpack refs -------------------------------------------------------
    n_in = 1 + 3 * num_layers + 8
    x_ref = refs[0]                                        # (T, Bb, D)
    layer_refs = [refs[1 + 3 * l: 4 + 3 * l] for l in range(num_layers)]
    (wa1_ref, ba1_ref, wa2_ref, ba2_ref,
     wc1_ref, bc1_ref, wc2_ref, bc2_ref) = refs[1 + 3 * num_layers: n_in]
    out_ref = refs[n_in]                                   # (Bb, 1)
    seq_ref, pre_ref = refs[n_in + 1:]                     # (T,Bb,H), (T,Bb,4H)

    T, Bb, D = x_ref.shape
    H = layer_refs[0][1].shape[0]                          # Whh is (H, 4H)
    fH = 4 * H

    # Gate-select mask (PyTorch gate order i,f,g,o): lanes [2H,3H) use tanh,
    # all other lanes sigmoid.  Hoisted once, reused by every unrolled step.
    lane = lax.broadcasted_iota(jnp.int32, (Bb, fH), 1)
    g_mask = (lane >= 2 * H) & (lane < 3 * H)

    def run_layer(in2d, wih_ref, whh_ref, b_ref):
        # Hoisted input projection for ALL timesteps: one lane-dense MXU call,
        # combined gate bias pre-added once per layer.
        pre = jnp.dot(in2d, wih_ref[...],
                      preferred_element_type=jnp.float32) + b_ref[...]
        pre_ref[...] = pre.reshape(T, Bb, fH)

        whh = whh_ref[...]                                 # (H, 4H) hoisted
        h = jnp.zeros((Bb, H), jnp.float32)
        c = jnp.zeros((Bb, H), jnp.float32)

        # Serial recurrence: one (Bb,H)x(H,4H) matmul + fused-gate VPU/EUP work
        # per step.  Fully unrolled (T small, static) so the scheduler can
        # overlap MXU push/pop with the elementwise gate math.
        for t in range(T):
            z = pre_ref[t] + jnp.dot(h, whh,
                                     preferred_element_type=jnp.float32)
            act = jnp.where(g_mask, jnp.tanh(z), _sigmoid(z))      # (Bb, 4H)
            i_g = act[:, 0:H]
            f_g = act[:, H:2 * H]
            g_g = act[:, 2 * H:3 * H]
            o_g = act[:, 3 * H:4 * H]
            c = f_g * c + i_g * g_g
            h = o_g * jnp.tanh(c)
            seq_ref[t] = h

    # ---- LSTM stack ---------------------------------------------------------
    # TODO(synk): inter-layer LSTM dropout omitted (identity in eval-mode forward).
    in2d = x_ref[...].reshape(T * Bb, D)
    for l in range(num_layers):
        run_layer(in2d, *layer_refs[l])
        in2d = seq_ref[...].reshape(T * Bb, H)
    seq2d = in2d                                           # final layer, (T*Bb, H)

    # ---- additive attention: whole-sequence matmuls + vectorized softmax ----
    a = jnp.tanh(jnp.dot(seq2d, wa1_ref[...],
                         preferred_element_type=jnp.float32) + ba1_ref[...])
    s = jnp.dot(a, wa2_ref[...],
                preferred_element_type=jnp.float32) + ba2_ref[...]            # (T*Bb, 1)
    s = s.reshape(T, Bb, 1)
    m = jnp.max(s, axis=0, keepdims=True)                  # (1, Bb, 1)
    e = jnp.exp(s - m)
    d = jnp.sum(e, axis=0, keepdims=True)                  # (1, Bb, 1)
    w = e / d                                              # (T, Bb, 1)
    context = jnp.sum(w * seq2d.reshape(T, Bb, H), axis=0)  # (Bb, H)

    # ---- classifier head (BatchNorm folded into wc1/bc1; eval mode) ---------
    z = jnp.dot(context, wc1_ref[...],
                preferred_element_type=jnp.float32) + bc1_ref[...]
    z = jnp.maximum(z, 0.0)                                # ReLU
    # TODO(synk): classifier dropout omitted (identity in eval-mode forward).
    logit = jnp.dot(z, wc2_ref[...],
                    preferred_element_type=jnp.float32) + bc2_ref[...]
    out_ref[...] = _sigmoid(logit)                         # (Bb, 1)


# ----------------------------------------------------------------------------
# Wrapper
# ----------------------------------------------------------------------------
def fall_detection_lstm_forward(x, params, *, num_layers, eps=1e-5):
    """x: (B, T, D) float32 -> (B, 1) float32 (sigmoid probabilities)."""
    B, T, D = x.shape
    H = params["whh0"].shape[0]

    x_tbd = jnp.transpose(x, (1, 0, 2)).astype(jnp.float32)   # (T, B, D)

    # Fold BatchNorm1d (eval, running stats) into the first classifier Linear.
    scale = params["gamma"] * lax.rsqrt(params["rvar"] + eps)          # (1, 64)
    wc1_eff = params["wc1"] * scale                                    # (H, 64)
    bc1_eff = (params["bc1"] - params["rmean"]) * scale + params["beta"]

    # Batch-block grid: one block at small B; splits across TensorCores (v7x)
    # when the batch is large enough.
    n_blocks = 2 if (B % 16 == 0) else 1
    b_block = B // n_blocks

    def full_spec(shape):
        return pl.BlockSpec(shape, lambda b: (0,) * len(shape))

    inputs = [x_tbd]
    in_specs = [pl.BlockSpec((T, b_block, D), lambda b: (0, b, 0))]
    for l in range(num_layers):
        for name in (f"wih{l}", f"whh{l}", f"b{l}"):
            inputs.append(params[name])
            in_specs.append(full_spec(params[name].shape))
    for arr in (params["wa1"], params["ba1"], params["wa2"], params["ba2"],
                wc1_eff, bc1_eff, params["wc2"], params["bc2"]):
        inputs.append(arr)
        in_specs.append(full_spec(arr.shape))

    kernel = functools.partial(_fall_lstm_kernel, num_layers=num_layers)

    return pl.pallas_call(
        kernel,
        out_shape=jax.ShapeDtypeStruct((B, 1), jnp.float32),
        grid_spec=pltpu.PrefetchScalarGridSpec(
            num_scalar_prefetch=0,
            grid=(n_blocks,),
            in_specs=in_specs,
            out_specs=pl.BlockSpec((b_block, 1), lambda b: (b, 0)),
            scratch_shapes=[
                pltpu.VMEM((T, b_block, H), jnp.float32),       # layer output sequence
                pltpu.VMEM((T, b_block, 4 * H), jnp.float32),   # hoisted gate pre-activations
            ],
        ),
        compiler_params=pltpu.CompilerParams(
            dimension_semantics=("parallel",)),
    )(*inputs)


# ----------------------------------------------------------------------------
# Parameter construction (fused gate layout, gate order i,f,g,o, (in,out) matrices)
# ----------------------------------------------------------------------------
def init_params(key, input_dim, hidden_dim, num_layers):
    keys = iter(jax.random.split(key, 3 * num_layers + 12))
    nrm = lambda k, shape, s=0.15: s * jax.random.normal(k, shape, jnp.float32)

    p = {}
    d_in = input_dim
    for l in range(num_layers):
        p[f"wih{l}"] = nrm(next(keys), (d_in, 4 * hidden_dim))        # gates: i,f,g,o
        p[f"whh{l}"] = nrm(next(keys), (hidden_dim, 4 * hidden_dim))
        p[f"b{l}"] = nrm(next(keys), (1, 4 * hidden_dim))             # b_ih + b_hh combined
        d_in = hidden_dim
    p["wa1"] = nrm(next(keys), (hidden_dim, 64))
    p["ba1"] = nrm(next(keys), (1, 64))
    p["wa2"] = nrm(next(keys), (64, 1))
    p["ba2"] = nrm(next(keys), (1, 1))
    p["wc1"] = nrm(next(keys), (hidden_dim, 64))
    p["bc1"] = nrm(next(keys), (1, 64))
    p["gamma"] = 1.0 + nrm(next(keys), (1, 64), 0.05)
    p["beta"] = nrm(next(keys), (1, 64), 0.05)
    p["rmean"] = nrm(next(keys), (1, 64), 0.05)
    p["rvar"] = 1.0 + jnp.abs(nrm(next(keys), (1, 64), 0.1))
    p["wc2"] = nrm(next(keys), (64, 1))
    p["bc2"] = nrm(next(keys), (1, 1))
    return p


# ----------------------------------------------------------------------------
# Pure-JAX reference (same math, eval-mode semantics, BN NOT folded)
# ----------------------------------------------------------------------------
def reference_forward(x, params, *, num_layers, eps=1e-5):
    B, T, _ = x.shape
    hp = lax.Precision.HIGHEST
    mm = lambda a, b: jnp.dot(a, b, precision=hp)

    seq = x.astype(jnp.float32)                       # (B, T, D_in)
    for l in range(num_layers):
        wih, whh, b = params[f"wih{l}"], params[f"whh{l}"], params[f"b{l}"]
        H = whh.shape[0]

        def step(carry, x_t, wih=wih, whh=whh, b=b, H=H):
            h, c = carry
            z = mm(x_t, wih) + mm(h, whh) + b                        # (B, 4H)
            i_g = _sigmoid(z[:, 0:H])
            f_g = _sigmoid(z[:, H:2 * H])
            g_g = jnp.tanh(z[:, 2 * H:3 * H])
            o_g = _sigmoid(z[:, 3 * H:4 * H])
            c = f_g * c + i_g * g_g
            h = o_g * jnp.tanh(c)
            return (h, c), h

        h0 = jnp.zeros((B, H), jnp.float32)
        c0 = jnp.zeros((B, H), jnp.float32)
        _, hs = lax.scan(step, (h0, c0), jnp.transpose(seq, (1, 0, 2)))
        seq = jnp.transpose(hs, (1, 0, 2))            # (B, T, H)

    a = jnp.tanh(mm(seq, params["wa1"]) + params["ba1"])      # (B, T, 64)
    s = mm(a, params["wa2"]) + params["ba2"]                  # (B, T, 1)
    w = jax.nn.softmax(s, axis=1)
    context = jnp.sum(w * seq, axis=1)                        # (B, H)

    z = mm(context, params["wc1"]) + params["bc1"]
    z = (z - params["rmean"]) / jnp.sqrt(params["rvar"] + eps) * params["gamma"] + params["beta"]
    z = jnp.maximum(z, 0.0)
    return _sigmoid(mm(z, params["wc2"]) + params["bc2"])     # (B, 1)


if __name__ == "__main__":
    B, T, D, H, L = 8, 16, 48, 32, 2

    key = jax.random.PRNGKey(0)
    kx, kp = jax.random.split(key)
    x = jax.random.normal(kx, (B, T, D), jnp.float32)
    params = init_params(kp, D, H, L)

    out = jax.block_until_ready(fall_detection_lstm_forward(x, params, num_layers=L))
    ref = jax.block_until_ready(reference_forward(x, params, num_layers=L))

    assert out.shape == (B, 1)
    assert bool(jnp.all(jnp.isfinite(out)))
    assert jnp.allclose(out, ref, atol=2e-3, rtol=2e-3), (out, ref)
    print("KERNEL_OK")
</pallas_src>

<mosaic_0001>
module attributes {stable_mosaic.version = 11 : i64} {
  func.func @_fall_lstm_kernel(%arg0: i32, %arg1: memref<16x8x48xf32, #tpu.memory_space<vmem>>, %arg2: memref<48x128xf32, #tpu.memory_space<vmem>>, %arg3: memref<32x128xf32, #tpu.memory_space<vmem>>, %arg4: memref<1x128xf32, #tpu.memory_space<vmem>>, %arg5: memref<32x128xf32, #tpu.memory_space<vmem>>, %arg6: memref<32x128xf32, #tpu.memory_space<vmem>>, %arg7: memref<1x128xf32, #tpu.memory_space<vmem>>, %arg8: memref<32x64xf32, #tpu.memory_space<vmem>>, %arg9: memref<1x64xf32, #tpu.memory_space<vmem>>, %arg10: memref<64x1xf32, #tpu.memory_space<vmem>>, %arg11: memref<1x1xf32, #tpu.memory_space<vmem>>, %arg12: memref<32x64xf32, #tpu.memory_space<vmem>>, %arg13: memref<1x64xf32, #tpu.memory_space<vmem>>, %arg14: memref<64x1xf32, #tpu.memory_space<vmem>>, %arg15: memref<1x1xf32, #tpu.memory_space<vmem>>, %arg16: memref<8x1xf32, #tpu.memory_space<vmem>>, %arg17: memref<16x8x32xf32, #tpu.memory_space<vmem>>, %arg18: memref<16x8x128xf32, #tpu.memory_space<vmem>>) attributes {dimension_semantics = [#tpu.dimension_semantics<parallel>], iteration_bounds = array<i64: 1>, scalar_prefetch = 0 : i64, scratch_operands = 2 : i64, tpu.core_type = #tpu.core_type<tc>, window_params = [{transform_indices = @transform_0, window_bounds = array<i64: 16, 8, 48>}, {pipeline_mode = #tpu.pipeline_mode<synchronous>, transform_indices = @transform_1, window_bounds = array<i64: 48, 128>}, {pipeline_mode = #tpu.pipeline_mode<synchronous>, transform_indices = @transform_2, window_bounds = array<i64: 32, 128>}, {pipeline_mode = #tpu.pipeline_mode<synchronous>, transform_indices = @transform_3, window_bounds = array<i64: 1, 128>}, {pipeline_mode = #tpu.pipeline_mode<synchronous>, transform_indices = @transform_4, window_bounds = array<i64: 32, 128>}, {pipeline_mode = #tpu.pipeline_mode<synchronous>, transform_indices = @transform_5, window_bounds = array<i64: 32, 128>}, {pipeline_mode = #tpu.pipeline_mode<synchronous>, transform_indices = @transform_6, window_bounds = array<i64: 1, 128>}, {pipeline_mode = #tpu.pipeline_mode<synchronous>, transform_indices = @transform_7, window_bounds = array<i64: 32, 64>}, {pipeline_mode = #tpu.pipeline_mode<synchronous>, transform_indices = @transform_8, window_bounds = array<i64: 1, 64>}, {pipeline_mode = #tpu.pipeline_mode<synchronous>, transform_indices = @transform_9, window_bounds = array<i64: 64, 1>}, {pipeline_mode = #tpu.pipeline_mode<synchronous>, transform_indices = @transform_10, window_bounds = array<i64: 1, 1>}, {pipeline_mode = #tpu.pipeline_mode<synchronous>, transform_indices = @transform_11, window_bounds = array<i64: 32, 64>}, {pipeline_mode = #tpu.pipeline_mode<synchronous>, transform_indices = @transform_12, window_bounds = array<i64: 1, 64>}, {pipeline_mode = #tpu.pipeline_mode<synchronous>, transform_indices = @transform_13, window_bounds = array<i64: 64, 1>}, {pipeline_mode = #tpu.pipeline_mode<synchronous>, transform_indices = @transform_14, window_bounds = array<i64: 1, 1>}, {transform_indices = @transform_15, window_bounds = array<i64: 8, 1>}]} {
    %0 = tpu.iota {dimensions = array<i32: 1>} : vector<8x128xi32>
    %c64_i32 = arith.constant 64 : i32
    %1 = vector.broadcast %c64_i32 : i32 to vector<8x128xi32>
    %2 = arith.cmpi sge, %0, %1 : vector<8x128xi32>
    %c96_i32 = arith.constant 96 : i32
    %3 = vector.broadcast %c96_i32 : i32 to vector<8x128xi32>
    %4 = arith.cmpi slt, %0, %3 : vector<8x128xi32>
    %5 = arith.andi %2, %4 : vector<8x128xi1>
    %c0 = arith.constant 0 : index
    %c0_0 = arith.constant 0 : index
    %c0_1 = arith.constant 0 : index
    %6 = vector.load %arg1[%c0, %c0_0, %c0_1] : memref<16x8x48xf32, #tpu.memory_space<vmem>>, vector<16x8x48xf32>
    %7 = vector.shape_cast %6 : vector<16x8x48xf32> to vector<128x48xf32>
    %c0_2 = arith.constant 0 : index
    %c0_3 = arith.constant 0 : index
    %8 = vector.load %arg2[%c0_2, %c0_3] : memref<48x128xf32, #tpu.memory_space<vmem>>, vector<48x128xf32>
    %cst = arith.constant dense<0.000000e+00> : vector<128x128xf32>
    %9 = tpu.matmul %7, %8, %cst {dimension_numbers = #tpu.dot_dimension_numbers<[1], [0], [0], [1], [0, 0, 1, 1], [], []>} : vector<128x48xf32>, vector<48x128xf32>, vector<128x128xf32> -> vector<128x128xf32>
    %c0_4 = arith.constant 0 : index
    %c0_5 = arith.constant 0 : index
    %10 = vector.load %arg4[%c0_4, %c0_5] : memref<1x128xf32, #tpu.memory_space<vmem>>, vector<1x128xf32>
    %11 = vector.broadcast %10 : vector<1x128xf32> to vector<128x128xf32>
    %12 = arith.addf %9, %11 : vector<128x128xf32>
    %13 = vector.shape_cast %12 : vector<128x128xf32> to vector<16x8x128xf32>
    %c0_6 = arith.constant 0 : index
    %c0_7 = arith.constant 0 : index
    %c0_8 = arith.constant 0 : index
    %14 = vector.load %arg18[%c0_6, %c0_7, %c0_8] : memref<16x8x128xf32, #tpu.memory_space<vmem>>, vector<16x8x128xf32>
    tpu.vector_store %arg18[%c0_6, %c0_7, %c0_8], %13 {strides = array<i32>} : memref<16x8x128xf32, #tpu.memory_space<vmem>>, vector<16x8x128xf32>,
    %c0_9 = arith.constant 0 : index
    %c0_10 = arith.constant 0 : index
    %15 = vector.load %arg3[%c0_9, %c0_10] : memref<32x128xf32, #tpu.memory_space<vmem>>, vector<32x128xf32>
    %cst_11 = arith.constant 0.000000e+00 : f32
    %16 = vector.broadcast %cst_11 : f32 to vector<8x32xf32>
    %cst_12 = arith.constant 0.000000e+00 : f32
    %17 = vector.broadcast %cst_12 : f32 to vector<8x32xf32>
    %c0_13 = arith.constant 0 : index
    %c0_14 = arith.constant 0 : index
    %c0_15 = arith.constant 0 : index
    %18 = vector.load %arg18[%c0_13, %c0_14, %c0_15] : memref<16x8x128xf32, #tpu.memory_space<vmem>>, vector<1x8x128xf32>
    %19 = vector.shape_cast %18 : vector<1x8x128xf32> to vector<8x128xf32>
    %cst_16 = arith.constant dense<0.000000e+00> : vector<8x128xf32>
    %20 = tpu.matmul %16, %15, %cst_16 {dimension_numbers = #tpu.dot_dimension_numbers<[1], [0], [0], [1], [0, 0, 1, 1], [], []>} : vector<8x32xf32>, vector<32x128xf32>, vector<8x128xf32> -> vector<8x128xf32>
    %21 = arith.addf %19, %20 : vector<8x128xf32>
    %22 = math.tanh %21 : vector<8x128xf32>
    %cst_17 = arith.constant 0.000000e+00 : f32
    %23 = vector.broadcast %cst_17 : f32 to vector<8x128xf32>
    %24 = arith.subf %23, %21 : vector<8x128xf32>
    %25 = math.exp %24 : vector<8x128xf32>
    %cst_18 = arith.constant 1.000000e+00 : f32
    %26 = vector.broadcast %cst_18 : f32 to vector<8x128xf32>
    %27 = arith.addf %26, %25 : vector<8x128xf32>
    %cst_19 = arith.constant 1.000000e+00 : f32
    %28 = vector.broadcast %cst_19 : f32 to vector<8x128xf32>
    %29 = arith.divf %28, %27 : vector<8x128xf32>
    %30 = arith.select %5, %22, %29 : vector<8x128xi1>, vector<8x128xf32>
    %31 = vector.extract_strided_slice %30 {offsets = [0, 0], sizes = [8, 32], strides = [1, 1]} : vector<8x128xf32> to vector<8x32xf32>
    %32 = vector.extract_strided_slice %30 {offsets = [0, 32], sizes = [8, 32], strides = [1, 1]} : vector<8x128xf32> to vector<8x32xf32>
    %33 = vector.extract_strided_slice %30 {offsets = [0, 64], sizes = [8, 32], strides = [1, 1]} : vector<8x128xf32> to vector<8x32xf32>
    %34 = vector.extract_strided_slice %30 {offsets = [0, 96], sizes = [8, 32], strides = [1, 1]} : vector<8x128xf32> to vector<8x32xf32>
    %35 = arith.mulf %32, %17 : vector<8x32xf32>
    %36 = arith.mulf %31, %33 : vector<8x32xf32>
    %37 = arith.addf %35, %36 : vector<8x32xf32>
    %38 = math.tanh %37 : vector<8x32xf32>
    %39 = arith.mulf %34, %38 : vector<8x32xf32>
    %c0_20 = arith.constant 0 : index
    %c0_21 = arith.constant 0 : index
    %c0_22 = arith.constant 0 : index
    %40 = vector.load %arg17[%c0_20, %c0_21, %c0_22] : memref<16x8x32xf32, #tpu.memory_space<vmem>>, vector<1x8x32xf32>
    %41 = vector.shape_cast %40 : vector<1x8x32xf32> to vector<8x32xf32>
    %42 = vector.shape_cast %39 : vector<8x32xf32> to vector<1x8x32xf32>
    tpu.vector_store %arg17[%c0_20, %c0_21, %c0_22], %42 {strides = array<i32>} : memref<16x8x32xf32, #tpu.memory_space<vmem>>, vector<1x8x32xf32>,
    %c1 = arith.constant 1 : index
    %c0_23 = arith.constant 0 : index
    %c0_24 = arith.constant 0 : index
    %43 = vector.load %arg18[%c1, %c0_23, %c0_24] : memref<16x8x128xf32, #tpu.memory_space<vmem>>, vector<1x8x128xf32>
    %44 = vector.shape_cast %43 : vector<1x8x128xf32> to vector<8x128xf32>
    %cst_25 = arith.constant dense<0.000000e+00> : vector<8x128xf32>
    %45 = tpu.matmul %39, %15, %cst_25 {dimension_numbers = #tpu.dot_dimension_numbers<[1], [0], [0], [1], [0, 0, 1, 1], [], []>} : vector<8x32xf32>, vector<32x128xf32>, vector<8x128xf32> -> vector<8x128xf32>
    %46 = arith.addf %44, %45 : vector<8x128xf32>
    %47 = math.tanh %46 : vector<8x128xf32>
    %cst_26 = arith.constant 0.000000e+00 : f32
    %48 = vector.broadcast %cst_26 : f32 to vector<8x128xf32>
    %49 = arith.subf %48, %46 : vector<8x128xf32>
    %50 = math.exp %49 : vector<8x128xf32>
    %cst_27 = arith.constant 1.000000e+00 : f32
    %51 = vector.broadcast %cst_27 : f32 to vector<8x128xf32>
    %52 = arith.addf %51, %50 : vector<8x128xf32>
    %cst_28 = arith.constant 1.000000e+00 : f32
    %53 = vector.broadcast %cst_28 : f32 to vector<8x128xf32>
    %54 = arith.divf %53, %52 : vector<8x128xf32>
    %55 = arith.select %5, %47, %54 : vector<8x128xi1>, vector<8x128xf32>
    %56 = vector.extract_strided_slice %55 {offsets = [0, 0], sizes = [8, 32], strides = [1, 1]} : vector<8x128xf32> to vector<8x32xf32>
    %57 = vector.extract_strided_slice %55 {offsets = [0, 32], sizes = [8, 32], strides = [1, 1]} : vector<8x128xf32> to vector<8x32xf32>
    %58 = vector.extract_strided_slice %55 {offsets = [0, 64], sizes = [8, 32], strides = [1, 1]} : vector<8x128xf32> to vector<8x32xf32>
    %59 = vector.extract_strided_slice %55 {offsets = [0, 96], sizes = [8, 32], strides = [1, 1]} : vector<8x128xf32> to vector<8x32xf32>
    %60 = arith.mulf %57, %37 : vector<8x32xf32>
    %61 = arith.mulf %56, %58 : vector<8x32xf32>
    %62 = arith.addf %60, %61 : vector<8x32xf32>
    %63 = math.tanh %62 : vector<8x32xf32>
    %64 = arith.mulf %59, %63 : vector<8x32xf32>
    %c1_29 = arith.constant 1 : index
    %c0_30 = arith.constant 0 : index
    %c0_31 = arith.constant 0 : index
    %65 = vector.load %arg17[%c1_29, %c0_30, %c0_31] : memref<16x8x32xf32, #tpu.memory_space<vmem>>, vector<1x8x32xf32>
    %66 = vector.shape_cast %65 : vector<1x8x32xf32> to vector<8x32xf32>
    %67 = vector.shape_cast %64 : vector<8x32xf32> to vector<1x8x32xf32>
    tpu.vector_store %arg17[%c1_29, %c0_30, %c0_31], %67 {strides = array<i32>} : memref<16x8x32xf32, #tpu.memory_space<vmem>>, vector<1x8x32xf32>,
    %c2 = arith.constant 2 : index
    %c0_32 = arith.constant 0 : index
    %c0_33 = arith.constant 0 : index
    %68 = vector.load %arg18[%c2, %c0_32, %c0_33] : memref<16x8x128xf32, #tpu.memory_space<vmem>>, vector<1x8x128xf32>
    %69 = vector.shape_cast %68 : vector<1x8x128xf32> to vector<8x128xf32>
    %cst_34 = arith.constant dense<0.000000e+00> : vector<8x128xf32>
    %70 = tpu.matmul %64, %15, %cst_34 {dimension_numbers = #tpu.dot_dimension_numbers<[1], [0], [0], [1], [0, 0, 1, 1], [], []>} : vector<8x32xf32>, vector<32x128xf32>, vector<8x128xf32> -> vector<8x128xf32>
    %71 = arith.addf %69, %70 : vector<8x128xf32>
    %72 = math.tanh %71 : vector<8x128xf32>
    %cst_35 = arith.constant 0.000000e+00 : f32
    %73 = vector.broadcast %cst_35 : f32 to vector<8x128xf32>
    %74 = arith.subf %73, %71 : vector<8x128xf32>
    %75 = math.exp %74 : vector<8x128xf32>
    %cst_36 = arith.constant 1.000000e+00 : f32
    %76 = vector.broadcast %cst_36 : f32 to vector<8x128xf32>
    %77 = arith.addf %76, %75 : vector<8x128xf32>
    %cst_37 = arith.constant 1.000000e+00 : f32
    %78 = vector.broadcast %cst_37 : f32 to vector<8x128xf32>
    %79 = arith.divf %78, %77 : vector<8x128xf32>
    %80 = arith.select %5, %72, %79 : vector<8x128xi1>, vector<8x128xf32>
    %81 = vector.extract_strided_slice %80 {offsets = [0, 0], sizes = [8, 32], strides = [1, 1]} : vector<8x128xf32> to vector<8x32xf32>
    %82 = vector.extract_strided_slice %80 {offsets = [0, 32], sizes = [8, 32], strides = [1, 1]} : vector<8x128xf32> to vector<8x32xf32>
    %83 = vector.extract_strided_slice %80 {offsets = [0, 64], sizes = [8, 32], strides = [1, 1]} : vector<8x128xf32> to vector<8x32xf32>
    %84 = vector.extract_strided_slice %80 {offsets = [0, 96], sizes = [8, 32], strides = [1, 1]} : vector<8x128xf32> to vector<8x32xf32>
    %85 = arith.mulf %82, %62 : vector<8x32xf32>
    %86 = arith.mulf %81, %83 : vector<8x32xf32>
    %87 = arith.addf %85, %86 : vector<8x32xf32>
    %88 = math.tanh %87 : vector<8x32xf32>
    %89 = arith.mulf %84, %88 : vector<8x32xf32>
    %c2_38 = arith.constant 2 : index
    %c0_39 = arith.constant 0 : index
    %c0_40 = arith.constant 0 : index
    %90 = vector.load %arg17[%c2_38, %c0_39, %c0_40] : memref<16x8x32xf32, #tpu.memory_space<vmem>>, vector<1x8x32xf32>
    %91 = vector.shape_cast %90 : vector<1x8x32xf32> to vector<8x32xf32>
    %92 = vector.shape_cast %89 : vector<8x32xf32> to vector<1x8x32xf32>
    tpu.vector_store %arg17[%c2_38, %c0_39, %c0_40], %92 {strides = array<i32>} : memref<16x8x32xf32, #tpu.memory_space<vmem>>, vector<1x8x32xf32>,
    %c3 = arith.constant 3 : index
    %c0_41 = arith.constant 0 : index
    %c0_42 = arith.constant 0 : index
    %93 = vector.load %arg18[%c3, %c0_41, %c0_42] : memref<16x8x128xf32, #tpu.memory_space<vmem>>, vector<1x8x128xf32>
    %94 = vector.shape_cast %93 : vector<1x8x128xf32> to vector<8x128xf32>
    %cst_43 = arith.constant dense<0.000000e+00> : vector<8x128xf32>
    %95 = tpu.matmul %89, %15, %cst_43 {dimension_numbers = #tpu.dot_dimension_numbers<[1], [0], [0], [1], [0, 0, 1, 1], [], []>} : vector<8x32xf32>, vector<32x128xf32>, vector<8x128xf32> -> vector<8x128xf32>
    %96 = arith.addf %94, %95 : vector<8x128xf32>
    %97 = math.tanh %96 : vector<8x128xf32>
    %cst_44 = arith.constant 0.000000e+00 : f32
    %98 = vector.broadcast %cst_44 : f32 to vector<8x128xf32>
    %99 = arith.subf %98, %96 : vector<8x128xf32>
    %100 = math.exp %99 : vector<8x128xf32>
    %cst_45 = arith.constant 1.000000e+00 : f32
    %101 = vector.broadcast %cst_45 : f32 to vector<8x128xf32>
    %102 = arith.addf %101, %100 : vector<8x128xf32>
    %cst_46 = arith.constant 1.000000e+00 : f32
    %103 = vector.broadcast %cst_46 : f32 to vector<8x128xf32>
    %104 = arith.divf %103, %102 : vector<8x128xf32>
    %105 = arith.select %5, %97, %104 : vector<8x128xi1>, vector<8x128xf32>
    %106 = vector.extract_strided_slice %105 {offsets = [0, 0], sizes = [8, 32], strides = [1, 1]} : vector<8x128xf32> to vector<8x32xf32>
    %107 = vector.extract_strided_slice %105 {offsets = [0, 32], sizes = [8, 32], strides = [1, 1]} : vector<8x128xf32> to vector<8x32xf32>
    %108 = vector.extract_strided_slice %105 {offsets = [0, 64], sizes = [8, 32], strides = [1, 1]} : vector<8x128xf32> to vector<8x32xf32>
    %109 = vector.extract_strided_slice %105 {offsets = [0, 96], sizes = [8, 32], strides = [1, 1]} : vector<8x128xf32> to vector<8x32xf32>
    %110 = arith.mulf %107, %87 : vector<8x32xf32>
    %111 = arith.mulf %106, %108 : vector<8x32xf32>
    %112 = arith.addf %110, %111 : vector<8x32xf32>
    %113 = math.tanh %112 : vector<8x32xf32>
    %114 = arith.mulf %109, %113 : vector<8x32xf32>
    %c3_47 = arith.constant 3 : index
    %c0_48 = arith.constant 0 : index
    %c0_49 = arith.constant 0 : index
    %115 = vector.load %arg17[%c3_47, %c0_48, %c0_49] : memref<16x8x32xf32, #tpu.memory_space<vmem>>, vector<1x8x32xf32>
    %116 = vector.shape_cast %115 : vector<1x8x32xf32> to vector<8x32xf32>
    %117 = vector.shape_cast %114 : vector<8x32xf32> to vector<1x8x32xf32>
    tpu.vector_store %arg17[%c3_47, %c0_48, %c0_49], %117 {strides = array<i32>} : memref<16x8x32xf32, #tpu.memory_space<vmem>>, vector<1x8x32xf32>,
    %c4 = arith.constant 4 : index
    %c0_50 = arith.constant 0 : index
    %c0_51 = arith.constant 0 : index
    %118 = vector.load %arg18[%c4, %c0_50, %c0_51] : memref<16x8x128xf32, #tpu.memory_space<vmem>>, vector<1x8x128xf32>
    %119 = vector.shape_cast %118 : vector<1x8x128xf32> to vector<8x128xf32>
    %cst_52 = arith.constant dense<0.000000e+00> : vector<8x128xf32>
    %120 = tpu.matmul %114, %15, %cst_52 {dimension_numbers = #tpu.dot_dimension_numbers<[1], [0], [0], [1], [0, 0, 1, 1], [], []>} : vector<8x32xf32>, vector<32x128xf32>, vector<8x128xf32> -> vector<8x128xf32>
    %121 = arith.addf %119, %120 : vector<8x128xf32>
    %122 = math.tanh %121 : vector<8x128xf32>
    %cst_53 = arith.constant 0.000000e+00 : f32
    %123 = vector.broadcast %cst_53 : f32 to vector<8x128xf32>
    %124 = arith.subf %123, %121 : vector<8x128xf32>
    %125 = math.exp %124 : vector<8x128xf32>
    %cst_54 = arith.constant 1.000000e+00 : f32
    %126 = vector.broadcast %cst_54 : f32 to vector<8x128xf32>
    %127 = arith.addf %126, %125 : vector<8x128xf32>
    %cst_55 = arith.constant 1.000000e+00 : f32
    %128 = vector.broadcast %cst_55 : f32 to vector<8x128xf32>
    %129 = arith.divf %128, %127 : vector<8x128xf32>
    %130 = arith.select %5, %122, %129 : vector<8x128xi1>, vector<8x128xf32>
    %131 = vector.extract_strided_slice %130 {offsets = [0, 0], sizes = [8, 32], strides = [1, 1]} : vector<8x128xf32> to vector<8x32xf32>
    %132 = vector.extract_strided_slice %130 {offsets = [0, 32], sizes = [8, 32], strides = [1, 1]} : vector<8x128xf32> to vector<8x32xf32>
    %133 = vector.extract_strided_slice %130 {offsets = [0, 64], sizes = [8, 32], strides = [1, 1]} : vector<8x128xf32> to vector<8x32xf32>
    %134 = vector.extract_strided_slice %130 {offsets = [0, 96], sizes = [8, 32], strides = [1, 1]} : vector<8x128xf32> to vector<8x32xf32>
    %135 = arith.mulf %132, %112 : vector<8x32xf32>
    %136 = arith.mulf %131, %133 : vector<8x32xf32>
    %137 = arith.addf %135, %136 : vector<8x32xf32>
    %138 = math.tanh %137 : vector<8x32xf32>
    %139 = arith.mulf %134, %138 : vector<8x32xf32>
    %c4_56 = arith.constant 4 : index
    %c0_57 = arith.constant 0 : index
    %c0_58 = arith.constant 0 : index
    %140 = vector.load %arg17[%c4_56, %c0_57, %c0_58] : memref<16x8x32xf32, #tpu.memory_space<vmem>>, vector<1x8x32xf32>
    %141 = vector.shape_cast %140 : vector<1x8x32xf32> to vector<8x32xf32>
    %142 = vector.shape_cast %139 : vector<8x32xf32> to vector<1x8x32xf32>
    tpu.vector_store %arg17[%c4_56, %c0_57, %c0_58], %142 {strides = array<i32>} : memref<16x8x32xf32, #tpu.memory_space<vmem>>, vector<1x8x32xf32>,
    %c5 = arith.constant 5 : index
    %c0_59 = arith.constant 0 : index
    %c0_60 = arith.constant 0 : index
    %143 = vector.load %arg18[%c5, %c0_59, %c0_60] : memref<16x8x128xf32, #tpu.memory_space<vmem>>, vector<1x8x128xf32>
    %144 = vector.shape_cast %143 : vector<1x8x128xf32> to vector<8x128xf32>
    %cst_61 = arith.constant dense<0.000000e+00> : vector<8x128xf32>
    %145 = tpu.matmul %139, %15, %cst_61 {dimension_numbers = #tpu.dot_dimension_numbers<[1], [0], [0], [1], [0, 0, 1, 1], [], []>} : vector<8x32xf32>, vector<32x128xf32>, vector<8x128xf32> -> vector<8x128xf32>
    %146 = arith.addf %144, %145 : vector<8x128xf32>
    %147 = math.tanh %146 : vector<8x128xf32>
    %cst_62 = arith.constant 0.000000e+00 : f32
    %148 = vector.broadcast %cst_62 : f32 to vector<8x128xf32>
    %149 = arith.subf %148, %146 : vector<8x128xf32>
    %150 = math.exp %149 : vector<8x128xf32>
    %cst_63 = arith.constant 1.000000e+00 : f32
    %151 = vector.broadcast %cst_63 : f32 to vector<8x128xf32>
    %152 = arith.addf %151, %150 : vector<8x128xf32>
    %cst_64 = arith.constant 1.000000e+00 : f32
    %153 = vector.broadcast %cst_64 : f32 to vector<8x128xf32>
    %154 = arith.divf %153, %152 : vector<8x128xf32>
    %155 = arith.select %5, %147, %154 : vector<8x128xi1>, vector<8x128xf32>
    %156 = vector.extract_strided_slice %155 {offsets = [0, 0], sizes = [8, 32], strides = [1, 1]} : vector<8x128xf32> to vector<8x32xf32>
    %157 = vector.extract_strided_slice %155 {offsets = [0, 32], sizes = [8, 32], strides = [1, 1]} : vector<8x128xf32> to vector<8x32xf32>
    %158 = vector.extract_strided_slice %155 {offsets = [0, 64], sizes = [8, 32], strides = [1, 1]} : vector<8x128xf32> to vector<8x32xf32>
    %159 = vector.extract_strided_slice %155 {offsets = [0, 96], sizes = [8, 32], strides = [1, 1]} : vector<8x128xf32> to vector<8x32xf32>
    %160 = arith.mulf %157, %137 : vector<8x32xf32>
    %161 = arith.mulf %156, %158 : vector<8x32xf32>
    %162 = arith.addf %160, %161 : vector<8x32xf32>
    %163 = math.tanh %162 : vector<8x32xf32>
    %164 = arith.mulf %159, %163 : vector<8x32xf32>
    %c5_65 = arith.constant 5 : index
    %c0_66 = arith.constant 0 : index
    %c0_67 = arith.constant 0 : index
    %165 = vector.load %arg17[%c5_65, %c0_66, %c0_67] : memref<16x8x32xf32, #tpu.memory_space<vmem>>, vector<1x8x32xf32>
    %166 = vector.shape_cast %165 : vector<1x8x32xf32> to vector<8x32xf32>
    %167 = vector.shape_cast %164 : vector<8x32xf32> to vector<1x8x32xf32>
    tpu.vector_store %arg17[%c5_65, %c0_66, %c0_67], %167 {strides = array<i32>} : memref<16x8x32xf32, #tpu.memory_space<vmem>>, vector<1x8x32xf32>,
    %c6 = arith.constant 6 : index
    %c0_68 = arith.constant 0 : index
    %c0_69 = arith.constant 0 : index
    %168 = vector.load %arg18[%c6, %c0_68, %c0_69] : memref<16x8x128xf32, #tpu.memory_space<vmem>>, vector<1x8x128xf32>
    %169 = vector.shape_cast %168 : vector<1x8x128xf32> to vector<8x128xf32>
    %cst_70 = arith.constant dense<0.000000e+00> : vector<8x128xf32>
    %170 = tpu.matmul %164, %15, %cst_70 {dimension_numbers = #tpu.dot_dimension_numbers<[1], [0], [0], [1], [0, 0, 1, 1], [], []>} : vector<8x32xf32>, vector<32x128xf32>, vector<8x128xf32> -> vector<8x128xf32>
    %171 = arith.addf %169, %170 : vector<8x128xf32>
    %172 = math.tanh %171 : vector<8x128xf32>
    %cst_71 = arith.constant 0.000000e+00 : f32
    %173 = vector.broadcast %cst_71 : f32 to vector<8x128xf32>
    %174 = arith.subf %173, %171 : vector<8x128xf32>
    %175 = math.exp %174 : vector<8x128xf32>
    %cst_72 = arith.constant 1.000000e+00 : f32
    %176 = vector.broadcast %cst_72 : f32 to vector<8x128xf32>
    %177 = arith.addf %176, %175 : vector<8x128xf32>
    %cst_73 = arith.constant 1.000000e+00 : f32
    %178 = vector.broadcast %cst_73 : f32 to vector<8x128xf32>
    %179 = arith.divf %178, %177 : vector<8x128xf32>
    %180 = arith.select %5, %172, %179 : vector<8x128xi1>, vector<8x128xf32>
    %181 = vector.extract_strided_slice %180 {offsets = [0, 0], sizes = [8, 32], strides = [1, 1]} : vector<8x128xf32> to vector<8x32xf32>
    %182 = vector.extract_strided_slice %180 {offsets = [0, 32], sizes = [8, 32], strides = [1, 1]} : vector<8x128xf32> to vector<8x32xf32>
    %183 = vector.extract_strided_slice %180 {offsets = [0, 64], sizes = [8, 32], strides = [1, 1]} : vector<8x128xf32> to vector<8x32xf32>
    %184 = vector.extract_strided_slice %180 {offsets = [0, 96], sizes = [8, 32], strides = [1, 1]} : vector<8x128xf32> to vector<8x32xf32>
    %185 = arith.mulf %182, %162 : vector<8x32xf32>
    %186 = arith.mulf %181, %183 : vector<8x32xf32>
    %187 = arith.addf %185, %186 : vector<8x32xf32>
    %188 = math.tanh %187 : vector<8x32xf32>
    %189 = arith.mulf %184, %188 : vector<8x32xf32>
    %c6_74 = arith.constant 6 : index
    %c0_75 = arith.constant 0 : index
    %c0_76 = arith.constant 0 : index
    %190 = vector.load %arg17[%c6_74, %c0_75, %c0_76] : memref<16x8x32xf32, #tpu.memory_space<vmem>>, vector<1x8x32xf32>
    %191 = vector.shape_cast %190 : vector<1x8x32xf32> to vector<8x32xf32>
    %192 = vector.shape_cast %189 : vector<8x32xf32> to vector<1x8x32xf32>
    tpu.vector_store %arg17[%c6_74, %c0_75, %c0_76], %192 {strides = array<i32>} : memref<16x8x32xf32, #tpu.memory_space<vmem>>, vector<1x8x32xf32>,
    %c7 = arith.constant 7 : index
    %c0_77 = arith.constant 0 : index
    %c0_78 = arith.constant 0 : index
    %193 = vector.load %arg18[%c7, %c0_77, %c0_78] : memref<16x8x128xf32, #tpu.memory_space<vmem>>, vector<1x8x128xf32>
    %194 = vector.shape_cast %193 : vector<1x8x128xf32> to vector<8x128xf32>
    %cst_79 = arith.constant dense<0.000000e+00> : vector<8x128xf32>
    %195 = tpu.matmul %189, %15, %cst_79 {dimension_numbers = #tpu.dot_dimension_numbers<[1], [0], [0], [1], [0, 0, 1, 1], [], []>} : vector<8x32xf32>, vector<32x128xf32>, vector<8x128xf32> -> vector<8x128xf32>
    %196 = arith.addf %194, %195 : vector<8x128xf32>
    %197 = math.tanh %196 : vector<8x128xf32>
    %cst_80 = arith.constant 0.000000e+00 : f32
    %198 = vector.broadcast %cst_80 : f32 to vector<8x128xf32>
    %199 = arith.subf %198, %196 : vector<8x128xf32>
    %200 = math.exp %199 : vector<8x128xf32>
    %cst_81 = arith.constant 1.000000e+00 : f32
    %201 = vector.broadcast %cst_81 : f32 to vector<8x128xf32>
    %202 = arith.addf %201, %200 : vector<8x128xf32>
    %cst_82 = arith.constant 1.000000e+00 : f32
    %203 = vector.broadcast %cst_82 : f32 to vector<8x128xf32>
    %204 = arith.divf %203, %202 : vector<8x128xf32>
    %205 = arith.select %5, %197, %204 : vector<8x128xi1>, vector<8x128xf32>
    %206 = vector.extract_strided_slice %205 {offsets = [0, 0], sizes = [8, 32], strides = [1, 1]} : vector<8x128xf32> to vector<8x32xf32>
    %207 = vector.extract_strided_slice %205 {offsets = [0, 32], sizes = [8, 32], strides = [1, 1]} : vector<8x128xf32> to vector<8x32xf32>
    %208 = vector.extract_strided_slice %205 {offsets = [0, 64], sizes = [8, 32], strides = [1, 1]} : vector<8x128xf32> to vector<8x32xf32>
    %209 = vector.extract_strided_slice %205 {offsets = [0, 96], sizes = [8, 32], strides = [1, 1]} : vector<8x128xf32> to vector<8x32xf32>
    %210 = arith.mulf %207, %187 : vector<8x32xf32>
    %211 = arith.mulf %206, %208 : vector<8x32xf32>
    %212 = arith.addf %210, %211 : vector<8x32xf32>
    %213 = math.tanh %212 : vector<8x32xf32>
    %214 = arith.mulf %209, %213 : vector<8x32xf32>
    %c7_83 = arith.constant 7 : index
    %c0_84 = arith.constant 0 : index
    %c0_85 = arith.constant 0 : index
    %215 = vector.load %arg17[%c7_83, %c0_84, %c0_85] : memref<16x8x32xf32, #tpu.memory_space<vmem>>, vector<1x8x32xf32>
    %216 = vector.shape_cast %215 : vector<1x8x32xf32> to vector<8x32xf32>
    %217 = vector.shape_cast %214 : vector<8x32xf32> to vector<1x8x32xf32>
    tpu.vector_store %arg17[%c7_83, %c0_84, %c0_85], %217 {strides = array<i32>} : memref<16x8x32xf32, #tpu.memory_space<vmem>>, vector<1x8x32xf32>,
    %c8 = arith.constant 8 : index
    %c0_86 = arith.constant 0 : index
    %c0_87 = arith.constant 0 : index
    %218 = vector.load %arg18[%c8, %c0_86, %c0_87] : memref<16x8x128xf32, #tpu.memory_space<vmem>>, vector<1x8x128xf32>
    %219 = vector.shape_cast %218 : vector<1x8x128xf32> to vector<8x128xf32>
    %cst_88 = arith.constant dense<0.000000e+00> : vector<8x128xf32>
    %220 = tpu.matmul %214, %15, %cst_88 {dimension_numbers = #tpu.dot_dimension_numbers<[1], [0], [0], [1], [0, 0, 1, 1], [], []>} : vector<8x32xf32>, vector<32x128xf32>, vector<8x128xf32> -> vector<8x128xf32>
    %221 = arith.addf %219, %220 : vector<8x128xf32>
    %222 = math.tanh %221 : vector<8x128xf32>
    %cst_89 = arith.constant 0.000000e+00 : f32
    %223 = vector.broadcast %cst_89 : f32 to vector<8x128xf32>
    %224 = arith.subf %223, %221 : vector<8x128xf32>
    %225 = math.exp %224 : vector<8x128xf32>
    %cst_90 = arith.constant 1.000000e+00 : f32
    %226 = vector.broadcast %cst_90 : f32 to vector<8x128xf32>
    %227 = arith.addf %226, %225 : vector<8x128xf32>
    %cst_91 = arith.constant 1.000000e+00 : f32
    %228 = vector.broadcast %cst_91 : f32 to vector<8x128xf32>
    %229 = arith.divf %228, %227 : vector<8x128xf32>
    %230 = arith.select %5, %222, %229 : vector<8x128xi1>, vector<8x128xf32>
    %231 = vector.extract_strided_slice %230 {offsets = [0, 0], sizes = [8, 32], strides = [1, 1]} : vector<8x128xf32> to vector<8x32xf32>
    %232 = vector.extract_strided_slice %230 {offsets = [0, 32], sizes = [8, 32], strides = [1, 1]} : vector<8x128xf32> to vector<8x32xf32>
    %233 = vector.extract_strided_slice %230 {offsets = [0, 64], sizes = [8, 32], strides = [1, 1]} : vector<8x128xf32> to vector<8x32xf32>
    %234 = vector.extract_strided_slice %230 {offsets = [0, 96], sizes = [8, 32], strides = [1, 1]} : vector<8x128xf32> to vector<8x32xf32>
    %235 = arith.mulf %232, %212 : vector<8x32xf32>
    %236 = arith.mulf %231, %233 : vector<8x32xf32>
    %237 = arith.addf %235, %236 : vector<8x32xf32>
    %238 = math.tanh %237 : vector<8x32xf32>
    %239 = arith.mulf %234, %238 : vector<8x32xf32>
    %c8_92 = arith.constant 8 : index
    %c0_93 = arith.constant 0 : index
    %c0_94 = arith.constant 0 : index
    %240 = vector.load %arg17[%c8_92, %c0_93, %c0_94] : memref<16x8x32xf32, #tpu.memory_space<vmem>>, vector<1x8x32xf32>
    %241 = vector.shape_cast %240 : vector<1x8x32xf32> to vector<8x32xf32>
    %242 = vector.shape_cast %239 : vector<8x32xf32> to vector<1x8x32xf32>
    tpu.vector_store %arg17[%c8_92, %c0_93, %c0_94], %242 {strides = array<i32>} : memref<16x8x32xf32, #tpu.memory_space<vmem>>, vector<1x8x32xf32>,
    %c9 = arith.constant 9 : index
    %c0_95 = arith.constant 0 : index
    %c0_96 = arith.constant 0 : index
    %243 = vector.load %arg18[%c9, %c0_95, %c0_96] : memref<16x8x128xf32, #tpu.memory_space<vmem>>, vector<1x8x128xf32>
    %244 = vector.shape_cast %243 : vector<1x8x128xf32> to vector<8x128xf32>
    %cst_97 = arith.constant dense<0.000000e+00> : vector<8x128xf32>
    %245 = tpu.matmul %239, %15, %cst_97 {dimension_numbers = #tpu.dot_dimension_numbers<[1], [0], [0], [1], [0, 0, 1, 1], [], []>} : vector<8x32xf32>, vector<32x128xf32>, vector<8x128xf32> -> vector<8x128xf32>
    %246 = arith.addf %244, %245 : vector<8x128xf32>
    %247 = math.tanh %246 : vector<8x128xf32>
    %cst_98 = arith.constant 0.000000e+00 : f32
    %248 = vector.broadcast %cst_98 : f32 to vector<8x128xf32>
    %249 = arith.subf %248, %246 : vector<8x128xf32>
    %250 = math.exp %249 : vector<8x128xf32>
    %cst_99 = arith.constant 1.000000e+00 : f32
    %251 = vector.broadcast %cst_99 : f32 to vector<8x128xf32>
    %252 = arith.addf %251, %250 : vector<8x128xf32>
    %cst_100 = arith.constant 1.000000e+00 : f32
    %253 = vector.broadcast %cst_100 : f32 to vector<8x128xf32>
    %254 = arith.divf %253, %252 : vector<8x128xf32>
    %255 = arith.select %5, %247, %254 : vector<8x128xi1>, vector<8x128xf32>
    %256 = vector.extract_strided_slice %255 {offsets = [0, 0], sizes = [8, 32], strides = [1, 1]} : vector<8x128xf32> to vector<8x32xf32>
    %257 = vector.extract_strided_slice %255 {offsets = [0, 32], sizes = [8, 32], strides = [1, 1]} : vector<8x128xf32> to vector<8x32xf32>
    %258 = vector.extract_strided_slice %255 {offsets = [0, 64], sizes = [8, 32], strides = [1, 1]} : vector<8x128xf32> to vector<8x32xf32>
    %259 = vector.extract_strided_slice %255 {offsets = [0, 96], sizes = [8, 32], strides = [1, 1]} : vector<8x128xf32> to vector<8x32xf32>
    %260 = arith.mulf %257, %237 : vector<8x32xf32>
    %261 = arith.mulf %256, %258 : vector<8x32xf32>
    %262 = arith.addf %260, %261 : vector<8x32xf32>
    %263 = math.tanh %262 : vector<8x32xf32>
    %264 = arith.mulf %259, %263 : vector<8x32xf32>
    %c9_101 = arith.constant 9 : index
    %c0_102 = arith.constant 0 : index
    %c0_103 = arith.constant 0 : index
    %265 = vector.load %arg17[%c9_101, %c0_102, %c0_103] : memref<16x8x32xf32, #tpu.memory_space<vmem>>, vector<1x8x32xf32>
    %266 = vector.shape_cast %265 : vector<1x8x32xf32> to vector<8x32xf32>
    %267 = vector.shape_cast %264 : vector<8x32xf32> to vector<1x8x32xf32>
    tpu.vector_store %arg17[%c9_101, %c0_102, %c0_103], %267 {strides = array<i32>} : memref<16x8x32xf32, #tpu.memory_space<vmem>>, vector<1x8x32xf32>,
    %c10 = arith.constant 10 : index
    %c0_104 = arith.constant 0 : index
    %c0_105 = arith.constant 0 : index
    %268 = vector.load %arg18[%c10, %c0_104, %c0_105] : memref<16x8x128xf32, #tpu.memory_space<vmem>>, vector<1x8x128xf32>
    %269 = vector.shape_cast %268 : vector<1x8x128xf32> to vector<8x128xf32>
    %cst_106 = arith.constant dense<0.000000e+00> : vector<8x128xf32>
    %270 = tpu.matmul %264, %15, %cst_106 {dimension_numbers = #tpu.dot_dimension_numbers<[1], [0], [0], [1], [0, 0, 1, 1], [], []>} : vector<8x32xf32>, vector<32x128xf32>, vector<8x128xf32> -> vector<8x128xf32>
    %271 = arith.addf %269, %270 : vector<8x128xf32>
    %272 = math.tanh %271 : vector<8x128xf32>
    %cst_107 = arith.constant 0.000000e+00 : f32
    %273 = vector.broadcast %cst_107 : f32 to vector<8x128xf32>
    %274 = arith.subf %273, %271 : vector<8x128xf32>
    %275 = math.exp %274 : vector<8x128xf32>
    %cst_108 = arith.constant 1.000000e+00 : f32
    %276 = vector.broadcast %cst_108 : f32 to vector<8x128xf32>
    %277 = arith.addf %276, %275 : vector<8x128xf32>
    %cst_109 = arith.constant 1.000000e+00 : f32
    %278 = vector.broadcast %cst_109 : f32 to vector<8x128xf32>
    %279 = arith.divf %278, %277 : vector<8x128xf32>
    %280 = arith.select %5, %272, %279 : vector<8x128xi1>, vector<8x128xf32>
    %281 = vector.extract_strided_slice %280 {offsets = [0, 0], sizes = [8, 32], strides = [1, 1]} : vector<8x128xf32> to vector<8x32xf32>
    %282 = vector.extract_strided_slice %280 {offsets = [0, 32], sizes = [8, 32], strides = [1, 1]} : vector<8x128xf32> to vector<8x32xf32>
    %283 = vector.extract_strided_slice %280 {offsets = [0, 64], sizes = [8, 32], strides = [1, 1]} : vector<8x128xf32> to vector<8x32xf32>
    %284 = vector.extract_strided_slice %280 {offsets = [0, 96], sizes = [8, 32], strides = [1, 1]} : vector<8x128xf32> to vector<8x32xf32>
    %285 = arith.mulf %282, %262 : vector<8x32xf32>
    %286 = arith.mulf %281, %283 : vector<8x32xf32>
    %287 = arith.addf %285, %286 : vector<8x32xf32>
    %288 = math.tanh %287 : vector<8x32xf32>
    %289 = arith.mulf %284, %288 : vector<8x32xf32>
    %c10_110 = arith.constant 10 : index
    %c0_111 = arith.constant 0 : index
    %c0_112 = arith.constant 0 : index
    %290 = vector.load %arg17[%c10_110, %c0_111, %c0_112] : memref<16x8x32xf32, #tpu.memory_space<vmem>>, vector<1x8x32xf32>
    %291 = vector.shape_cast %290 : vector<1x8x32xf32> to vector<8x32xf32>
    %292 = vector.shape_cast %289 : vector<8x32xf32> to vector<1x8x32xf32>
    tpu.vector_store %arg17[%c10_110, %c0_111, %c0_112], %292 {strides = array<i32>} : memref<16x8x32xf32, #tpu.memory_space<vmem>>, vector<1x8x32xf32>,
    %c11 = arith.constant 11 : index
    %c0_113 = arith.constant 0 : index
    %c0_114 = arith.constant 0 : index
    %293 = vector.load %arg18[%c11, %c0_113, %c0_114] : memref<16x8x128xf32, #tpu.memory_space<vmem>>, vector<1x8x128xf32>
    %294 = vector.shape_cast %293 : vector<1x8x128xf32> to vector<8x128xf32>
    %cst_115 = arith.constant dense<0.000000e+00> : vector<8x128xf32>
    %295 = tpu.matmul %289, %15, %cst_115 {dimension_numbers = #tpu.dot_dimension_numbers<[1], [0], [0], [1], [0, 0, 1, 1], [], []>} : vector<8x32xf32>, vector<32x128xf32>, vector<8x128xf32> -> vector<8x128xf32>
    %296 = arith.addf %294, %295 : vector<8x128xf32>
    %297 = math.tanh %296 : vector<8x128xf32>
    %cst_116 = arith.constant 0.000000e+00 : f32
    %298 = vector.broadcast %cst_116 : f32 to vector<8x128xf32>
    %299 = arith.subf %298, %296 : vector<8x128xf32>
    %300 = math.exp %299 : vector<8x128xf32>
    %cst_117 = arith.constant 1.000000e+00 : f32
    %301 = vector.broadcast %cst_117 : f32 to vector<8x128xf32>
    %302 = arith.addf %301, %300 : vector<8x128xf32>
    %cst_118 = arith.constant 1.000000e+00 : f32
    %303 = vector.broadcast %cst_118 : f32 to vector<8x128xf32>
    %304 = arith.divf %303, %302 : vector<8x128xf32>
    %305 = arith.select %5, %297, %304 : vector<8x128xi1>, vector<8x128xf32>
    %306 = vector.extract_strided_slice %305 {offsets = [0, 0], sizes = [8, 32], strides = [1, 1]} : vector<8x128xf32> to vector<8x32xf32>
    %307 = vector.extract_strided_slice %305 {offsets = [0, 32], sizes = [8, 32], strides = [1, 1]} : vector<8x128xf32> to vector<8x32xf32>
    %308 = vector.extract_strided_slice %305 {offsets = [0, 64], sizes = [8, 32], strides = [1, 1]} : vector<8x128xf32> to vector<8x32xf32>
    %309 = vector.extract_strided_slice %305 {offsets = [0, 96], sizes = [8, 32], strides = [1, 1]} : vector<8x128xf32> to vector<8x32xf32>
    %310 = arith.mulf %307, %287 : vector<8x32xf32>
    %311 = arith.mulf %306, %308 : vector<8x32xf32>
    %312 = arith.addf %310, %311 : vector<8x32xf32>
    %313 = math.tanh %312 : vector<8x32xf32>
    %314 = arith.mulf %309, %313 : vector<8x32xf32>
    %c11_119 = arith.constant 11 : index
    %c0_120 = arith.constant 0 : index
    %c0_121 = arith.constant 0 : index
    %315 = vector.load %arg17[%c11_119, %c0_120, %c0_121] : memref<16x8x32xf32, #tpu.memory_space<vmem>>, vector<1x8x32xf32>
    %316 = vector.shape_cast %315 : vector<1x8x32xf32> to vector<8x32xf32>
    %317 = vector.shape_cast %314 : vector<8x32xf32> to vector<1x8x32xf32>
    tpu.vector_store %arg17[%c11_119, %c0_120, %c0_121], %317 {strides = array<i32>} : memref<16x8x32xf32, #tpu.memory_space<vmem>>, vector<1x8x32xf32>,
    %c12 = arith.constant 12 : index
    %c0_122 = arith.constant 0 : index
    %c0_123 = arith.constant 0 : index
    %318 = vector.load %arg18[%c12, %c0_122, %c0_123] : memref<16x8x128xf32, #tpu.memory_space<vmem>>, vector<1x8x128xf32>
    %319 = vector.shape_cast %318 : vector<1x8x128xf32> to vector<8x128xf32>
    %cst_124 = arith.constant dense<0.000000e+00> : vector<8x128xf32>
    %320 = tpu.matmul %314, %15, %cst_124 {dimension_numbers = #tpu.dot_dimension_numbers<[1], [0], [0], [1], [0, 0, 1, 1], [], []>} : vector<8x32xf32>, vector<32x128xf32>, vector<8x128xf32> -> vector<8x128xf32>
    %321 = arith.addf %319, %320 : vector<8x128xf32>
    %322 = math.tanh %321 : vector<8x128xf32>
    %cst_125 = arith.constant 0.000000e+00 : f32
    %323 = vector.broadcast %cst_125 : f32 to vector<8x128xf32>
    %324 = arith.subf %323, %321 : vector<8x128xf32>
    %325 = math.exp %324 : vector<8x128xf32>
    %cst_126 = arith.constant 1.000000e+00 : f32
    %326 = vector.broadcast %cst_126 : f32 to vector<8x128xf32>
    %327 = arith.addf %326, %325 : vector<8x128xf32>
    %cst_127 = arith.constant 1.000000e+00 : f32
    %328 = vector.broadcast %cst_127 : f32 to vector<8x128xf32>
    %329 = arith.divf %328, %327 : vector<8x128xf32>
    %330 = arith.select %5, %322, %329 : vector<8x128xi1>, vector<8x128xf32>
    %331 = vector.extract_strided_slice %330 {offsets = [0, 0], sizes = [8, 32], strides = [1, 1]} : vector<8x128xf32> to vector<8x32xf32>
    %332 = vector.extract_strided_slice %330 {offsets = [0, 32], sizes = [8, 32], strides = [1, 1]} : vector<8x128xf32> to vector<8x32xf32>
    %333 = vector.extract_strided_slice %330 {offsets = [0, 64], sizes = [8, 32], strides = [1, 1]} : vector<8x128xf32> to vector<8x32xf32>
    %334 = vector.extract_strided_slice %330 {offsets = [0, 96], sizes = [8, 32], strides = [1, 1]} : vector<8x128xf32> to vector<8x32xf32>
    %335 = arith.mulf %332, %312 : vector<8x32xf32>
    %336 = arith.mulf %331, %333 : vector<8x32xf32>
    %337 = arith.addf %335, %336 : vector<8x32xf32>
    %338 = math.tanh %337 : vector<8x32xf32>
    %339 = arith.mulf %334, %338 : vector<8x32xf32>
    %c12_128 = arith.constant 12 : index
    %c0_129 = arith.constant 0 : index
    %c0_130 = arith.constant 0 : index
    %340 = vector.load %arg17[%c12_128, %c0_129, %c0_130] : memref<16x8x32xf32, #tpu.memory_space<vmem>>, vector<1x8x32xf32>
    %341 = vector.shape_cast %340 : vector<1x8x32xf32> to vector<8x32xf32>
    %342 = vector.shape_cast %339 : vector<8x32xf32> to vector<1x8x32xf32>
    tpu.vector_store %arg17[%c12_128, %c0_129, %c0_130], %342 {strides = array<i32>} : memref<16x8x32xf32, #tpu.memory_space<vmem>>, vector<1x8x32xf32>,
    %c13 = arith.constant 13 : index
    %c0_131 = arith.constant 0 : index
    %c0_132 = arith.constant 0 : index
    %343 = vector.load %arg18[%c13, %c0_131, %c0_132] : memref<16x8x128xf32, #tpu.memory_space<vmem>>, vector<1x8x128xf32>
    %344 = vector.shape_cast %343 : vector<1x8x128xf32> to vector<8x128xf32>
    %cst_133 = arith.constant dense<0.000000e+00> : vector<8x128xf32>
    %345 = tpu.matmul %339, %15, %cst_133 {dimension_numbers = #tpu.dot_dimension_numbers<[1], [0], [0], [1], [0, 0, 1, 1], [], []>} : vector<8x32xf32>, vector<32x128xf32>, vector<8x128xf32> -> vector<8x128xf32>
    %346 = arith.addf %344, %345 : vector<8x128xf32>
    %347 = math.tanh %346 : vector<8x128xf32>
    %cst_134 = arith.constant 0.000000e+00 : f32
    %348 = vector.broadcast %cst_134 : f32 to vector<8x128xf32>
    %349 = arith.subf %348, %346 : vector<8x128xf32>
    %350 = math.exp %349 : vector<8x128xf32>
    %cst_135 = arith.constant 1.000000e+00 : f32
    %351 = vector.broadcast %cst_135 : f32 to vector<8x128xf32>
    %352 = arith.addf %351, %350 : vector<8x128xf32>
    %cst_136 = arith.constant 1.000000e+00 : f32
    %353 = vector.broadcast %cst_136 : f32 to vector<8x128xf32>
    %354 = arith.divf %353, %352 : vector<8x128xf32>
    %355 = arith.select %5, %347, %354 : vector<8x128xi1>, vector<8x128xf32>
    %356 = vector.extract_strided_slice %355 {offsets = [0, 0], sizes = [8, 32], strides = [1, 1]} : vector<8x128xf32> to vector<8x32xf32>
    %357 = vector.extract_strided_slice %355 {offsets = [0, 32], sizes = [8, 32], strides = [1, 1]} : vector<8x128xf32> to vector<8x32xf32>
    %358 = vector.extract_strided_slice %355 {offsets = [0, 64], sizes = [8, 32], strides = [1, 1]} : vector<8x128xf32> to vector<8x32xf32>
    %359 = vector.extract_strided_slice %355 {offsets = [0, 96], sizes = [8, 32], strides = [1, 1]} : vector<8x128xf32> to vector<8x32xf32>
    %360 = arith.mulf %357, %337 : vector<8x32xf32>
    %361 = arith.mulf %356, %358 : vector<8x32xf32>
    %362 = arith.addf %360, %361 : vector<8x32xf32>
    %363 = math.tanh %362 : vector<8x32xf32>
    %364 = arith.mulf %359, %363 : vector<8x32xf32>
    %c13_137 = arith.constant 13 : index
    %c0_138 = arith.constant 0 : index
    %c0_139 = arith.constant 0 : index
    %365 = vector.load %arg17[%c13_137, %c0_138, %c0_139] : memref<16x8x32xf32, #tpu.memory_space<vmem>>, vector<1x8x32xf32>
    %366 = vector.shape_cast %365 : vector<1x8x32xf32> to vector<8x32xf32>
    %367 = vector.shape_cast %364 : vector<8x32xf32> to vector<1x8x32xf32>
    tpu.vector_store %arg17[%c13_137, %c0_138, %c0_139], %367 {strides = array<i32>} : memref<16x8x32xf32, #tpu.memory_space<vmem>>, vector<1x8x32xf32>,
    %c14 = arith.constant 14 : index
    %c0_140 = arith.constant 0 : index
    %c0_141 = arith.constant 0 : index
    %368 = vector.load %arg18[%c14, %c0_140, %c0_141] : memref<16x8x128xf32, #tpu.memory_space<vmem>>, vector<1x8x128xf32>
    %369 = vector.shape_cast %368 : vector<1x8x128xf32> to vector<8x128xf32>
    %cst_142 = arith.constant dense<0.000000e+00> : vector<8x128xf32>
    %370 = tpu.matmul %364, %15, %cst_142 {dimension_numbers = #tpu.dot_dimension_numbers<[1], [0], [0], [1], [0, 0, 1, 1], [], []>} : vector<8x32xf32>, vector<32x128xf32>, vector<8x128xf32> -> vector<8x128xf32>
    %371 = arith.addf %369, %370 : vector<8x128xf32>
    %372 = math.tanh %371 : vector<8x128xf32>
    %cst_143 = arith.constant 0.000000e+00 : f32
    %373 = vector.broadcast %cst_143 : f32 to vector<8x128xf32>
    %374 = arith.subf %373, %371 : vector<8x128xf32>
    %375 = math.exp %374 : vector<8x128xf32>
    %cst_144 = arith.constant 1.000000e+00 : f32
    %376 = vector.broadcast %cst_144 : f32 to vector<8x128xf32>
    %377 = arith.addf %376, %375 : vector<8x128xf32>
    %cst_145 = arith.constant 1.000000e+00 : f32
    %378 = vector.broadcast %cst_145 : f32 to vector<8x128xf32>
    %379 = arith.divf %378, %377 : vector<8x128xf32>
    %380 = arith.select %5, %372, %379 : vector<8x128xi1>, vector<8x128xf32>
    %381 = vector.extract_strided_slice %380 {offsets = [0, 0], sizes = [8, 32], strides = [1, 1]} : vector<8x128xf32> to vector<8x32xf32>
    %382 = vector.extract_strided_slice %380 {offsets = [0, 32], sizes = [8, 32], strides = [1, 1]} : vector<8x128xf32> to vector<8x32xf32>
    %383 = vector.extract_strided_slice %380 {offsets = [0, 64], sizes = [8, 32], strides = [1, 1]} : vector<8x128xf32> to vector<8x32xf32>
    %384 = vector.extract_strided_slice %380 {offsets = [0, 96], sizes = [8, 32], strides = [1, 1]} : vector<8x128xf32> to vector<8x32xf32>
    %385 = arith.mulf %382, %362 : vector<8x32xf32>
    %386 = arith.mulf %381, %383 : vector<8x32xf32>
    %387 = arith.addf %385, %386 : vector<8x32xf32>
    %388 = math.tanh %387 : vector<8x32xf32>
    %389 = arith.mulf %384, %388 : vector<8x32xf32>
    %c14_146 = arith.constant 14 : index
    %c0_147 = arith.constant 0 : index
    %c0_148 = arith.constant 0 : index
    %390 = vector.load %arg17[%c14_146, %c0_147, %c0_148] : memref<16x8x32xf32, #tpu.memory_space<vmem>>, vector<1x8x32xf32>
    %391 = vector.shape_cast %390 : vector<1x8x32xf32> to vector<8x32xf32>
    %392 = vector.shape_cast %389 : vector<8x32xf32> to vector<1x8x32xf32>
    tpu.vector_store %arg17[%c14_146, %c0_147, %c0_148], %392 {strides = array<i32>} : memref<16x8x32xf32, #tpu.memory_space<vmem>>, vector<1x8x32xf32>,
    %c15 = arith.constant 15 : index
    %c0_149 = arith.constant 0 : index
    %c0_150 = arith.constant 0 : index
    %393 = vector.load %arg18[%c15, %c0_149, %c0_150] : memref<16x8x128xf32, #tpu.memory_space<vmem>>, vector<1x8x128xf32>
    %394 = vector.shape_cast %393 : vector<1x8x128xf32> to vector<8x128xf32>
    %cst_151 = arith.constant dense<0.000000e+00> : vector<8x128xf32>
    %395 = tpu.matmul %389, %15, %cst_151 {dimension_numbers = #tpu.dot_dimension_numbers<[1], [0], [0], [1], [0, 0, 1, 1], [], []>} : vector<8x32xf32>, vector<32x128xf32>, vector<8x128xf32> -> vector<8x128xf32>
    %396 = arith.addf %394, %395 : vector<8x128xf32>
    %397 = math.tanh %396 : vector<8x128xf32>
    %cst_152 = arith.constant 0.000000e+00 : f32
    %398 = vector.broadcast %cst_152 : f32 to vector<8x128xf32>
    %399 = arith.subf %398, %396 : vector<8x128xf32>
    %400 = math.exp %399 : vector<8x128xf32>
    %cst_153 = arith.constant 1.000000e+00 : f32
    %401 = vector.broadcast %cst_153 : f32 to vector<8x128xf32>
    %402 = arith.addf %401, %400 : vector<8x128xf32>
    %cst_154 = arith.constant 1.000000e+00 : f32
    %403 = vector.broadcast %cst_154 : f32 to vector<8x128xf32>
    %404 = arith.divf %403, %402 : vector<8x128xf32>
    %405 = arith.select %5, %397, %404 : vector<8x128xi1>, vector<8x128xf32>
    %406 = vector.extract_strided_slice %405 {offsets = [0, 0], sizes = [8, 32], strides = [1, 1]} : vector<8x128xf32> to vector<8x32xf32>
    %407 = vector.extract_strided_slice %405 {offsets = [0, 32], sizes = [8, 32], strides = [1, 1]} : vector<8x128xf32> to vector<8x32xf32>
    %408 = vector.extract_strided_slice %405 {offsets = [0, 64], sizes = [8, 32], strides = [1, 1]} : vector<8x128xf32> to vector<8x32xf32>
    %409 = vector.extract_strided_slice %405 {offsets = [0, 96], sizes = [8, 32], strides = [1, 1]} : vector<8x128xf32> to vector<8x32xf32>
    %410 = arith.mulf %407, %387 : vector<8x32xf32>
    %411 = arith.mulf %406, %408 : vector<8x32xf32>
    %412 = arith.addf %410, %411 : vector<8x32xf32>
    %413 = math.tanh %412 : vector<8x32xf32>
    %414 = arith.mulf %409, %413 : vector<8x32xf32>
    %c15_155 = arith.constant 15 : index
    %c0_156 = arith.constant 0 : index
    %c0_157 = arith.constant 0 : index
    %415 = vector.load %arg17[%c15_155, %c0_156, %c0_157] : memref<16x8x32xf32, #tpu.memory_space<vmem>>, vector<1x8x32xf32>
    %416 = vector.shape_cast %415 : vector<1x8x32xf32> to vector<8x32xf32>
    %417 = vector.shape_cast %414 : vector<8x32xf32> to vector<1x8x32xf32>
    tpu.vector_store %arg17[%c15_155, %c0_156, %c0_157], %417 {strides = array<i32>} : memref<16x8x32xf32, #tpu.memory_space<vmem>>, vector<1x8x32xf32>,
    %c0_158 = arith.constant 0 : index
    %c0_159 = arith.constant 0 : index
    %c0_160 = arith.constant 0 : index
    %418 = vector.load %arg17[%c0_158, %c0_159, %c0_160] : memref<16x8x32xf32, #tpu.memory_space<vmem>>, vector<16x8x32xf32>
    %419 = vector.shape_cast %418 : vector<16x8x32xf32> to vector<128x32xf32>
    %c0_161 = arith.constant 0 : index
    %c0_162 = arith.constant 0 : index
    %420 = vector.load %arg5[%c0_161, %c0_162] : memref<32x128xf32, #tpu.memory_space<vmem>>, vector<32x128xf32>
    %cst_163 = arith.constant dense<0.000000e+00> : vector<128x128xf32>
    %421 = tpu.matmul %419, %420, %cst_163 {dimension_numbers = #tpu.dot_dimension_numbers<[1], [0], [0], [1], [0, 0, 1, 1], [], []>} : vector<128x32xf32>, vector<32x128xf32>, vector<128x128xf32> -> vector<128x128xf32>
    %c0_164 = arith.constant 0 : index
    %c0_165 = arith.constant 0 : index
    %422 = vector.load %arg7[%c0_164, %c0_165] : memref<1x128xf32, #tpu.memory_space<vmem>>, vector<1x128xf32>
    %423 = vector.broadcast %422 : vector<1x128xf32> to vector<128x128xf32>
    %424 = arith.addf %421, %423 : vector<128x128xf32>
    %425 = vector.shape_cast %424 : vector<128x128xf32> to vector<16x8x128xf32>
    %c0_166 = arith.constant 0 : index
    %c0_167 = arith.constant 0 : index
    %c0_168 = arith.constant 0 : index
    %426 = vector.load %arg18[%c0_166, %c0_167, %c0_168] : memref<16x8x128xf32, #tpu.memory_space<vmem>>, vector<16x8x128xf32>
    tpu.vector_store %arg18[%c0_166, %c0_167, %c0_168], %425 {strides = array<i32>} : memref<16x8x128xf32, #tpu.memory_space<vmem>>, vector<16x8x128xf32>,
    %c0_169 = arith.constant 0 : index
    %c0_170 = arith.constant 0 : index
    %427 = vector.load %arg6[%c0_169, %c0_170] : memref<32x128xf32, #tpu.memory_space<vmem>>, vector<32x128xf32>
    %cst_171 = arith.constant 0.000000e+00 : f32
    %428 = vector.broadcast %cst_171 : f32 to vector<8x32xf32>
    %cst_172 = arith.constant 0.000000e+00 : f32
    %429 = vector.broadcast %cst_172 : f32 to vector<8x32xf32>
    %c0_173 = arith.constant 0 : index
    %c0_174 = arith.constant 0 : index
    %c0_175 = arith.constant 0 : index
    %430 = vector.load %arg18[%c0_173, %c0_174, %c0_175] : memref<16x8x128xf32, #tpu.memory_space<vmem>>, vector<1x8x128xf32>
    %431 = vector.shape_cast %430 : vector<1x8x128xf32> to vector<8x128xf32>
    %cst_176 = arith.constant dense<0.000000e+00> : vector<8x128xf32>
    %432 = tpu.matmul %428, %427, %cst_176 {dimension_numbers = #tpu.dot_dimension_numbers<[1], [0], [0], [1], [0, 0, 1, 1], [], []>} : vector<8x32xf32>, vector<32x128xf32>, vector<8x128xf32> -> vector<8x128xf32>
    %433 = arith.addf %431, %432 : vector<8x128xf32>
    %434 = math.tanh %433 : vector<8x128xf32>
    %cst_177 = arith.constant 0.000000e+00 : f32
    %435 = vector.broadcast %cst_177 : f32 to vector<8x128xf32>
    %436 = arith.subf %435, %433 : vector<8x128xf32>
    %437 = math.exp %436 : vector<8x128xf32>
    %cst_178 = arith.constant 1.000000e+00 : f32
    %438 = vector.broadcast %cst_178 : f32 to vector<8x128xf32>
    %439 = arith.addf %438, %437 : vector<8x128xf32>
    %cst_179 = arith.constant 1.000000e+00 : f32
    %440 = vector.broadcast %cst_179 : f32 to vector<8x128xf32>
    %441 = arith.divf %440, %439 : vector<8x128xf32>
    %442 = arith.select %5, %434, %441 : vector<8x128xi1>, vector<8x128xf32>
    %443 = vector.extract_strided_slice %442 {offsets = [0, 0], sizes = [8, 32], strides = [1, 1]} : vector<8x128xf32> to vector<8x32xf32>
    %444 = vector.extract_strided_slice %442 {offsets = [0, 32], sizes = [8, 32], strides = [1, 1]} : vector<8x128xf32> to vector<8x32xf32>
    %445 = vector.extract_strided_slice %442 {offsets = [0, 64], sizes = [8, 32], strides = [1, 1]} : vector<8x128xf32> to vector<8x32xf32>
    %446 = vector.extract_strided_slice %442 {offsets = [0, 96], sizes = [8, 32], strides = [1, 1]} : vector<8x128xf32> to vector<8x32xf32>
    %447 = arith.mulf %444, %429 : vector<8x32xf32>
    %448 = arith.mulf %443, %445 : vector<8x32xf32>
    %449 = arith.addf %447, %448 : vector<8x32xf32>
    %450 = math.tanh %449 : vector<8x32xf32>
    %451 = arith.mulf %446, %450 : vector<8x32xf32>
    %c0_180 = arith.constant 0 : index
    %c0_181 = arith.constant 0 : index
    %c0_182 = arith.constant 0 : index
    %452 = vector.load %arg17[%c0_180, %c0_181, %c0_182] : memref<16x8x32xf32, #tpu.memory_space<vmem>>, vector<1x8x32xf32>
    %453 = vector.shape_cast %452 : vector<1x8x32xf32> to vector<8x32xf32>
    %454 = vector.shape_cast %451 : vector<8x32xf32> to vector<1x8x32xf32>
    tpu.vector_store %arg17[%c0_180, %c0_181, %c0_182], %454 {strides = array<i32>} : memref<16x8x32xf32, #tpu.memory_space<vmem>>, vector<1x8x32xf32>,
    %c1_183 = arith.constant 1 : index
    %c0_184 = arith.constant 0 : index
    %c0_185 = arith.constant 0 : index
    %455 = vector.load %arg18[%c1_183, %c0_184, %c0_185] : memref<16x8x128xf32, #tpu.memory_space<vmem>>, vector<1x8x128xf32>
    %456 = vector.shape_cast %455 : vector<1x8x128xf32> to vector<8x128xf32>
    %cst_186 = arith.constant dense<0.000000e+00> : vector<8x128xf32>
    %457 = tpu.matmul %451, %427, %cst_186 {dimension_numbers = #tpu.dot_dimension_numbers<[1], [0], [0], [1], [0, 0, 1, 1], [], []>} : vector<8x32xf32>, vector<32x128xf32>, vector<8x128xf32> -> vector<8x128xf32>
    %458 = arith.addf %456, %457 : vector<8x128xf32>
    %459 = math.tanh %458 : vector<8x128xf32>
    %cst_187 = arith.constant 0.000000e+00 : f32
    %460 = vector.broadcast %cst_187 : f32 to vector<8x128xf32>
    %461 = arith.subf %460, %458 : vector<8x128xf32>
    %462 = math.exp %461 : vector<8x128xf32>
    %cst_188 = arith.constant 1.000000e+00 : f32
    %463 = vector.broadcast %cst_188 : f32 to vector<8x128xf32>
    %464 = arith.addf %463, %462 : vector<8x128xf32>
    %cst_189 = arith.constant 1.000000e+00 : f32
    %465 = vector.broadcast %cst_189 : f32 to vector<8x128xf32>
    %466 = arith.divf %465, %464 : vector<8x128xf32>
    %467 = arith.select %5, %459, %466 : vector<8x128xi1>, vector<8x128xf32>
    %468 = vector.extract_strided_slice %467 {offsets = [0, 0], sizes = [8, 32], strides = [1, 1]} : vector<8x128xf32> to vector<8x32xf32>
    %469 = vector.extract_strided_slice %467 {offsets = [0, 32], sizes = [8, 32], strides = [1, 1]} : vector<8x128xf32> to vector<8x32xf32>
    %470 = vector.extract_strided_slice %467 {offsets = [0, 64], sizes = [8, 32], strides = [1, 1]} : vector<8x128xf32> to vector<8x32xf32>
    %471 = vector.extract_strided_slice %467 {offsets = [0, 96], sizes = [8, 32], strides = [1, 1]} : vector<8x128xf32> to vector<8x32xf32>
    %472 = arith.mulf %469, %449 : vector<8x32xf32>
    %473 = arith.mulf %468, %470 : vector<8x32xf32>
    %474 = arith.addf %472, %473 : vector<8x32xf32>
    %475 = math.tanh %474 : vector<8x32xf32>
    %476 = arith.mulf %471, %475 : vector<8x32xf32>
    %c1_190 = arith.constant 1 : index
    %c0_191 = arith.constant 0 : index
    %c0_192 = arith.constant 0 : index
    %477 = vector.load %arg17[%c1_190, %c0_191, %c0_192] : memref<16x8x32xf32, #tpu.memory_space<vmem>>, vector<1x8x32xf32>
    %478 = vector.shape_cast %477 : vector<1x8x32xf32> to vector<8x32xf32>
    %479 = vector.shape_cast %476 : vector<8x32xf32> to vector<1x8x32xf32>
    tpu.vector_store %arg17[%c1_190, %c0_191, %c0_192], %479 {strides = array<i32>} : memref<16x8x32xf32, #tpu.memory_space<vmem>>, vector<1x8x32xf32>,
    %c2_193 = arith.constant 2 : index
    %c0_194 = arith.constant 0 : index
    %c0_195 = arith.constant 0 : index
    %480 = vector.load %arg18[%c2_193, %c0_194, %c0_195] : memref<16x8x128xf32, #tpu.memory_space<vmem>>, vector<1x8x128xf32>
    %481 = vector.shape_cast %480 : vector<1x8x128xf32> to vector<8x128xf32>
    %cst_196 = arith.constant dense<0.000000e+00> : vector<8x128xf32>
    %482 = tpu.matmul %476, %427, %cst_196 {dimension_numbers = #tpu.dot_dimension_numbers<[1], [0], [0], [1], [0, 0, 1, 1], [], []>} : vector<8x32xf32>, vector<32x128xf32>, vector<8x128xf32> -> vector<8x128xf32>
    %483 = arith.addf %481, %482 : vector<8x128xf32>
    %484 = math.tanh %483 : vector<8x128xf32>
    %cst_197 = arith.constant 0.000000e+00 : f32
    %485 = vector.broadcast %cst_197 : f32 to vector<8x128xf32>
    %486 = arith.subf %485, %483 : vector<8x128xf32>
    %487 = math.exp %486 : vector<8x128xf32>
    %cst_198 = arith.constant 1.000000e+00 : f32
    %488 = vector.broadcast %cst_198 : f32 to vector<8x128xf32>
    %489 = arith.addf %488, %487 : vector<8x128xf32>
    %cst_199 = arith.constant 1.000000e+00 : f32
    %490 = vector.broadcast %cst_199 : f32 to vector<8x128xf32>
    %491 = arith.divf %490, %489 : vector<8x128xf32>
    %492 = arith.select %5, %484, %491 : vector<8x128xi1>, vector<8x128xf32>
    %493 = vector.extract_strided_slice %492 {offsets = [0, 0], sizes = [8, 32], strides = [1, 1]} : vector<8x128xf32> to vector<8x32xf32>
    %494 = vector.extract_strided_slice %492 {offsets = [0, 32], sizes = [8, 32], strides = [1, 1]} : vector<8x128xf32> to vector<8x32xf32>
    %495 = vector.extract_strided_slice %492 {offsets = [0, 64], sizes = [8, 32], strides = [1, 1]} : vector<8x128xf32> to vector<8x32xf32>
    %496 = vector.extract_strided_slice %492 {offsets = [0, 96], sizes = [8, 32], strides = [1, 1]} : vector<8x128xf32> to vector<8x32xf32>
    %497 = arith.mulf %494, %474 : vector<8x32xf32>
    %498 = arith.mulf %493, %495 : vector<8x32xf32>
    %499 = arith.addf %497, %498 : vector<8x32xf32>
    %500 = math.tanh %499 : vector<8x32xf32>
    %501 = arith.mulf %496, %500 : vector<8x32xf32>
    %c2_200 = arith.constant 2 : index
    %c0_201 = arith.constant 0 : index
    %c0_202 = arith.constant 0 : index
    %502 = vector.load %arg17[%c2_200, %c0_201, %c0_202] : memref<16x8x32xf32, #tpu.memory_space<vmem>>, vector<1x8x32xf32>
    %503 = vector.shape_cast %502 : vector<1x8x32xf32> to vector<8x32xf32>
    %504 = vector.shape_cast %501 : vector<8x32xf32> to vector<1x8x32xf32>
    tpu.vector_store %arg17[%c2_200, %c0_201, %c0_202], %504 {strides = array<i32>} : memref<16x8x32xf32, #tpu.memory_space<vmem>>, vector<1x8x32xf32>,
    %c3_203 = arith.constant 3 : index
    %c0_204 = arith.constant 0 : index
    %c0_205 = arith.constant 0 : index
    %505 = vector.load %arg18[%c3_203, %c0_204, %c0_205] : memref<16x8x128xf32, #tpu.memory_space<vmem>>, vector<1x8x128xf32>
    %506 = vector.shape_cast %505 : vector<1x8x128xf32> to vector<8x128xf32>
    %cst_206 = arith.constant dense<0.000000e+00> : vector<8x128xf32>
    %507 = tpu.matmul %501, %427, %cst_206 {dimension_numbers = #tpu.dot_dimension_numbers<[1], [0], [0], [1], [0, 0, 1, 1], [], []>} : vector<8x32xf32>, vector<32x128xf32>, vector<8x128xf32> -> vector<8x128xf32>
    %508 = arith.addf %506, %507 : vector<8x128xf32>
    %509 = math.tanh %508 : vector<8x128xf32>
    %cst_207 = arith.constant 0.000000e+00 : f32
    %510 = vector.broadcast %cst_207 : f32 to vector<8x128xf32>
    %511 = arith.subf %510, %508 : vector<8x128xf32>
    %512 = math.exp %511 : vector<8x128xf32>
    %cst_208 = arith.constant 1.000000e+00 : f32
    %513 = vector.broadcast %cst_208 : f32 to vector<8x128xf32>
    %514 = arith.addf %513, %512 : vector<8x128xf32>
    %cst_209 = arith.constant 1.000000e+00 : f32
    %515 = vector.broadcast %cst_209 : f32 to vector<8x128xf32>
    %516 = arith.divf %515, %514 : vector<8x128xf32>
    %517 = arith.select %5, %509, %516 : vector<8x128xi1>, vector<8x128xf32>
    %518 = vector.extract_strided_slice %517 {offsets = [0, 0], sizes = [8, 32], strides = [1, 1]} : vector<8x128xf32> to vector<8x32xf32>
    %519 = vector.extract_strided_slice %517 {offsets = [0, 32], sizes = [8, 32], strides = [1, 1]} : vector<8x128xf32> to vector<8x32xf32>
    %520 = vector.extract_strided_slice %517 {offsets = [0, 64], sizes = [8, 32], strides = [1, 1]} : vector<8x128xf32> to vector<8x32xf32>
    %521 = vector.extract_strided_slice %517 {offsets = [0, 96], sizes = [8, 32], strides = [1, 1]} : vector<8x128xf32> to vector<8x32xf32>
    %522 = arith.mulf %519, %499 : vector<8x32xf32>
    %523 = arith.mulf %518, %520 : vector<8x32xf32>
    %524 = arith.addf %522, %523 : vector<8x32xf32>
    %525 = math.tanh %524 : vector<8x32xf32>
    %526 = arith.mulf %521, %525 : vector<8x32xf32>
    %c3_210 = arith.constant 3 : index
    %c0_211 = arith.constant 0 : index
    %c0_212 = arith.constant 0 : index
    %527 = vector.load %arg17[%c3_210, %c0_211, %c0_212] : memref<16x8x32xf32, #tpu.memory_space<vmem>>, vector<1x8x32xf32>
    %528 = vector.shape_cast %527 : vector<1x8x32xf32> to vector<8x32xf32>
    %529 = vector.shape_cast %526 : vector<8x32xf32> to vector<1x8x32xf32>
    tpu.vector_store %arg17[%c3_210, %c0_211, %c0_212], %529 {strides = array<i32>} : memref<16x8x32xf32, #tpu.memory_space<vmem>>, vector<1x8x32xf32>,
    %c4_213 = arith.constant 4 : index
    %c0_214 = arith.constant 0 : index
    %c0_215 = arith.constant 0 : index
    %530 = vector.load %arg18[%c4_213, %c0_214, %c0_215] : memref<16x8x128xf32, #tpu.memory_space<vmem>>, vector<1x8x128xf32>
    %531 = vector.shape_cast %530 : vector<1x8x128xf32> to vector<8x128xf32>
    %cst_216 = arith.constant dense<0.000000e+00> : vector<8x128xf32>
    %532 = tpu.matmul %526, %427, %cst_216 {dimension_numbers = #tpu.dot_dimension_numbers<[1], [0], [0], [1], [0, 0, 1, 1], [], []>} : vector<8x32xf32>, vector<32x128xf32>, vector<8x128xf32> -> vector<8x128xf32>
    %533 = arith.addf %531, %532 : vector<8x128xf32>
    %534 = math.tanh %533 : vector<8x128xf32>
    %cst_217 = arith.constant 0.000000e+00 : f32
    %535 = vector.broadcast %cst_217 : f32 to vector<8x128xf32>
    %536 = arith.subf %535, %533 : vector<8x128xf32>
    %537 = math.exp %536 : vector<8x128xf32>
    %cst_218 = arith.constant 1.000000e+00 : f32
    %538 = vector.broadcast %cst_218 : f32 to vector<8x128xf32>
    %539 = arith.addf %538, %537 : vector<8x128xf32>
    %cst_219 = arith.constant 1.000000e+00 : f32
    %540 = vector.broadcast %cst_219 : f32 to vector<8x128xf32>
    %541 = arith.divf %540, %539 : vector<8x128xf32>
    %542 = arith.select %5, %534, %541 : vector<8x128xi1>, vector<8x128xf32>
    %543 = vector.extract_strided_slice %542 {offsets = [0, 0], sizes = [8, 32], strides = [1, 1]} : vector<8x128xf32> to vector<8x32xf32>
    %544 = vector.extract_strided_slice %542 {offsets = [0, 32], sizes = [8, 32], strides = [1, 1]} : vector<8x128xf32> to vector<8x32xf32>
    %545 = vector.extract_strided_slice %542 {offsets = [0, 64], sizes = [8, 32], strides = [1, 1]} : vector<8x128xf32> to vector<8x32xf32>
    %546 = vector.extract_strided_slice %542 {offsets = [0, 96], sizes = [8, 32], strides = [1, 1]} : vector<8x128xf32> to vector<8x32xf32>
    %547 = arith.mulf %544, %524 : vector<8x32xf32>
    %548 = arith.mulf %543, %545 : vector<8x32xf32>
    %549 = arith.addf %547, %548 : vector<8x32xf32>
    %550 = math.tanh %549 : vector<8x32xf32>
    %551 = arith.mulf %546, %550 : vector<8x32xf32>
    %c4_220 = arith.constant 4 : index
    %c0_221 = arith.constant 0 : index
    %c0_222 = arith.constant 0 : index
    %552 = vector.load %arg17[%c4_220, %c0_221, %c0_222] : memref<16x8x32xf32, #tpu.memory_space<vmem>>, vector<1x8x32xf32>
    %553 = vector.shape_cast %552 : vector<1x8x32xf32> to vector<8x32xf32>
    %554 = vector.shape_cast %551 : vector<8x32xf32> to vector<1x8x32xf32>
    tpu.vector_store %arg17[%c4_220, %c0_221, %c0_222], %554 {strides = array<i32>} : memref<16x8x32xf32, #tpu.memory_space<vmem>>, vector<1x8x32xf32>,
    %c5_223 = arith.constant 5 : index
    %c0_224 = arith.constant 0 : index
    %c0_225 = arith.constant 0 : index
    %555 = vector.load %arg18[%c5_223, %c0_224, %c0_225] : memref<16x8x128xf32, #tpu.memory_space<vmem>>, vector<1x8x128xf32>
    %556 = vector.shape_cast %555 : vector<1x8x128xf32> to vector<8x128xf32>
    %cst_226 = arith.constant dense<0.000000e+00> : vector<8x128xf32>
    %557 = tpu.matmul %551, %427, %cst_226 {dimension_numbers = #tpu.dot_dimension_numbers<[1], [0], [0], [1], [0, 0, 1, 1], [], []>} : vector<8x32xf32>, vector<32x128xf32>, vector<8x128xf32> -> vector<8x128xf32>
    %558 = arith.addf %556, %557 : vector<8x128xf32>
    %559 = math.tanh %558 : vector<8x128xf32>
    %cst_227 = arith.constant 0.000000e+00 : f32
    %560 = vector.broadcast %cst_227 : f32 to vector<8x128xf32>
    %561 = arith.subf %560, %558 : vector<8x128xf32>
    %562 = math.exp %561 : vector<8x128xf32>
    %cst_228 = arith.constant 1.000000e+00 : f32
    %563 = vector.broadcast %cst_228 : f32 to vector<8x128xf32>
    %564 = arith.addf %563, %562 : vector<8x128xf32>
    %cst_229 = arith.constant 1.000000e+00 : f32
    %565 = vector.broadcast %cst_229 : f32 to vector<8x128xf32>
    %566 = arith.divf %565, %564 : vector<8x128xf32>
    %567 = arith.select %5, %559, %566 : vector<8x128xi1>, vector<8x128xf32>
    %568 = vector.extract_strided_slice %567 {offsets = [0, 0], sizes = [8, 32], strides = [1, 1]} : vector<8x128xf32> to vector<8x32xf32>
    %569 = vector.extract_strided_slice %567 {offsets = [0, 32], sizes = [8, 32], strides = [1, 1]} : vector<8x128xf32> to vector<8x32xf32>
    %570 = vector.extract_strided_slice %567 {offsets = [0, 64], sizes = [8, 32], strides = [1, 1]} : vector<8x128xf32> to vector<8x32xf32>
    %571 = vector.extract_strided_slice %567 {offsets = [0, 96], sizes = [8, 32], strides = [1, 1]} : vector<8x128xf32> to vector<8x32xf32>
    %572 = arith.mulf %569, %549 : vector<8x32xf32>
    %573 = arith.mulf %568, %570 : vector<8x32xf32>
    %574 = arith.addf %572, %573 : vector<8x32xf32>
    %575 = math.tanh %574 : vector<8x32xf32>
    %576 = arith.mulf %571, %575 : vector<8x32xf32>
    %c5_230 = arith.constant 5 : index
    %c0_231 = arith.constant 0 : index
    %c0_232 = arith.constant 0 : index
    %577 = vector.load %arg17[%c5_230, %c0_231, %c0_232] : memref<16x8x32xf32, #tpu.memory_space<vmem>>, vector<1x8x32xf32>
    %578 = vector.shape_cast %577 : vector<1x8x32xf32> to vector<8x32xf32>
    %579 = vector.shape_cast %576 : vector<8x32xf32> to vector<1x8x32xf32>
    tpu.vector_store %arg17[%c5_230, %c0_231, %c0_232], %579 {strides = array<i32>} : memref<16x8x32xf32, #tpu.memory_space<vmem>>, vector<1x8x32xf32>,
    %c6_233 = arith.constant 6 : index
    %c0_234 = arith.constant 0 : index
    %c0_235 = arith.constant 0 : index
    %580 = vector.load %arg18[%c6_233, %c0_234, %c0_235] : memref<16x8x128xf32, #tpu.memory_space<vmem>>, vector<1x8x128xf32>
    %581 = vector.shape_cast %580 : vector<1x8x128xf32> to vector<8x128xf32>
    %cst_236 = arith.constant dense<0.000000e+00> : vector<8x128xf32>
    %582 = tpu.matmul %576, %427, %cst_236 {dimension_numbers = #tpu.dot_dimension_numbers<[1], [0], [0], [1], [0, 0, 1, 1], [], []>} : vector<8x32xf32>, vector<32x128xf32>, vector<8x128xf32> -> vector<8x128xf32>
    %583 = arith.addf %581, %582 : vector<8x128xf32>
    %584 = math.tanh %583 : vector<8x128xf32>
    %cst_237 = arith.constant 0.000000e+00 : f32
    %585 = vector.broadcast %cst_237 : f32 to vector<8x128xf32>
    %586 = arith.subf %585, %583 : vector<8x128xf32>
    %587 = math.exp %586 : vector<8x128xf32>
    %cst_238 = arith.constant 1.000000e+00 : f32
    %588 = vector.broadcast %cst_238 : f32 to vector<8x128xf32>
    %589 = arith.addf %588, %587 : vector<8x128xf32>
    %cst_239 = arith.constant 1.000000e+00 : f32
    %590 = vector.broadcast %cst_239 : f32 to vector<8x128xf32>
    %591 = arith.divf %590, %589 : vector<8x128xf32>
    %592 = arith.select %5, %584, %591 : vector<8x128xi1>, vector<8x128xf32>
    %593 = vector.extract_strided_slice %592 {offsets = [0, 0], sizes = [8, 32], strides = [1, 1]} : vector<8x128xf32> to vector<8x32xf32>
    %594 = vector.extract_strided_slice %592 {offsets = [0, 32], sizes = [8, 32], strides = [1, 1]} : vector<8x128xf32> to vector<8x32xf32>
    %595 = vector.extract_strided_slice %592 {offsets = [0, 64], sizes = [8, 32], strides = [1, 1]} : vector<8x128xf32> to vector<8x32xf32>
    %596 = vector.extract_strided_slice %592 {offsets = [0, 96], sizes = [8, 32], strides = [1, 1]} : vector<8x128xf32> to vector<8x32xf32>
    %597 = arith.mulf %594, %574 : vector<8x32xf32>
    %598 = arith.mulf %593, %595 : vector<8x32xf32>
    %599 = arith.addf %597, %598 : vector<8x32xf32>
    %600 = math.tanh %599 : vector<8x32xf32>
    %601 = arith.mulf %596, %600 : vector<8x32xf32>
    %c6_240 = arith.constant 6 : index
    %c0_241 = arith.constant 0 : index
    %c0_242 = arith.constant 0 : index
    %602 = vector.load %arg17[%c6_240, %c0_241, %c0_242] : memref<16x8x32xf32, #tpu.memory_space<vmem>>, vector<1x8x32xf32>
    %603 = vector.shape_cast %602 : vector<1x8x32xf32> to vector<8x32xf32>
    %604 = vector.shape_cast %601 : vector<8x32xf32> to vector<1x8x32xf32>
    tpu.vector_store %arg17[%c6_240, %c0_241, %c0_242], %604 {strides = array<i32>} : memref<16x8x32xf32, #tpu.memory_space<vmem>>, vector<1x8x32xf32>,
    %c7_243 = arith.constant 7 : index
    %c0_244 = arith.constant 0 : index
    %c0_245 = arith.constant 0 : index
    %605 = vector.load %arg18[%c7_243, %c0_244, %c0_245] : memref<16x8x128xf32, #tpu.memory_space<vmem>>, vector<1x8x128xf32>
    %606 = vector.shape_cast %605 : vector<1x8x128xf32> to vector<8x128xf32>
    %cst_246 = arith.constant dense<0.000000e+00> : vector<8x128xf32>
    %607 = tpu.matmul %601, %427, %cst_246 {dimension_numbers = #tpu.dot_dimension_numbers<[1], [0], [0], [1], [0, 0, 1, 1], [], []>} : vector<8x32xf32>, vector<32x128xf32>, vector<8x128xf32> -> vector<8x128xf32>
    %608 = arith.addf %606, %607 : vector<8x128xf32>
    %609 = math.tanh %608 : vector<8x128xf32>
    %cst_247 = arith.constant 0.000000e+00 : f32
    %610 = vector.broadcast %cst_247 : f32 to vector<8x128xf32>
    %611 = arith.subf %610, %608 : vector<8x128xf32>
    %612 = math.exp %611 : vector<8x128xf32>
    %cst_248 = arith.constant 1.000000e+00 : f32
    %613 = vector.broadcast %cst_248 : f32 to vector<8x128xf32>
    %614 = arith.addf %613, %612 : vector<8x128xf32>
    %cst_249 = arith.constant 1.000000e+00 : f32
    %615 = vector.broadcast %cst_249 : f32 to vector<8x128xf32>
    %616 = arith.divf %615, %614 : vector<8x128xf32>
    %617 = arith.select %5, %609, %616 : vector<8x128xi1>, vector<8x128xf32>
    %618 = vector.extract_strided_slice %617 {offsets = [0, 0], sizes = [8, 32], strides = [1, 1]} : vector<8x128xf32> to vector<8x32xf32>
    %619 = vector.extract_strided_slice %617 {offsets = [0, 32], sizes = [8, 32], strides = [1, 1]} : vector<8x128xf32> to vector<8x32xf32>
    %620 = vector.extract_strided_slice %617 {offsets = [0, 64], sizes = [8, 32], strides = [1, 1]} : vector<8x128xf32> to vector<8x32xf32>
    %621 = vector.extract_strided_slice %617 {offsets = [0, 96], sizes = [8, 32], strides = [1, 1]} : vector<8x128xf32> to vector<8x32xf32>
    %622 = arith.mulf %619, %599 : vector<8x32xf32>
    %623 = arith.mulf %618, %620 : vector<8x32xf32>
    %624 = arith.addf %622, %623 : vector<8x32xf32>
    %625 = math.tanh %624 : vector<8x32xf32>
    %626 = arith.mulf %621, %625 : vector<8x32xf32>
    %c7_250 = arith.constant 7 : index
    %c0_251 = arith.constant 0 : index
    %c0_252 = arith.constant 0 : index
    %627 = vector.load %arg17[%c7_250, %c0_251, %c0_252] : memref<16x8x32xf32, #tpu.memory_space<vmem>>, vector<1x8x32xf32>
    %628 = vector.shape_cast %627 : vector<1x8x32xf32> to vector<8x32xf32>
    %629 = vector.shape_cast %626 : vector<8x32xf32> to vector<1x8x32xf32>
    tpu.vector_store %arg17[%c7_250, %c0_251, %c0_252], %629 {strides = array<i32>} : memref<16x8x32xf32, #tpu.memory_space<vmem>>, vector<1x8x32xf32>,
    %c8_253 = arith.constant 8 : index
    %c0_254 = arith.constant 0 : index
    %c0_255 = arith.constant 0 : index
    %630 = vector.load %arg18[%c8_253, %c0_254, %c0_255] : memref<16x8x128xf32, #tpu.memory_space<vmem>>, vector<1x8x128xf32>
    %631 = vector.shape_cast %630 : vector<1x8x128xf32> to vector<8x128xf32>
    %cst_256 = arith.constant dense<0.000000e+00> : vector<8x128xf32>
    %632 = tpu.matmul %626, %427, %cst_256 {dimension_numbers = #tpu.dot_dimension_numbers<[1], [0], [0], [1], [0, 0, 1, 1], [], []>} : vector<8x32xf32>, vector<32x128xf32>, vector<8x128xf32> -> vector<8x128xf32>
    %633 = arith.addf %631, %632 : vector<8x128xf32>
    %634 = math.tanh %633 : vector<8x128xf32>
    %cst_257 = arith.constant 0.000000e+00 : f32
    %635 = vector.broadcast %cst_257 : f32 to vector<8x128xf32>
    %636 = arith.subf %635, %633 : vector<8x128xf32>
    %637 = math.exp %636 : vector<8x128xf32>
    %cst_258 = arith.constant 1.000000e+00 : f32
    %638 = vector.broadcast %cst_258 : f32 to vector<8x128xf32>
    %639 = arith.addf %638, %637 : vector<8x128xf32>
    %cst_259 = arith.constant 1.000000e+00 : f32
    %640 = vector.broadcast %cst_259 : f32 to vector<8x128xf32>
    %641 = arith.divf %640, %639 : vector<8x128xf32>
    %642 = arith.select %5, %634, %641 : vector<8x128xi1>, vector<8x128xf32>
    %643 = vector.extract_strided_slice %642 {offsets = [0, 0], sizes = [8, 32], strides = [1, 1]} : vector<8x128xf32> to vector<8x32xf32>
    %644 = vector.extract_strided_slice %642 {offsets = [0, 32], sizes = [8, 32], strides = [1, 1]} : vector<8x128xf32> to vector<8x32xf32>
    %645 = vector.extract_strided_slice %642 {offsets = [0, 64], sizes = [8, 32], strides = [1, 1]} : vector<8x128xf32> to vector<8x32xf32>
    %646 = vector.extract_strided_slice %642 {offsets = [0, 96], sizes = [8, 32], strides = [1, 1]} : vector<8x128xf32> to vector<8x32xf32>
    %647 = arith.mulf %644, %624 : vector<8x32xf32>
    %648 = arith.mulf %643, %645 : vector<8x32xf32>
    %649 = arith.addf %647, %648 : vector<8x32xf32>
    %650 = math.tanh %649 : vector<8x32xf32>
    %651 = arith.mulf %646, %650 : vector<8x32xf32>
    %c8_260 = arith.constant 8 : index
    %c0_261 = arith.constant 0 : index
    %c0_262 = arith.constant 0 : index
    %652 = vector.load %arg17[%c8_260, %c0_261, %c0_262] : memref<16x8x32xf32, #tpu.memory_space<vmem>>, vector<1x8x32xf32>
    %653 = vector.shape_cast %652 : vector<1x8x32xf32> to vector<8x32xf32>
    %654 = vector.shape_cast %651 : vector<8x32xf32> to vector<1x8x32xf32>
    tpu.vector_store %arg17[%c8_260, %c0_261, %c0_262], %654 {strides = array<i32>} : memref<16x8x32xf32, #tpu.memory_space<vmem>>, vector<1x8x32xf32>,
    %c9_263 = arith.constant 9 : index
    %c0_264 = arith.constant 0 : index
    %c0_265 = arith.constant 0 : index
    %655 = vector.load %arg18[%c9_263, %c0_264, %c0_265] : memref<16x8x128xf32, #tpu.memory_space<vmem>>, vector<1x8x128xf32>
    %656 = vector.shape_cast %655 : vector<1x8x128xf32> to vector<8x128xf32>
    %cst_266 = arith.constant dense<0.000000e+00> : vector<8x128xf32>
    %657 = tpu.matmul %651, %427, %cst_266 {dimension_numbers = #tpu.dot_dimension_numbers<[1], [0], [0], [1], [0, 0, 1, 1], [], []>} : vector<8x32xf32>, vector<32x128xf32>, vector<8x128xf32> -> vector<8x128xf32>
    %658 = arith.addf %656, %657 : vector<8x128xf32>
    %659 = math.tanh %658 : vector<8x128xf32>
    %cst_267 = arith.constant 0.000000e+00 : f32
    %660 = vector.broadcast %cst_267 : f32 to vector<8x128xf32>
    %661 = arith.subf %660, %658 : vector<8x128xf32>
    %662 = math.exp %661 : vector<8x128xf32>
    %cst_268 = arith.constant 1.000000e+00 : f32
    %663 = vector.broadcast %cst_268 : f32 to vector<8x128xf32>
    %664 = arith.addf %663, %662 : vector<8x128xf32>
    %cst_269 = arith.constant 1.000000e+00 : f32
    %665 = vector.broadcast %cst_269 : f32 to vector<8x128xf32>
    %666 = arith.divf %665, %664 : vector<8x128xf32>
    %667 = arith.select %5, %659, %666 : vector<8x128xi1>, vector<8x128xf32>
    %668 = vector.extract_strided_slice %667 {offsets = [0, 0], sizes = [8, 32], strides = [1, 1]} : vector<8x128xf32> to vector<8x32xf32>
    %669 = vector.extract_strided_slice %667 {offsets = [0, 32], sizes = [8, 32], strides = [1, 1]} : vector<8x128xf32> to vector<8x32xf32>
    %670 = vector.extract_strided_slice %667 {offsets = [0, 64], sizes = [8, 32], strides = [1, 1]} : vector<8x128xf32> to vector<8x32xf32>
    %671 = vector.extract_strided_slice %667 {offsets = [0, 96], sizes = [8, 32], strides = [1, 1]} : vector<8x128xf32> to vector<8x32xf32>
    %672 = arith.mulf %669, %649 : vector<8x32xf32>
    %673 = arith.mulf %668, %670 : vector<8x32xf32>
    %674 = arith.addf %672, %673 : vector<8x32xf32>
    %675 = math.tanh %674 : vector<8x32xf32>
    %676 = arith.mulf %671, %675 : vector<8x32xf32>
    %c9_270 = arith.constant 9 : index
    %c0_271 = arith.constant 0 : index
    %c0_272 = arith.constant 0 : index
    %677 = vector.load %arg17[%c9_270, %c0_271, %c0_272] : memref<16x8x32xf32, #tpu.memory_space<vmem>>, vector<1x8x32xf32>
    %678 = vector.shape_cast %677 : vector<1x8x32xf32> to vector<8x32xf32>
    %679 = vector.shape_cast %676 : vector<8x32xf32> to vector<1x8x32xf32>
    tpu.vector_store %arg17[%c9_270, %c0_271, %c0_272], %679 {strides = array<i32>} : memref<16x8x32xf32, #tpu.memory_space<vmem>>, vector<1x8x32xf32>,
    %c10_273 = arith.constant 10 : index
    %c0_274 = arith.constant 0 : index
    %c0_275 = arith.constant 0 : index
    %680 = vector.load %arg18[%c10_273, %c0_274, %c0_275] : memref<16x8x128xf32, #tpu.memory_space<vmem>>, vector<1x8x128xf32>
    %681 = vector.shape_cast %680 : vector<1x8x128xf32> to vector<8x128xf32>
    %cst_276 = arith.constant dense<0.000000e+00> : vector<8x128xf32>
    %682 = tpu.matmul %676, %427, %cst_276 {dimension_numbers = #tpu.dot_dimension_numbers<[1], [0], [0], [1], [0, 0, 1, 1], [], []>} : vector<8x32xf32>, vector<32x128xf32>, vector<8x128xf32> -> vector<8x128xf32>
    %683 = arith.addf %681, %682 : vector<8x128xf32>
    %684 = math.tanh %683 : vector<8x128xf32>
    %cst_277 = arith.constant 0.000000e+00 : f32
    %685 = vector.broadcast %cst_277 : f32 to vector<8x128xf32>
    %686 = arith.subf %685, %683 : vector<8x128xf32>
    %687 = math.exp %686 : vector<8x128xf32>
    %cst_278 = arith.constant 1.000000e+00 : f32
    %688 = vector.broadcast %cst_278 : f32 to vector<8x128xf32>
    %689 = arith.addf %688, %687 : vector<8x128xf32>
    %cst_279 = arith.constant 1.000000e+00 : f32
    %690 = vector.broadcast %cst_279 : f32 to vector<8x128xf32>
    %691 = arith.divf %690, %689 : vector<8x128xf32>
    %692 = arith.select %5, %684, %691 : vector<8x128xi1>, vector<8x128xf32>
    %693 = vector.extract_strided_slice %692 {offsets = [0, 0], sizes = [8, 32], strides = [1, 1]} : vector<8x128xf32> to vector<8x32xf32>
    %694 = vector.extract_strided_slice %692 {offsets = [0, 32], sizes = [8, 32], strides = [1, 1]} : vector<8x128xf32> to vector<8x32xf32>
    %695 = vector.extract_strided_slice %692 {offsets = [0, 64], sizes = [8, 32], strides = [1, 1]} : vector<8x128xf32> to vector<8x32xf32>
    %696 = vector.extract_strided_slice %692 {offsets = [0, 96], sizes = [8, 32], strides = [1, 1]} : vector<8x128xf32> to vector<8x32xf32>
    %697 = arith.mulf %694, %674 : vector<8x32xf32>
    %698 = arith.mulf %693, %695 : vector<8x32xf32>
    %699 = arith.addf %697, %698 : vector<8x32xf32>
    %700 = math.tanh %699 : vector<8x32xf32>
    %701 = arith.mulf %696, %700 : vector<8x32xf32>
    %c10_280 = arith.constant 10 : index
    %c0_281 = arith.constant 0 : index
    %c0_282 = arith.constant 0 : index
    %702 = vector.load %arg17[%c10_280, %c0_281, %c0_282] : memref<16x8x32xf32, #tpu.memory_space<vmem>>, vector<1x8x32xf32>
    %703 = vector.shape_cast %702 : vector<1x8x32xf32> to vector<8x32xf32>
    %704 = vector.shape_cast %701 : vector<8x32xf32> to vector<1x8x32xf32>
    tpu.vector_store %arg17[%c10_280, %c0_281, %c0_282], %704 {strides = array<i32>} : memref<16x8x32xf32, #tpu.memory_space<vmem>>, vector<1x8x32xf32>,
    %c11_283 = arith.constant 11 : index
    %c0_284 = arith.constant 0 : index
    %c0_285 = arith.constant 0 : index
    %705 = vector.load %arg18[%c11_283, %c0_284, %c0_285] : memref<16x8x128xf32, #tpu.memory_space<vmem>>, vector<1x8x128xf32>
    %706 = vector.shape_cast %705 : vector<1x8x128xf32> to vector<8x128xf32>
    %cst_286 = arith.constant dense<0.000000e+00> : vector<8x128xf32>
    %707 = tpu.matmul %701, %427, %cst_286 {dimension_numbers = #tpu.dot_dimension_numbers<[1], [0], [0], [1], [0, 0, 1, 1], [], []>} : vector<8x32xf32>, vector<32x128xf32>, vector<8x128xf32> -> vector<8x128xf32>
    %708 = arith.addf %706, %707 : vector<8x128xf32>
    %709 = math.tanh %708 : vector<8x128xf32>
    %cst_287 = arith.constant 0.000000e+00 : f32
    %710 = vector.broadcast %cst_287 : f32 to vector<8x128xf32>
    %711 = arith.subf %710, %708 : vector<8x128xf32>
    %712 = math.exp %711 : vector<8x128xf32>
    %cst_288 = arith.constant 1.000000e+00 : f32
    %713 = vector.broadcast %cst_288 : f32 to vector<8x128xf32>
    %714 = arith.addf %713, %712 : vector<8x128xf32>
    %cst_289 = arith.constant 1.000000e+00 : f32
    %715 = vector.broadcast %cst_289 : f32 to vector<8x128xf32>
    %716 = arith.divf %715, %714 : vector<8x128xf32>
    %717 = arith.select %5, %709, %716 : vector<8x128xi1>, vector<8x128xf32>
    %718 = vector.extract_strided_slice %717 {offsets = [0, 0], sizes = [8, 32], strides = [1, 1]} : vector<8x128xf32> to vector<8x32xf32>
    %719 = vector.extract_strided_slice %717 {offsets = [0, 32], sizes = [8, 32], strides = [1, 1]} : vector<8x128xf32> to vector<8x32xf32>
    %720 = vector.extract_strided_slice %717 {offsets = [0, 64], sizes = [8, 32], strides = [1, 1]} : vector<8x128xf32> to vector<8x32xf32>
    %721 = vector.extract_strided_slice %717 {offsets = [0, 96], sizes = [8, 32], strides = [1, 1]} : vector<8x128xf32> to vector<8x32xf32>
    %722 = arith.mulf %719, %699 : vector<8x32xf32>
    %723 = arith.mulf %718, %720 : vector<8x32xf32>
    %724 = arith.addf %722, %723 : vector<8x32xf32>
    %725 = math.tanh %724 : vector<8x32xf32>
    %726 = arith.mulf %721, %725 : vector<8x32xf32>
    %c11_290 = arith.constant 11 : index
    %c0_291 = arith.constant 0 : index
    %c0_292 = arith.constant 0 : index
    %727 = vector.load %arg17[%c11_290, %c0_291, %c0_292] : memref<16x8x32xf32, #tpu.memory_space<vmem>>, vector<1x8x32xf32>
    %728 = vector.shape_cast %727 : vector<1x8x32xf32> to vector<8x32xf32>
    %729 = vector.shape_cast %726 : vector<8x32xf32> to vector<1x8x32xf32>
    tpu.vector_store %arg17[%c11_290, %c0_291, %c0_292], %729 {strides = array<i32>} : memref<16x8x32xf32, #tpu.memory_space<vmem>>, vector<1x8x32xf32>,
    %c12_293 = arith.constant 12 : index
    %c0_294 = arith.constant 0 : index
    %c0_295 = arith.constant 0 : index
    %730 = vector.load %arg18[%c12_293, %c0_294, %c0_295] : memref<16x8x128xf32, #tpu.memory_space<vmem>>, vector<1x8x128xf32>
    %731 = vector.shape_cast %730 : vector<1x8x128xf32> to vector<8x128xf32>
    %cst_296 = arith.constant dense<0.000000e+00> : vector<8x128xf32>
    %732 = tpu.matmul %726, %427, %cst_296 {dimension_numbers = #tpu.dot_dimension_numbers<[1], [0], [0], [1], [0, 0, 1, 1], [], []>} : vector<8x32xf32>, vector<32x128xf32>, vector<8x128xf32> -> vector<8x128xf32>
    %733 = arith.addf %731, %732 : vector<8x128xf32>
    %734 = math.tanh %733 : vector<8x128xf32>
    %cst_297 = arith.constant 0.000000e+00 : f32
    %735 = vector.broadcast %cst_297 : f32 to vector<8x128xf32>
    %736 = arith.subf %735, %733 : vector<8x128xf32>
    %737 = math.exp %736 : vector<8x128xf32>
    %cst_298 = arith.constant 1.000000e+00 : f32
    %738 = vector.broadcast %cst_298 : f32 to vector<8x128xf32>
    %739 = arith.addf %738, %737 : vector<8x128xf32>
    %cst_299 = arith.constant 1.000000e+00 : f32
    %740 = vector.broadcast %cst_299 : f32 to vector<8x128xf32>
    %741 = arith.divf %740, %739 : vector<8x128xf32>
    %742 = arith.select %5, %734, %741 : vector<8x128xi1>, vector<8x128xf32>
    %743 = vector.extract_strided_slice %742 {offsets = [0, 0], sizes = [8, 32], strides = [1, 1]} : vector<8x128xf32> to vector<8x32xf32>
    %744 = vector.extract_strided_slice %742 {offsets = [0, 32], sizes = [8, 32], strides = [1, 1]} : vector<8x128xf32> to vector<8x32xf32>
    %745 = vector.extract_strided_slice %742 {offsets = [0, 64], sizes = [8, 32], strides = [1, 1]} : vector<8x128xf32> to vector<8x32xf32>
    %746 = vector.extract_strided_slice %742 {offsets = [0, 96], sizes = [8, 32], strides = [1, 1]} : vector<8x128xf32> to vector<8x32xf32>
    %747 = arith.mulf %744, %724 : vector<8x32xf32>
    %748 = arith.mulf %743, %745 : vector<8x32xf32>
    %749 = arith.addf %747, %748 : vector<8x32xf32>
    %750 = math.tanh %749 : vector<8x32xf32>
    %751 = arith.mulf %746, %750 : vector<8x32xf32>
    %c12_300 = arith.constant 12 : index
    %c0_301 = arith.constant 0 : index
    %c0_302 = arith.constant 0 : index
    %752 = vector.load %arg17[%c12_300, %c0_301, %c0_302] : memref<16x8x32xf32, #tpu.memory_space<vmem>>, vector<1x8x32xf32>
    %753 = vector.shape_cast %752 : vector<1x8x32xf32> to vector<8x32xf32>
    %754 = vector.shape_cast %751 : vector<8x32xf32> to vector<1x8x32xf32>
    tpu.vector_store %arg17[%c12_300, %c0_301, %c0_302], %754 {strides = array<i32>} : memref<16x8x32xf32, #tpu.memory_space<vmem>>, vector<1x8x32xf32>,
    %c13_303 = arith.constant 13 : index
    %c0_304 = arith.constant 0 : index
    %c0_305 = arith.constant 0 : index
    %755 = vector.load %arg18[%c13_303, %c0_304, %c0_305] : memref<16x8x128xf32, #tpu.memory_space<vmem>>, vector<1x8x128xf32>
    %756 = vector.shape_cast %755 : vector<1x8x128xf32> to vector<8x128xf32>
    %cst_306 = arith.constant dense<0.000000e+00> : vector<8x128xf32>
    %757 = tpu.matmul %751, %427, %cst_306 {dimension_numbers = #tpu.dot_dimension_numbers<[1], [0], [0], [1], [0, 0, 1, 1], [], []>} : vector<8x32xf32>, vector<32x128xf32>, vector<8x128xf32> -> vector<8x128xf32>
    %758 = arith.addf %756, %757 : vector<8x128xf32>
    %759 = math.tanh %758 : vector<8x128xf32>
    %cst_307 = arith.constant 0.000000e+00 : f32
    %760 = vector.broadcast %cst_307 : f32 to vector<8x128xf32>
    %761 = arith.subf %760, %758 : vector<8x128xf32>
    %762 = math.exp %761 : vector<8x128xf32>
    %cst_308 = arith.constant 1.000000e+00 : f32
    %763 = vector.broadcast %cst_308 : f32 to vector<8x128xf32>
    %764 = arith.addf %763, %762 : vector<8x128xf32>
    %cst_309 = arith.constant 1.000000e+00 : f32
    %765 = vector.broadcast %cst_309 : f32 to vector<8x128xf32>
    %766 = arith.divf %765, %764 : vector<8x128xf32>
    %767 = arith.select %5, %759, %766 : vector<8x128xi1>, vector<8x128xf32>
    %768 = vector.extract_strided_slice %767 {offsets = [0, 0], sizes = [8, 32], strides = [1, 1]} : vector<8x128xf32> to vector<8x32xf32>
    %769 = vector.extract_strided_slice %767 {offsets = [0, 32], sizes = [8, 32], strides = [1, 1]} : vector<8x128xf32> to vector<8x32xf32>
    %770 = vector.extract_strided_slice %767 {offsets = [0, 64], sizes = [8, 32], strides = [1, 1]} : vector<8x128xf32> to vector<8x32xf32>
    %771 = vector.extract_strided_slice %767 {offsets = [0, 96], sizes = [8, 32], strides = [1, 1]} : vector<8x128xf32> to vector<8x32xf32>
    %772 = arith.mulf %769, %749 : vector<8x32xf32>
    %773 = arith.mulf %768, %770 : vector<8x32xf32>
    %774 = arith.addf %772, %773 : vector<8x32xf32>
    %775 = math.tanh %774 : vector<8x32xf32>
    %776 = arith.mulf %771, %775 : vector<8x32xf32>
    %c13_310 = arith.constant 13 : index
    %c0_311 = arith.constant 0 : index
    %c0_312 = arith.constant 0 : index
    %777 = vector.load %arg17[%c13_310, %c0_311, %c0_312] : memref<16x8x32xf32, #tpu.memory_space<vmem>>, vector<1x8x32xf32>
    %778 = vector.shape_cast %777 : vector<1x8x32xf32> to vector<8x32xf32>
    %779 = vector.shape_cast %776 : vector<8x32xf32> to vector<1x8x32xf32>
    tpu.vector_store %arg17[%c13_310, %c0_311, %c0_312], %779 {strides = array<i32>} : memref<16x8x32xf32, #tpu.memory_space<vmem>>, vector<1x8x32xf32>,
    %c14_313 = arith.constant 14 : index
    %c0_314 = arith.constant 0 : index
    %c0_315 = arith.constant 0 : index
    %780 = vector.load %arg18[%c14_313, %c0_314, %c0_315] : memref<16x8x128xf32, #tpu.memory_space<vmem>>, vector<1x8x128xf32>
    %781 = vector.shape_cast %780 : vector<1x8x128xf32> to vector<8x128xf32>
    %cst_316 = arith.constant dense<0.000000e+00> : vector<8x128xf32>
    %782 = tpu.matmul %776, %427, %cst_316 {dimension_numbers = #tpu.dot_dimension_numbers<[1], [0], [0], [1], [0, 0, 1, 1], [], []>} : vector<8x32xf32>, vector<32x128xf32>, vector<8x128xf32> -> vector<8x128xf32>
    %783 = arith.addf %781, %782 : vector<8x128xf32>
    %784 = math.tanh %783 : vector<8x128xf32>
    %cst_317 = arith.constant 0.000000e+00 : f32
    %785 = vector.broadcast %cst_317 : f32 to vector<8x128xf32>
    %786 = arith.subf %785, %783 : vector<8x128xf32>
    %787 = math.exp %786 : vector<8x128xf32>
    %cst_318 = arith.constant 1.000000e+00 : f32
    %788 = vector.broadcast %cst_318 : f32 to vector<8x128xf32>
    %789 = arith.addf %788, %787 : vector<8x128xf32>
    %cst_319 = arith.constant 1.000000e+00 : f32
    %790 = vector.broadcast %cst_319 : f32 to vector<8x128xf32>
    %791 = arith.divf %790, %789 : vector<8x128xf32>
    %792 = arith.select %5, %784, %791 : vector<8x128xi1>, vector<8x128xf32>
    %793 = vector.extract_strided_slice %792 {offsets = [0, 0], sizes = [8, 32], strides = [1, 1]} : vector<8x128xf32> to vector<8x32xf32>
    %794 = vector.extract_strided_slice %792 {offsets = [0, 32], sizes = [8, 32], strides = [1, 1]} : vector<8x128xf32> to vector<8x32xf32>
    %795 = vector.extract_strided_slice %792 {offsets = [0, 64], sizes = [8, 32], strides = [1, 1]} : vector<8x128xf32> to vector<8x32xf32>
    %796 = vector.extract_strided_slice %792 {offsets = [0, 96], sizes = [8, 32], strides = [1, 1]} : vector<8x128xf32> to vector<8x32xf32>
    %797 = arith.mulf %794, %774 : vector<8x32xf32>
    %798 = arith.mulf %793, %795 : vector<8x32xf32>
    %799 = arith.addf %797, %798 : vector<8x32xf32>
    %800 = math.tanh %799 : vector<8x32xf32>
    %801 = arith.mulf %796, %800 : vector<8x32xf32>
    %c14_320 = arith.constant 14 : index
    %c0_321 = arith.constant 0 : index
    %c0_322 = arith.constant 0 : index
    %802 = vector.load %arg17[%c14_320, %c0_321, %c0_322] : memref<16x8x32xf32, #tpu.memory_space<vmem>>, vector<1x8x32xf32>
    %803 = vector.shape_cast %802 : vector<1x8x32xf32> to vector<8x32xf32>
    %804 = vector.shape_cast %801 : vector<8x32xf32> to vector<1x8x32xf32>
    tpu.vector_store %arg17[%c14_320, %c0_321, %c0_322], %804 {strides = array<i32>} : memref<16x8x32xf32, #tpu.memory_space<vmem>>, vector<1x8x32xf32>,
    %c15_323 = arith.constant 15 : index
    %c0_324 = arith.constant 0 : index
    %c0_325 = arith.constant 0 : index
    %805 = vector.load %arg18[%c15_323, %c0_324, %c0_325] : memref<16x8x128xf32, #tpu.memory_space<vmem>>, vector<1x8x128xf32>
    %806 = vector.shape_cast %805 : vector<1x8x128xf32> to vector<8x128xf32>
    %cst_326 = arith.constant dense<0.000000e+00> : vector<8x128xf32>
    %807 = tpu.matmul %801, %427, %cst_326 {dimension_numbers = #tpu.dot_dimension_numbers<[1], [0], [0], [1], [0, 0, 1, 1], [], []>} : vector<8x32xf32>, vector<32x128xf32>, vector<8x128xf32> -> vector<8x128xf32>
    %808 = arith.addf %806, %807 : vector<8x128xf32>
    %809 = math.tanh %808 : vector<8x128xf32>
    %cst_327 = arith.constant 0.000000e+00 : f32
    %810 = vector.broadcast %cst_327 : f32 to vector<8x128xf32>
    %811 = arith.subf %810, %808 : vector<8x128xf32>
    %812 = math.exp %811 : vector<8x128xf32>
    %cst_328 = arith.constant 1.000000e+00 : f32
    %813 = vector.broadcast %cst_328 : f32 to vector<8x128xf32>
    %814 = arith.addf %813, %812 : vector<8x128xf32>
    %cst_329 = arith.constant 1.000000e+00 : f32
    %815 = vector.broadcast %cst_329 : f32 to vector<8x128xf32>
    %816 = arith.divf %815, %814 : vector<8x128xf32>
    %817 = arith.select %5, %809, %816 : vector<8x128xi1>, vector<8x128xf32>
    %818 = vector.extract_strided_slice %817 {offsets = [0, 0], sizes = [8, 32], strides = [1, 1]} : vector<8x128xf32> to vector<8x32xf32>
    %819 = vector.extract_strided_slice %817 {offsets = [0, 32], sizes = [8, 32], strides = [1, 1]} : vector<8x128xf32> to vector<8x32xf32>
    %820 = vector.extract_strided_slice %817 {offsets = [0, 64], sizes = [8, 32], strides = [1, 1]} : vector<8x128xf32> to vector<8x32xf32>
    %821 = vector.extract_strided_slice %817 {offsets = [0, 96], sizes = [8, 32], strides = [1, 1]} : vector<8x128xf32> to vector<8x32xf32>
    %822 = arith.mulf %819, %799 : vector<8x32xf32>
    %823 = arith.mulf %818, %820 : vector<8x32xf32>
    %824 = arith.addf %822, %823 : vector<8x32xf32>
    %825 = math.tanh %824 : vector<8x32xf32>
    %826 = arith.mulf %821, %825 : vector<8x32xf32>
    %c15_330 = arith.constant 15 : index
    %c0_331 = arith.constant 0 : index
    %c0_332 = arith.constant 0 : index
    %827 = vector.load %arg17[%c15_330, %c0_331, %c0_332] : memref<16x8x32xf32, #tpu.memory_space<vmem>>, vector<1x8x32xf32>
    %828 = vector.shape_cast %827 : vector<1x8x32xf32> to vector<8x32xf32>
    %829 = vector.shape_cast %826 : vector<8x32xf32> to vector<1x8x32xf32>
    tpu.vector_store %arg17[%c15_330, %c0_331, %c0_332], %829 {strides = array<i32>} : memref<16x8x32xf32, #tpu.memory_space<vmem>>, vector<1x8x32xf32>,
    %c0_333 = arith.constant 0 : index
    %c0_334 = arith.constant 0 : index
    %c0_335 = arith.constant 0 : index
    %830 = vector.load %arg17[%c0_333, %c0_334, %c0_335] : memref<16x8x32xf32, #tpu.memory_space<vmem>>, vector<16x8x32xf32>
    %831 = vector.shape_cast %830 : vector<16x8x32xf32> to vector<128x32xf32>
    %c0_336 = arith.constant 0 : index
    %c0_337 = arith.constant 0 : index
    %832 = vector.load %arg8[%c0_336, %c0_337] : memref<32x64xf32, #tpu.memory_space<vmem>>, vector<32x64xf32>
    %cst_338 = arith.constant dense<0.000000e+00> : vector<128x64xf32>
    %833 = tpu.matmul %831, %832, %cst_338 {dimension_numbers = #tpu.dot_dimension_numbers<[1], [0], [0], [1], [0, 0, 1, 1], [], []>} : vector<128x32xf32>, vector<32x64xf32>, vector<128x64xf32> -> vector<128x64xf32>
    %c0_339 = arith.constant 0 : index
    %c0_340 = arith.constant 0 : index
    %834 = vector.load %arg9[%c0_339, %c0_340] : memref<1x64xf32, #tpu.memory_space<vmem>>, vector<1x64xf32>
    %835 = vector.broadcast %834 : vector<1x64xf32> to vector<128x64xf32>
    %836 = arith.addf %833, %835 : vector<128x64xf32>
    %837 = math.tanh %836 : vector<128x64xf32>
    %c0_341 = arith.constant 0 : index
    %c0_342 = arith.constant 0 : index
    %838 = vector.load %arg10[%c0_341, %c0_342] : memref<64x1xf32, #tpu.memory_space<vmem>>, vector<64x1xf32>
    %cst_343 = arith.constant dense<0.000000e+00> : vector<128x1xf32>
    %839 = tpu.matmul %837, %838, %cst_343 {dimension_numbers = #tpu.dot_dimension_numbers<[1], [0], [0], [1], [0, 0, 1, 1], [], []>} : vector<128x64xf32>, vector<64x1xf32>, vector<128x1xf32> -> vector<128x1xf32>
    %c0_344 = arith.constant 0 : index
    %c0_345 = arith.constant 0 : index
    %840 = vector.load %arg11[%c0_344, %c0_345] : memref<1x1xf32, #tpu.memory_space<vmem>>, vector<1x1xf32>
    %841 = vector.broadcast %840 : vector<1x1xf32> to vector<128x1xf32>
    %842 = arith.addf %839, %841 : vector<128x1xf32>
    %843 = vector.shape_cast %842 : vector<128x1xf32> to vector<16x8x1xf32>
    %cst_346 = arith.constant dense<0xFF800000> : vector<8x1xf32>
    %844 = vector.multi_reduction <maximumf>, %843, %cst_346 [0] : vector<16x8x1xf32> to vector<8x1xf32>
    %845 = vector.shape_cast %844 : vector<8x1xf32> to vector<1x8x1xf32>
    %846 = vector.broadcast %845 : vector<1x8x1xf32> to vector<16x8x1xf32>
    %847 = arith.subf %843, %846 : vector<16x8x1xf32>
    %848 = math.exp %847 : vector<16x8x1xf32>
    %cst_347 = arith.constant dense<0.000000e+00> : vector<8x1xf32>
    %849 = vector.multi_reduction <add>, %848, %cst_347 [0] : vector<16x8x1xf32> to vector<8x1xf32>
    %850 = vector.shape_cast %849 : vector<8x1xf32> to vector<1x8x1xf32>
    %851 = vector.broadcast %850 : vector<1x8x1xf32> to vector<16x8x1xf32>
    %852 = arith.divf %848, %851 : vector<16x8x1xf32>
    %853 = vector.shape_cast %831 : vector<128x32xf32> to vector<16x8x32xf32>
    %854 = vector.broadcast %852 : vector<16x8x1xf32> to vector<16x8x32xf32>
    %855 = arith.mulf %854, %853 : vector<16x8x32xf32>
    %cst_348 = arith.constant dense<0.000000e+00> : vector<8x32xf32>
    %856 = vector.multi_reduction <add>, %855, %cst_348 [0] : vector<16x8x32xf32> to vector<8x32xf32>
    %c0_349 = arith.constant 0 : index
    %c0_350 = arith.constant 0 : index
    %857 = vector.load %arg12[%c0_349, %c0_350] : memref<32x64xf32, #tpu.memory_space<vmem>>, vector<32x64xf32>
    %cst_351 = arith.constant dense<0.000000e+00> : vector<8x64xf32>
    %858 = tpu.matmul %856, %857, %cst_351 {dimension_numbers = #tpu.dot_dimension_numbers<[1], [0], [0], [1], [0, 0, 1, 1], [], []>} : vector<8x32xf32>, vector<32x64xf32>, vector<8x64xf32> -> vector<8x64xf32>
    %c0_352 = arith.constant 0 : index
    %c0_353 = arith.constant 0 : index
    %859 = vector.load %arg13[%c0_352, %c0_353] : memref<1x64xf32, #tpu.memory_space<vmem>>, vector<1x64xf32>
    %860 = vector.broadcast %859 : vector<1x64xf32> to vector<8x64xf32>
    %861 = arith.addf %858, %860 : vector<8x64xf32>
    %cst_354 = arith.constant 0.000000e+00 : f32
    %862 = vector.broadcast %cst_354 : f32 to vector<8x64xf32>
    %863 = arith.maximumf %861, %862 : vector<8x64xf32>
    %c0_355 = arith.constant 0 : index
    %c0_356 = arith.constant 0 : index
    %864 = vector.load %arg14[%c0_355, %c0_356] : memref<64x1xf32, #tpu.memory_space<vmem>>, vector<64x1xf32>
    %cst_357 = arith.constant dense<0.000000e+00> : vector<8x1xf32>
    %865 = tpu.matmul %863, %864, %cst_357 {dimension_numbers = #tpu.dot_dimension_numbers<[1], [0], [0], [1], [0, 0, 1, 1], [], []>} : vector<8x64xf32>, vector<64x1xf32>, vector<8x1xf32> -> vector<8x1xf32>
    %c0_358 = arith.constant 0 : index
    %c0_359 = arith.constant 0 : index
    %866 = vector.load %arg15[%c0_358, %c0_359] : memref<1x1xf32, #tpu.memory_space<vmem>>, vector<1x1xf32>
    %867 = vector.broadcast %866 : vector<1x1xf32> to vector<8x1xf32>
    %868 = arith.addf %865, %867 : vector<8x1xf32>
    %cst_360 = arith.constant 0.000000e+00 : f32
    %869 = vector.broadcast %cst_360 : f32 to vector<8x1xf32>
    %870 = arith.subf %869, %868 : vector<8x1xf32>
    %871 = math.exp %870 : vector<8x1xf32>
    %cst_361 = arith.constant 1.000000e+00 : f32
    %872 = vector.broadcast %cst_361 : f32 to vector<8x1xf32>
    %873 = arith.addf %872, %871 : vector<8x1xf32>
    %cst_362 = arith.constant 1.000000e+00 : f32
    %874 = vector.broadcast %cst_362 : f32 to vector<8x1xf32>
    %875 = arith.divf %874, %873 : vector<8x1xf32>
    %c0_363 = arith.constant 0 : index
    %c0_364 = arith.constant 0 : index
    %876 = vector.load %arg16[%c0_363, %c0_364] : memref<8x1xf32, #tpu.memory_space<vmem>>, vector<8x1xf32>
    tpu.vector_store %arg16[%c0_363, %c0_364], %875 {strides = array<i32>} : memref<8x1xf32, #tpu.memory_space<vmem>>, vector<8x1xf32>,
    return
  }
  func.func @transform_0(%arg0: i32) -> (i32, i32, i32) {
    %c0_i32 = arith.constant 0 : i32
    %c0_i32_0 = arith.constant 0 : i32
    %c0_i32_1 = arith.constant 0 : i32
    return %c0_i32, %arg0, %c0_i32_0 : i32, i32, i32
  }
  func.func @transform_1(%arg0: i32) -> (i32, i32) {
    %c0_i32 = arith.constant 0 : i32
    %c0_i32_0 = arith.constant 0 : i32
    %c0_i32_1 = arith.constant 0 : i32
    return %c0_i32, %c0_i32_0 : i32, i32
  }
  func.func @transform_2(%arg0: i32) -> (i32, i32) {
    %c0_i32 = arith.constant 0 : i32
    %c0_i32_0 = arith.constant 0 : i32
    %c0_i32_1 = arith.constant 0 : i32
    return %c0_i32, %c0_i32_0 : i32, i32
  }
  func.func @transform_3(%arg0: i32) -> (i32, i32) {
    %c0_i32 = arith.constant 0 : i32
    %c0_i32_0 = arith.constant 0 : i32
    %c0_i32_1 = arith.constant 0 : i32
    return %c0_i32, %c0_i32_0 : i32, i32
  }
  func.func @transform_4(%arg0: i32) -> (i32, i32) {
    %c0_i32 = arith.constant 0 : i32
    %c0_i32_0 = arith.constant 0 : i32
    %c0_i32_1 = arith.constant 0 : i32
    return %c0_i32, %c0_i32_0 : i32, i32
  }
  func.func @transform_5(%arg0: i32) -> (i32, i32) {
    %c0_i32 = arith.constant 0 : i32
    %c0_i32_0 = arith.constant 0 : i32
    %c0_i32_1 = arith.constant 0 : i32
    return %c0_i32, %c0_i32_0 : i32, i32
  }
  func.func @transform_6(%arg0: i32) -> (i32, i32) {
    %c0_i32 = arith.constant 0 : i32
    %c0_i32_0 = arith.constant 0 : i32
    %c0_i32_1 = arith.constant 0 : i32
    return %c0_i32, %c0_i32_0 : i32, i32
  }
  func.func @transform_7(%arg0: i32) -> (i32, i32) {
    %c0_i32 = arith.constant 0 : i32
    %c0_i32_0 = arith.constant 0 : i32
    %c0_i32_1 = arith.constant 0 : i32
    return %c0_i32, %c0_i32_0 : i32, i32
  }
  func.func @transform_8(%arg0: i32) -> (i32, i32) {
    %c0_i32 = arith.constant 0 : i32
    %c0_i32_0 = arith.constant 0 : i32
    %c0_i32_1 = arith.constant 0 : i32
    return %c0_i32, %c0_i32_0 : i32, i32
  }
  func.func @transform_9(%arg0: i32) -> (i32, i32) {
    %c0_i32 = arith.constant 0 : i32
    %c0_i32_0 = arith.constant 0 : i32
    %c0_i32_1 = arith.constant 0 : i32
    return %c0_i32, %c0_i32_0 : i32, i32
  }
  func.func @transform_10(%arg0: i32) -> (i32, i32) {
    %c0_i32 = arith.constant 0 : i32
    %c0_i32_0 = arith.constant 0 : i32
    %c0_i32_1 = arith.constant 0 : i32
    return %c0_i32, %c0_i32_0 : i32, i32
  }
  func.func @transform_11(%arg0: i32) -> (i32, i32) {
    %c0_i32 = arith.constant 0 : i32
    %c0_i32_0 = arith.constant 0 : i32
    %c0_i32_1 = arith.constant 0 : i32
    return %c0_i32, %c0_i32_0 : i32, i32
  }
  func.func @transform_12(%arg0: i32) -> (i32, i32) {
    %c0_i32 = arith.constant 0 : i32
    %c0_i32_0 = arith.constant 0 : i32
    %c0_i32_1 = arith.constant 0 : i32
    return %c0_i32, %c0_i32_0 : i32, i32
  }
  func.func @transform_13(%arg0: i32) -> (i32, i32) {
    %c0_i32 = arith.constant 0 : i32
    %c0_i32_0 = arith.constant 0 : i32
    %c0_i32_1 = arith.constant 0 : i32
    return %c0_i32, %c0_i32_0 : i32, i32
  }
  func.func @transform_14(%arg0: i32) -> (i32, i32) {
    %c0_i32 = arith.constant 0 : i32
    %c0_i32_0 = arith.constant 0 : i32
    %c0_i32_1 = arith.constant 0 : i32
    return %c0_i32, %c0_i32_0 : i32, i32
  }
  func.func @transform_15(%arg0: i32) -> (i32, i32) {
    %c0_i32 = arith.constant 0 : i32
    %c0_i32_0 = arith.constant 0 : i32
    return %arg0, %c0_i32 : i32, i32
  }
}

</mosaic_0001>

<bundles_post_ra>
// kernel: tpu_custom_call.1
= control target key start
LH: loop header
LB: loop body
LE: loop exit
PB: predicated region body
PF: predicated region fallthrough
CT: control target
= control target key end

     0   :  { %s7793_s0 = inlined_call_operand.vmem [shape: f32[16,8,48], index: 0, kind: input, shape index: {}]   ;;  %s7794_s1 = inlined_call_operand.hbm [shape: f32[48,128], index: 1, kind: input, shape index: {}]   ;;  %s7795_s2 = inlined_call_operand.hbm [shape: f32[32,128], index: 2, kind: input, shape index: {}]   ;;  %s7796_s3 = inlined_call_operand.hbm [shape: f32[1,128], index: 3, kind: input, shape index: {}]   ;;  %s7797_s4 = inlined_call_operand.hbm [shape: f32[32,128], index: 4, kind: input, shape index: {}]   ;;  %s7798_s5 = inlined_call_operand.hbm [shape: f32[32,128], index: 5, kind: input, shape index: {}]   ;;  %s7799_s6 = inlined_call_operand.hbm [shape: f32[1,128], index: 6, kind: input, shape index: {}]   ;;  %s7800_s7 = inlined_call_operand.vmem [shape: f32[32,64], index: 7, kind: input, shape index: {}]   ;;  %s7801_s8 = inlined_call_operand.vmem [shape: f32[1,64], index: 8, kind: input, shape index: {}]   ;;  %s7802_s9 = inlined_call_operand.vmem [shape: f32[64,1], index: 9, kind: input, shape index: {}]   ;;  %s7803_s10 = inlined_call_operand.<no memory space> [shape: f32[1,1], index: 10, kind: input, shape index: {}]   ;;  %s7804_s11 = inlined_call_operand.hbm [shape: f32[32,64], index: 11, kind: input, shape index: {}]   ;;  %s7805_s12 = inlined_call_operand.vmem [shape: f32[1,64], index: 12, kind: input, shape index: {}]   ;;  %s7806_s13 = inlined_call_operand.vmem [shape: f32[64,1], index: 13, kind: input, shape index: {}]   ;;  %s7807_s15 = inlined_call_operand.vmem [shape: f32[8,1], index: 15, kind: output, shape index: {}]   ;;  %s7808_s14 = inlined_call_operand.<no memory space> [shape: f32[1,1], index: 14, kind: input, shape index: {}]  }
   0x1   :  { %v20_v0 = vstv %s7803_s10  ;;  %v22_v1 = vstv %s7808_s14 }
   0x2   :  { %21 = vst [vmem:[#allocation4] sm:$0x1] %v20_v0  ;;  %23 = vst [vmem:[#allocation5] sm:$0x1] %v22_v1 }
   0x3   :  { %24 = vsyncpa [#allocation7], 0 }
   0x4   :  { %25 = vsyncpa [#allocation9], 0 }
   0x5   :  { %26 = vsyncpa [#allocation12], 0 }
   0x6   :  { %27 = vsyncpa [#allocation15], 0  ;;  %s6524_s22 = smov [#allocation8]   ;;  %s6525_s24 = smov [#allocation11]  }
   0x7   :  { %s47_s23 = sshll.u32 %s6524_s22, 4  ;;  %s69_s25 = sshll.u32 %s6525_s24, 4  ;;  %s48_s23 = int_to_ptr.vmem [resolvable:$true] %s47_s23  ;;  %s6625_s25 = int_to_ptr.vmem [resolvable:$true] %s69_s25 }
   0x8   :  { %s6362_s10 = scalar_lea.hbm %s7795_s2, 512 }
   0x9   :  { %p6363_p0 = scmp.ne.s32.totalorder %s7795_s2, %s6362_s10  ;;  %p6366_p1 = scmp.lt.u32.totalorder %s6362_s10, %s7795_s2 }
   0xb   :  { %p6368_p2 = pnand %p6366_p1, %p6363_p0 }
   0xd   :  { %6371 = shalt.err (!%p6368_p2)
}
   0xe   :  { %s6372_s16 = scalar_lea.vmem %s48_s23, 512  ;;  %p6377_p4 = scmp.lt.s32.totalorder %s48_s23, %s48_s23 }
   0xf   :  { %p6373_p3 = scmp.ne.s32.totalorder %s48_s23, %s6372_s16  ;;  %p6378_p5 = scmp.lt.s32.totalorder %s6372_s16, %s6372_s16 }
  0x11   :  { %p6379_p6 = por %p6378_p5, %p6377_p4 }
  0x13   :  { %p6380_p7 = pnand %p6379_p6, %p6373_p3 }
  0x15   :  { %6383 = shalt.err (!%p6380_p7)
}
  0x16   :  { %s6526_s17 = smov 128   ;;  %s6527_s18 = smov 8  }
  0x17   :  { %53 = dma.hbm_to_vmem [thread:$0]  %s7795_s2, 512, %s48_s23, [#allocation9], %s6526_s17, %s6526_s17, %s6527_s18  }
  0x18   :  { %s6384_s24 = scalar_lea.hbm %s7797_s4, 512 }
  0x19   :  { %p6385_p8 = scmp.ne.s32.totalorder %s7797_s4, %s6384_s24  ;;  %p6388_p9 = scmp.lt.u32.totalorder %s6384_s24, %s7797_s4 }
  0x1b   :  { %p6390_p10 = pnand %p6388_p9, %p6385_p8 }
  0x1d   :  { %6393 = shalt.err (!%p6390_p10)
}
  0x1e   :  { %s6394_s29 = scalar_lea.vmem %s6625_s25, 512  ;;  %p6399_p12 = scmp.lt.s32.totalorder %s6625_s25, %s6625_s25 }
  0x1f   :  { %p6395_p11 = scmp.ne.s32.totalorder %s6625_s25, %s6394_s29  ;;  %p6400_p13 = scmp.lt.s32.totalorder %s6394_s29, %s6394_s29 }
  0x21   :  { %p6401_p0 = por %p6400_p13, %p6399_p12 }
  0x23   :  { %p6402_p1 = pnand %p6401_p0, %p6395_p11 }
  0x25   :  { %6405 = shalt.err (!%p6402_p1)
}
  0x26   :  { %75 = dma.hbm_to_vmem [thread:$0]  %s7797_s4, 512, %s6625_s25, [#allocation12], %s6526_s17, %s6526_s17, %s6527_s18  }
  0x27   :  { %s6528_s14 = smov [#allocation14]   ;;  %s6529_s16 = smov [#allocation6]  }
  0x28   :  { %s94_s30 = sshll.u32 %s6528_s14, 4  ;;  %s35_s19 = sshll.u32 %s6529_s16, 4  ;;  %s95_s30 = int_to_ptr.vmem [resolvable:$true] %s94_s30  ;;  %s6662_s19 = int_to_ptr.vmem [resolvable:$true] %s35_s19 }
  0x29   :  { %s6406_s22 = scalar_lea.hbm %s7799_s6, 16 }
  0x2a   :  { %p6407_p2 = scmp.ne.s32.totalorder %s7799_s6, %s6406_s22  ;;  %p6410_p3 = scmp.lt.u32.totalorder %s6406_s22, %s7799_s6 }
  0x2c   :  { %p6412_p4 = pnand %p6410_p3, %p6407_p2 }
  0x2e   :  { %6415 = shalt.err (!%p6412_p4)
}
  0x2f   :  { %s6416_s4 = scalar_lea.vmem %s95_s30, 16  ;;  %s6420_s25 = scalar_lea.vmem %s95_s30, 32 }
  0x30   :  { %p6417_p5 = scmp.ne.s32.totalorder %s95_s30, %s6416_s4  ;;  %p6421_p6 = scmp.lt.s32.totalorder %s95_s30, %s95_s30 }
  0x31   :  { %p6422_p7 = scmp.lt.s32.totalorder %s6420_s25, %s6416_s4 }
  0x33   :  { %p6423_p8 = por %p6422_p7, %p6421_p6 }
  0x35   :  { %p6424_p9 = pnand %p6423_p8, %p6417_p5 }
  0x37   :  { %6427 = shalt.err (!%p6424_p9)
}
  0x38   :  { %97 = dma.hbm_to_vmem [thread:$0]  %s7799_s6, 16, %s95_s30, [#allocation15]  }
  0x39   :  { %s6428_s14 = scalar_lea.hbm %s7794_s1, 768 }
  0x3a   :  { %p6429_p10 = scmp.ne.s32.totalorder %s7794_s1, %s6428_s14  ;;  %p6432_p11 = scmp.lt.u32.totalorder %s6428_s14, %s7794_s1 }
  0x3c   :  { %p6434_p12 = pnand %p6432_p11, %p6429_p10 }
  0x3e   :  { %6437 = shalt.err (!%p6434_p12)
}
  0x3f   :  { %s6438_s24 = scalar_lea.vmem %s6662_s19, 768  ;;  %p6443_p0 = scmp.lt.s32.totalorder %s6662_s19, %s6662_s19 }
  0x40   :  { %p6439_p13 = scmp.ne.s32.totalorder %s6662_s19, %s6438_s24  ;;  %p6444_p1 = scmp.lt.s32.totalorder %s6438_s24, %s6438_s24 }
  0x42   :  { %p6445_p2 = por %p6444_p1, %p6443_p0 }
  0x44   :  { %p6446_p3 = pnand %p6445_p2, %p6439_p13 }
  0x46   :  { %6449 = shalt.err (!%p6446_p3)
}
  0x47   :  { %41 = dma.hbm_to_vmem [thread:$0]  %s7794_s1, 768, %s6662_s19, [#allocation7], %s6526_s17, %s6526_s17, %s6527_s18  }
  0x48   :  { %s6530_s26 = smov [#allocation10]   ;;  %s6531_s10 = smov [#allocation13]  }
  0x49   :  { %s60_s27 = sshll.u32 %s6530_s26, 4  ;;  %s81_s4 = sshll.u32 %s6531_s10, 4  ;;  %s61_s27 = int_to_ptr.vmem [resolvable:$true] %s60_s27  ;;  %s6696_s4 = int_to_ptr.vmem [resolvable:$true] %s81_s4 }
  0x4a   :  { %s6450_s29 = scalar_lea.hbm %s7796_s3, 16 }
  0x4b   :  { %p6451_p4 = scmp.ne.s32.totalorder %s7796_s3, %s6450_s29  ;;  %p6454_p5 = scmp.lt.u32.totalorder %s6450_s29, %s7796_s3 }
  0x4d   :  { %p6456_p6 = pnand %p6454_p5, %p6451_p4 }
  0x4f   :  { %6459 = shalt.err (!%p6456_p6)
}
  0x50   :  { %s6460_s1 = scalar_lea.vmem %s61_s27, 16  ;;  %s6464_s19 = scalar_lea.vmem %s61_s27, 32 }
  0x51   :  { %p6461_p7 = scmp.ne.s32.totalorder %s61_s27, %s6460_s1  ;;  %p6465_p8 = scmp.lt.s32.totalorder %s61_s27, %s61_s27 }
  0x52   :  { %p6466_p9 = scmp.lt.s32.totalorder %s6464_s19, %s6460_s1 }
  0x54   :  { %p6467_p10 = por %p6466_p9, %p6465_p8 }
  0x56   :  { %p6468_p11 = pnand %p6467_p10, %p6461_p7 }
  0x58   :  { %6471 = shalt.err (!%p6468_p11)
}
  0x59   :  { %63 = dma.hbm_to_vmem [thread:$0]  %s7796_s3, 16, %s61_s27, [#allocation9]  }
  0x5a   :  { %s6472_s6 = scalar_lea.hbm %s7798_s5, 512 }
  0x5b   :  { %p6473_p12 = scmp.ne.s32.totalorder %s7798_s5, %s6472_s6  ;;  %p6476_p13 = scmp.lt.u32.totalorder %s6472_s6, %s7798_s5 }
  0x5d   :  { %p6478_p0 = pnand %p6476_p13, %p6473_p12 }
  0x5f   :  { %6481 = shalt.err (!%p6478_p0)
}
  0x60   :  { %s6482_s28 = scalar_lea.vmem %s6696_s4, 512  ;;  %p6487_p2 = scmp.lt.s32.totalorder %s6696_s4, %s6696_s4 }
  0x61   :  { %p6483_p1 = scmp.ne.s32.totalorder %s6696_s4, %s6482_s28  ;;  %p6488_p3 = scmp.lt.s32.totalorder %s6482_s28, %s6482_s28 }
  0x63   :  { %p6489_p4 = por %p6488_p3, %p6487_p2 }
  0x65   :  { %p6490_p5 = pnand %p6489_p4, %p6483_p1 }
  0x67   :  { %6493 = shalt.err (!%p6490_p5)
}
  0x68   :  { %87 = dma.hbm_to_vmem [thread:$0]  %s7798_s5, 512, %s6696_s4, [#allocation12], %s6526_s17, %s6526_s17, %s6527_s18  }
  0x69   :  { %s6532_s29 = smov [#allocation16]   ;;  %s6494_s16 = scalar_lea.hbm %s7804_s11, 512 }
  0x6a   :  { %s111_s2 = sshll.u32 %s6532_s29, 4  ;;  %p6495_p6 = scmp.ne.s32.totalorder %s7804_s11, %s6494_s16  ;;  %s112_s2 = int_to_ptr.vmem [resolvable:$true] %s111_s2 }
  0x6b   :  { %p6498_p7 = scmp.lt.u32.totalorder %s6494_s16, %s7804_s11 }
  0x6d   :  { %p6500_p8 = pnand %p6498_p7, %p6495_p6 }
  0x6f   :  { %6503 = shalt.err (!%p6500_p8)
}
  0x70   :  { %s6504_s22 = scalar_lea.vmem %s112_s2, 512  ;;  %p6509_p10 = scmp.lt.s32.totalorder %s112_s2, %s112_s2 }
  0x71   :  { %p6505_p9 = scmp.ne.s32.totalorder %s112_s2, %s6504_s22  ;;  %p6510_p11 = scmp.lt.s32.totalorder %s6504_s22, %s6504_s22 }
  0x73   :  { %p6511_p12 = por %p6510_p11, %p6509_p10 }
  0x75   :  { %p6512_p13 = pnand %p6511_p12, %p6505_p9 }
  0x77   :  { %6515 = shalt.err (!%p6512_p13)
}
  0x78   :  { %117 = dma.hbm_to_vmem [thread:$0]  %s7804_s11, 512, %s112_s2, [#allocation15], %s6526_s17, %s6526_s17, %s6527_s18  }
  0x79   :  { %6516 = dma.done.wait [#allocation7], 768  }
  0x7a   :  { %6517 = vsyncadd [#allocation7], 4294966528 }
  0x7b   :  { %6518 = dma.done.wait [#allocation9], 528  }
  0x7c   :  { %6519 = vsyncadd [#allocation9], 4294966768 }
  0x7d   :  { %6520 = dma.done.wait [#allocation12], 1024  }
  0x7e   :  { %6521 = vsyncadd [#allocation12], 4294966272 }
  0x7f   :  { %6522 = dma.done.wait [#allocation15], 528  }
  0x80   :  { %6523 = vsyncadd [#allocation15], 4294966768  ;;  %v6533_v2 = vmov 0.0|0.0   ;;  %vm6534_vm0 = vmmov 0   ;;  %v6535_v3 = vmov 0.0   ;;  %v166_v4 = vld [vmem:[#allocation6] sm:$0xff]  ;;  %v145_v31 = vlaneseq }
  0x81   :  { %5775 = vmatprep.subr.bf16.mxu1 %v6533_v2  ;;  %5285 = vmatprep.mubr.msk.f32.mxu1 %vm6534_vm0, %v6535_v3  ;;  %v167_v5 = vld [vmem:[#allocation6 + $0x8] sm:$0xff]  ;;  %v168_v6 = vld [vmem:[#allocation6 + $0x10] sm:$0xff]  ;;  %vm179_vm1 = vcmask 392192   ;;  %v169_v8 = vld [vmem:[#allocation6 + $0x18] sm:$0xff]  ;;  %s6536_s6 = smov 64   ;;  %s6537_s30 = smov 32  }
  0x82   :  { %v5763_v7 = vpack.c.bf16 %v167_v5, %v166_v4  ;;  %v389_v9 = vld [vmem:[#allocation8] sm:$0xff]  ;;  %v390_v10 = vld [vmem:[#allocation8 + $0x8] sm:$0xff]  ;;  %v5767_v11 = vpack.c.bf16 %v169_v8, %v168_v6  ;;  %v170_v13 = vld [vmem:[#allocation6 + $0x20] sm:$0xff]  ;;  %v146_v33 = vand.u32 127, %v145_v31  ;;  %vm394_vm5 = vcmask 261120  }
  0x83   :  { %v6748_v12 = vpack.c.bf16 %v390_v10, %v389_v9  ;;  %v171_v14 = vld [vmem:[#allocation6 + $0x28] sm:$0xff]  ;;  %v150_v15 = vld [vmem:[%s7793_s0] sm:$0xff]  ;;  %v6776_v23 = vld [vmem:[#allocation10] ss:$0 sm:$0xff]  ;;  %vm4242_vm6 = vcmask 523264   ;;  %vm4436_vm7 = vcmask 7168  }
  0x84   :  { %5764 = vmatprep.subr.bf16.mxu0 %v5763_v7  ;;  %5253 = vmatprep.mubr.msk.f32.mxu0 %vm179_vm1, %v150_v15  ;;  %v391_v16 = vld [vmem:[#allocation8 + $0x10] sm:$0xff]  ;;  %v392_v17 = vld [vmem:[#allocation8 + $0x18] sm:$0xff]  ;;  %v5771_v19 = vpack.c.bf16 %v171_v14, %v170_v13  ;;  %vm147_vm2 = vcmp.ge.s32.totalorder %v146_v33, 64  ;;  %vm148_vm3 = vcmp.lt.s32.totalorder %v146_v33, 96  ;;  %v153_v0 = vld [vmem:[%s7793_s0 + $0x18] sm:$0xff] }
  0x85   :  { %5766 = vmatpush3.bf16.msra.mxu0 %v5763_v7  ;;  %5777 = vmatpush3.bf16.msra.mxu1 %v6748_v12  ;;  %v6755_v18 = vpack.c.bf16 %v392_v17, %v391_v16  ;;  %v151_v20 = vld [vmem:[%s7793_s0 + $0x8] sm:$0xff]  ;;  %vm6779_vm4 = vmand %vm147_vm2, %vm148_vm3  ;;  %v152_v63 = vld [vmem:[%s7793_s0 + $0x10] sm:$0xff] }
  0x86   :  { %5768 = vmatprep.subr.bf16.mxu0 %v5767_v11  ;;  %5778 = vmatprep.subr.bf16.mxu1 %v6533_v2 }
  0x89   :  { %5770 = vmatpush3.bf16.msra.mxu0 %v5767_v11  ;;  %5780 = vmatpush3.bf16.msra.mxu1 %v6755_v18 }
  0x8a   :  { %5772 = vmatprep.subr.bf16.mxu0 %v5771_v19  ;;  %5781 = vmatprep.subr.bf16.mxu1 %v6533_v2 }
  0x8c   :  { %5286 = vmatmul.mubr.f32.vlgmr.msra.gmra.mrb[0].mxu1 %v6535_v3 }
  0x8d   :  { %5774 = vmatpush3.bf16.msra.mxu0 %v5771_v19  ;;  %5783 = vmatpush3.bf16.msra.mxu1 %v6748_v12 }
  0x8e   :  { %5784 = vmatprep.subr.bf16.mxu1 %v6533_v2  ;;  %5296 = vmatprep.mubr.msk.f32.mxu1 %vm6534_vm0, %v6535_v3 }
  0x8f   :  { %5817 = vmatprep.subr.bf16.mxu0 %v6533_v2 }
  0x90   :  { %5254 = vmatmul.mubr.msk.f32.vlgmr.msra.gmra.mrb[0].mxu0 %vm179_vm1, %v151_v20 }
  0x91   :  { %5786 = vmatpush3.bf16.msra.mxu1 %v6755_v18  ;;  %5819 = vmatpush3.bf16.msra.mxu0 %v6748_v12 }
  0x92   :  { %5787 = vmatprep.subr.bf16.mxu1 %v6533_v2  ;;  %5820 = vmatprep.subr.bf16.mxu0 %v6533_v2 }
  0x93   :  { %5256 = vmatprep.mubr.msk.f32.mxu0 %vm179_vm1, %v152_v63 }
  0x94   :  { %5257 = vmatmul.mubr.msk.f32.gmra.mrb[2].mxu0 %vm179_vm1, %v153_v0 }
  0x95   :  { %5822 = vmatpush3.bf16.msra.mxu0 %v6755_v18 }
  0x96   :  { %5829 = vmatprep.subr.bf16.mxu0 %v6533_v2 }
 0x15f   :  { %v464_v21 = vpop.f32.mrb[0].mxu1 }
 0x160   :  { %v5287_v22 = vpop.f32.mrb[1].mxu1 }
 0x163   :  { %v5255_v24 = vpop.f32.mrb[0].mxu0 }
 0x164   :  { %v294_v25 = vpop.f32.mrb[1].mxu0  ;;  %v300_v47 = vadd.f32 %v5255_v24, %v6776_v23 }
 0x165   :  { %v295_v26 = vadd.f32 %v6776_v23, %v294_v25 }
 0x167   :  { %v468_v27 = vadd.f32 %v464_v21, %v295_v26  ;;  %v5258_v6 = vpop.f32.mrb[2].mxu0 }
 0x168   :  { %v304_v7 = vpop.f32.mrb[3].mxu0 }
 0x169   :  { %v470_v28 = vsub.f32 0.0, %v468_v27  ;;  %v305_v9 = vadd.f32 %v6776_v23, %v304_v7 }
 0x16b   :  { %v471_v29 = vmul.f32 1.442695, %v470_v28 }
 0x16d   :  { %6034 = vpow2.f32 %v471_v29 }
 0x16e   :  { %6036 = vtanh.f32 %v468_v27 }
 0x177   :  { %v6035_v30 = vpop.eup %6034 }
 0x178   :  { %v473_v32 = vadd.f32 1.0, %v6035_v30  ;;  %v6037_v35 = vpop.eup %6036 }
 0x17a   :  { %6038 = vrcp.f32 %v473_v32  ;;  %v310_v32 = vadd.f32 %v5258_v6, %v6776_v23 }
 0x184   :  { %v6039_v36 = vpop.eup %6038 }
 0x185   :  { %v476_v37 = vsel %vm6779_vm4, %v6037_v35, %v6039_v36 }
 0x186   :  { %479 = vrot.lane.b32.xlu0 %v476_v37, %s6536_s6  ;;  %v477_v40 = vmul.f32 0.0, %v476_v37 }
 0x1f8   :  { %v480_v38 = vpop.permute.xlu0 %479 }
 0x1f9   :  { %v482_v39 = vmul.f32 %v480_v38, %v476_v37 }
 0x1fb   :  { %484 = vrot.lane.b32.xlu0 %v482_v39, %s6537_s30 }
 0x26d   :  { %v485_v41 = vpop.permute.xlu0 %484 }
 0x26e   :  { %v487_v42 = vadd.f32 %v485_v41, %v477_v40 }
 0x270   :  { %6040 = vtanh.f32 %v487_v42 }
 0x27a   :  { %v6041_v43 = vpop.eup %6040 }
 0x27b   :  { %490 = vrot.lane.b32.xlu1 %v6041_v43, %s6536_s6 }
 0x2ed   :  { %v491_v44 = vpop.permute.xlu1 %490 }
 0x2ee   :  { %v493_v45 = vmul.f32 %v491_v44, %v476_v37 }
 0x2f0   :  { %495 = vrot.lane.b32.xlu1 %v493_v45, %s6537_s30 }
 0x362   :  { %v496_v46 = vpop.permute.xlu1 %495 }
 0x363   :  { %498 = vst.msk [vmem:[#allocation2] sm:$0xff] %vm394_vm5, %v496_v46  ;;  %5297 = vmatmul.mubr.msk.f32.vlgmr.msra.gmra.mrb[2].mxu1 %vm394_vm5, %v496_v46 }
 0x364   :  { %5789 = vmatpush3.bf16.msra.mxu1 %v6748_v12  ;;  %5307 = vmatprep.mubr.msk.f32.mxu1 %vm6534_vm0, %v6535_v3 }
 0x365   :  { %5790 = vmatprep.subr.bf16.mxu1 %v6533_v2 }
 0x368   :  { %5792 = vmatpush3.bf16.msra.mxu1 %v6755_v18 }
 0x369   :  { %5793 = vmatprep.subr.bf16.mxu1 %v6533_v2 }
 0x436   :  { %v569_v48 = vpop.f32.mrb[2].mxu1 }
 0x437   :  { %v573_v49 = vadd.f32 %v569_v48, %v300_v47  ;;  %v5298_v50 = vpop.f32.mrb[3].mxu1 }
 0x438   :  { %v155_v50 = vld [vmem:[%s7793_s0 + $0x28] sm:$0xff] }
 0x439   :  { %v575_v51 = vsub.f32 0.0, %v573_v49 }
 0x43b   :  { %v576_v52 = vmul.f32 1.442695, %v575_v51 }
 0x43d   :  { %6042 = vpow2.f32 %v576_v52 }
 0x43e   :  { %6044 = vtanh.f32 %v573_v49  ;;  %v154_v49 = vld [vmem:[%s7793_s0 + $0x20] sm:$0xff] }
 0x43f   :  { %5259 = vmatprep.mubr.msk.f32.mxu0 %vm179_vm1, %v154_v49 }
 0x440   :  { %5260 = vmatmul.mubr.msk.f32.gmra.mrb[4].mxu0 %vm179_vm1, %v155_v50 }
 0x447   :  { %v6043_v53 = vpop.eup %6042 }
 0x448   :  { %v578_v54 = vadd.f32 1.0, %v6043_v53  ;;  %v6045_v55 = vpop.eup %6044 }
 0x44a   :  { %6046 = vrcp.f32 %v578_v54 }
 0x454   :  { %v6047_v56 = vpop.eup %6046 }
 0x455   :  { %v581_v57 = vsel %vm6779_vm4, %v6045_v55, %v6047_v56 }
 0x456   :  { %584 = vrot.lane.b32.xlu0 %v581_v57, %s6536_s6  ;;  %v582_v60 = vmul.f32 %v581_v57, %v487_v42 }
 0x4c8   :  { %v585_v58 = vpop.permute.xlu0 %584 }
 0x4c9   :  { %v587_v59 = vmul.f32 %v585_v58, %v581_v57 }
 0x4cb   :  { %589 = vrot.lane.b32.xlu1 %v587_v59, %s6537_s30 }
 0x513   :  { %v5261_v54 = vpop.f32.mrb[4].mxu0 }
 0x514   :  { %v314_v55 = vpop.f32.mrb[5].mxu0 }
 0x53d   :  { %v590_v61 = vpop.permute.xlu1 %589 }
 0x53e   :  { %v592_v62 = vadd.f32 %v590_v61, %v582_v60 }
 0x540   :  { %6048 = vtanh.f32 %v592_v62 }
 0x54a   :  { %v6049_v1 = vpop.eup %6048 }
 0x54b   :  { %595 = vrot.lane.b32.xlu0 %v6049_v1, %s6536_s6 }
 0x5bd   :  { %v596_v4 = vpop.permute.xlu0 %595 }
 0x5be   :  { %v598_v5 = vmul.f32 %v596_v4, %v581_v57  ;;  %v315_v57 = vadd.f32 %v6776_v23, %v314_v55 }
 0x5c0   :  { %600 = vrot.lane.b32.xlu1 %v598_v5, %s6537_s30 }
 0x632   :  { %v601_v8 = vpop.permute.xlu1 %600 }
 0x633   :  { %604 = vst.msk [vmem:[#allocation2 + $0x8] sm:$0xff] %vm394_vm5, %v601_v8  ;;  %5308 = vmatmul.mubr.msk.f32.vlgmr.msra.gmra.mrb[4].mxu1 %vm394_vm5, %v601_v8 }
 0x634   :  { %5795 = vmatpush3.bf16.msra.mxu1 %v6748_v12  ;;  %5318 = vmatprep.mubr.msk.f32.mxu1 %vm6534_vm0, %v6535_v3 }
 0x635   :  { %5796 = vmatprep.subr.bf16.mxu1 %v6533_v2 }
 0x638   :  { %5798 = vmatpush3.bf16.msra.mxu1 %v6755_v18 }
 0x639   :  { %5799 = vmatprep.subr.bf16.mxu1 %v6533_v2 }
 0x706   :  { %v675_v10 = vpop.f32.mrb[4].mxu1 }
 0x707   :  { %v679_v11 = vadd.f32 %v675_v10, %v305_v9  ;;  %v5309_v13 = vpop.f32.mrb[5].mxu1 }
 0x709   :  { %v681_v14 = vsub.f32 0.0, %v679_v11 }
 0x70b   :  { %v682_v15 = vmul.f32 1.442695, %v681_v14 }
 0x70d   :  { %6050 = vpow2.f32 %v682_v15 }
 0x70e   :  { %6052 = vtanh.f32 %v679_v11 }
 0x717   :  { %v6051_v16 = vpop.eup %6050 }
 0x718   :  { %v684_v17 = vadd.f32 1.0, %v6051_v16  ;;  %v6053_v19 = vpop.eup %6052  ;;  %v320_v16 = vadd.f32 %v5261_v54, %v6776_v23 }
 0x71a   :  { %6054 = vrcp.f32 %v684_v17 }
 0x724   :  { %v6055_v20 = vpop.eup %6054 }
 0x725   :  { %v687_v21 = vsel %vm6779_vm4, %v6053_v19, %v6055_v20 }
 0x726   :  { %690 = vrot.lane.b32.xlu0 %v687_v21, %s6536_s6  ;;  %v688_v25 = vmul.f32 %v687_v21, %v592_v62 }
 0x798   :  { %v691_v22 = vpop.permute.xlu0 %690 }
 0x799   :  { %v693_v24 = vmul.f32 %v691_v22, %v687_v21 }
 0x79b   :  { %695 = vrot.lane.b32.xlu1 %v693_v24, %s6537_s30 }
 0x80d   :  { %v696_v26 = vpop.permute.xlu1 %695 }
 0x80e   :  { %v698_v27 = vadd.f32 %v696_v26, %v688_v25 }
 0x810   :  { %6056 = vtanh.f32 %v698_v27 }
 0x81a   :  { %v6057_v28 = vpop.eup %6056 }
 0x81b   :  { %701 = vrot.lane.b32.xlu0 %v6057_v28, %s6536_s6 }
 0x88d   :  { %v702_v29 = vpop.permute.xlu0 %701 }
 0x88e   :  { %v704_v30 = vmul.f32 %v702_v29, %v687_v21 }
 0x890   :  { %706 = vrot.lane.b32.xlu1 %v704_v30, %s6537_s30 }
 0x902   :  { %v707_v31 = vpop.permute.xlu1 %706 }
 0x903   :  { %710 = vst.msk [vmem:[#allocation2 + $0x10] sm:$0xff] %vm394_vm5, %v707_v31  ;;  %5319 = vmatmul.mubr.msk.f32.vlgmr.msra.gmra.mrb[6].mxu1 %vm394_vm5, %v707_v31 }
 0x904   :  { %5801 = vmatpush3.bf16.msra.mxu1 %v6748_v12  ;;  %5329 = vmatprep.mubr.msk.f32.mxu1 %vm6534_vm0, %v6535_v3 }
 0x905   :  { %5802 = vmatprep.subr.bf16.mxu1 %v6533_v2 }
 0x908   :  { %5804 = vmatpush3.bf16.msra.mxu1 %v6755_v18 }
 0x909   :  { %5805 = vmatprep.subr.bf16.mxu1 %v6533_v2 }
 0x9d6   :  { %v781_v33 = vpop.f32.mrb[6].mxu1 }
 0x9d7   :  { %v785_v35 = vadd.f32 %v781_v33, %v310_v32  ;;  %v5320_v36 = vpop.f32.mrb[7].mxu1 }
 0x9d8   :  { %v157_v36 = vld [vmem:[%s7793_s0 + $0x38] sm:$0xff] }
 0x9d9   :  { %v787_v37 = vsub.f32 0.0, %v785_v35 }
 0x9db   :  { %v788_v38 = vmul.f32 1.442695, %v787_v37 }
 0x9dd   :  { %6058 = vpow2.f32 %v788_v38 }
 0x9de   :  { %6060 = vtanh.f32 %v785_v35  ;;  %v156_v35 = vld [vmem:[%s7793_s0 + $0x30] sm:$0xff] }
 0x9df   :  { %5262 = vmatprep.mubr.msk.f32.mxu0 %vm179_vm1, %v156_v35 }
 0x9e0   :  { %5263 = vmatmul.mubr.msk.f32.gmra.mrb[6].mxu0 %vm179_vm1, %v157_v36 }
 0x9e7   :  { %v6059_v39 = vpop.eup %6058 }
 0x9e8   :  { %v790_v40 = vadd.f32 1.0, %v6059_v39  ;;  %v6061_v41 = vpop.eup %6060 }
 0x9ea   :  { %6062 = vrcp.f32 %v790_v40 }
 0x9f4   :  { %v6063_v42 = vpop.eup %6062 }
 0x9f5   :  { %v793_v43 = vsel %vm6779_vm4, %v6061_v41, %v6063_v42 }
 0x9f6   :  { %796 = vrot.lane.b32.xlu0 %v793_v43, %s6536_s6  ;;  %v794_v46 = vmul.f32 %v793_v43, %v698_v27 }
 0xa68   :  { %v797_v44 = vpop.permute.xlu0 %796 }
 0xa69   :  { %v799_v45 = vmul.f32 %v797_v44, %v793_v43 }
 0xa6b   :  { %801 = vrot.lane.b32.xlu1 %v799_v45, %s6537_s30 }
 0xab3   :  { %v6888_v40 = vpop.f32.mrb[6].mxu0 }
 0xab4   :  { %v324_v41 = vpop.f32.mrb[7].mxu0 }
 0xadd   :  { %v802_v47 = vpop.permute.xlu1 %801 }
 0xade   :  { %v804_v48 = vadd.f32 %v802_v47, %v794_v46 }
 0xae0   :  { %6064 = vtanh.f32 %v804_v48 }
 0xaea   :  { %v6065_v51 = vpop.eup %6064 }
 0xaeb   :  { %807 = vrot.lane.b32.xlu0 %v6065_v51, %s6536_s6 }
 0xb5d   :  { %v808_v52 = vpop.permute.xlu0 %807 }
 0xb5e   :  { %v810_v53 = vmul.f32 %v808_v52, %v793_v43  ;;  %v325_v43 = vadd.f32 %v6776_v23, %v324_v41 }
 0xb60   :  { %812 = vrot.lane.b32.xlu1 %v810_v53, %s6537_s30 }
 0xbd2   :  { %v813_v56 = vpop.permute.xlu1 %812 }
 0xbd3   :  { %816 = vst.msk [vmem:[#allocation2 + $0x18] sm:$0xff] %vm394_vm5, %v813_v56  ;;  %5330 = vmatmul.mubr.msk.f32.vlgmr.msra.gmra.mrb[8].mxu1 %vm394_vm5, %v813_v56 }
 0xbd4   :  { %5807 = vmatpush3.bf16.msra.mxu1 %v6748_v12  ;;  %5340 = vmatprep.mubr.msk.f32.mxu1 %vm6534_vm0, %v6535_v3 }
 0xbd5   :  { %5808 = vmatprep.subr.bf16.mxu1 %v6533_v2 }
 0xbd8   :  { %5810 = vmatpush3.bf16.msra.mxu1 %v6755_v18 }
 0xbd9   :  { %5811 = vmatprep.subr.bf16.mxu1 %v6533_v2 }
 0xca6   :  { %v887_v58 = vpop.f32.mrb[8].mxu1 }
 0xca7   :  { %v891_v59 = vadd.f32 %v887_v58, %v315_v57  ;;  %v5331_v60 = vpop.f32.mrb[9].mxu1 }
 0xca8   :  { %v159_v60 = vld [vmem:[%s7793_s0 + $0x48] sm:$0xff] }
 0xca9   :  { %v893_v61 = vsub.f32 0.0, %v891_v59 }
 0xcab   :  { %v894_v62 = vmul.f32 1.442695, %v893_v61  ;;  %v160_v61 = vld [vmem:[%s7793_s0 + $0x50] sm:$0xff] }
 0xcad   :  { %6066 = vpow2.f32 %v894_v62  ;;  %v161_v62 = vld [vmem:[%s7793_s0 + $0x58] sm:$0xff] }
 0xcae   :  { %6068 = vtanh.f32 %v891_v59  ;;  %v158_v59 = vld [vmem:[%s7793_s0 + $0x40] sm:$0xff] }
 0xcaf   :  { %5265 = vmatprep.mubr.msk.f32.mxu0 %vm179_vm1, %v158_v59 }
 0xcb0   :  { %5266 = vmatmul.mubr.msk.f32.gmra.mrb[8].mxu0 %vm179_vm1, %v159_v60 }
 0xcb1   :  { %5268 = vmatprep.mubr.msk.f32.mxu0 %vm179_vm1, %v160_v61 }
 0xcb4   :  { %5269 = vmatmul.mubr.msk.f32.gmra.mrb[10].mxu0 %vm179_vm1, %v161_v62 }
 0xcb7   :  { %v6067_v63 = vpop.eup %6066 }
 0xcb8   :  { %v896_v0 = vadd.f32 1.0, %v6067_v63  ;;  %v6069_v1 = vpop.eup %6068  ;;  %v162_v63 = vld [vmem:[%s7793_s0 + $0x60] sm:$0xff] }
 0xcb9   :  { %5271 = vmatprep.mubr.msk.f32.mxu0 %vm179_vm1, %v162_v63 }
 0xcba   :  { %6070 = vrcp.f32 %v896_v0  ;;  %v163_v0 = vld [vmem:[%s7793_s0 + $0x68] sm:$0xff] }
 0xcbb   :  { %5272 = vmatmul.mubr.msk.f32.gmra.mrb[12].mxu0 %vm179_vm1, %v163_v0 }
 0xcc4   :  { %v6071_v4 = vpop.eup %6070 }
 0xcc5   :  { %v899_v5 = vsel %vm6779_vm4, %v6069_v1, %v6071_v4  ;;  %v164_v1 = vld [vmem:[%s7793_s0 + $0x70] sm:$0xff] }
 0xcc6   :  { %902 = vrot.lane.b32.xlu0 %v899_v5, %s6536_s6  ;;  %v900_v8 = vmul.f32 %v899_v5, %v804_v48  ;;  %5274 = vmatprep.mubr.msk.f32.mxu0 %vm179_vm1, %v164_v1 }
 0xd38   :  { %v903_v6 = vpop.permute.xlu0 %902 }
 0xd39   :  { %v905_v7 = vmul.f32 %v903_v6, %v899_v5 }
 0xd3b   :  { %907 = vrot.lane.b32.xlu1 %v905_v7, %s6537_s30 }
 0xdad   :  { %v908_v9 = vpop.permute.xlu1 %907 }
 0xdae   :  { %v910_v10 = vadd.f32 %v908_v9, %v900_v8  ;;  %v6939_v8 = vpop.f32.mrb[8].mxu0 }
 0xdaf   :  { %v334_v9 = vpop.f32.mrb[9].mxu0  ;;  %v340_v61 = vadd.f32 %v6939_v8, %v6776_v23 }
 0xdb0   :  { %6072 = vtanh.f32 %v910_v10  ;;  %v335_v41 = vadd.f32 %v6776_v23, %v334_v9 }
 0xdba   :  { %v6073_v11 = vpop.eup %6072 }
 0xdbb   :  { %913 = vrot.lane.b32.xlu0 %v6073_v11, %s6536_s6 }
 0xe2d   :  { %v914_v13 = vpop.permute.xlu0 %913 }
 0xe2e   :  { %v916_v14 = vmul.f32 %v914_v13, %v899_v5  ;;  %v165_v5 = vld [vmem:[%s7793_s0 + $0x78] sm:$0xff] }
 0xe2f   :  { %5275 = vmatmul.mubr.msk.f32.gmra.mrb[14].mxu0 %vm179_vm1, %v165_v5 }
 0xe30   :  { %918 = vrot.lane.b32.xlu1 %v916_v14, %s6537_s30  ;;  %5362 = vmatprep.mubr.msk.f32.mxu0 %vm6534_vm0, %v6535_v3 }
 0xea2   :  { %v919_v15 = vpop.permute.xlu1 %918 }
 0xea3   :  { %922 = vst.msk [vmem:[#allocation2 + $0x20] sm:$0xff] %vm394_vm5, %v919_v15  ;;  %5341 = vmatmul.mubr.msk.f32.vlgmr.msra.gmra.mrb[10].mxu1 %vm394_vm5, %v919_v15 }
 0xea4   :  { %5813 = vmatpush3.bf16.msra.mxu1 %v6748_v12  ;;  %5351 = vmatprep.mubr.msk.f32.mxu1 %vm6534_vm0, %v6535_v3 }
 0xea5   :  { %5814 = vmatprep.subr.bf16.mxu1 %v6533_v2 }
 0xea8   :  { %5816 = vmatpush3.bf16.msra.mxu1 %v6755_v18 }
 0xea9   :  { %5823 = vmatprep.subr.bf16.mxu1 %v6533_v2 }
 0xf76   :  { %v993_v17 = vpop.f32.mrb[10].mxu1 }
 0xf77   :  { %v997_v19 = vadd.f32 %v993_v17, %v320_v16  ;;  %v5342_v20 = vpop.f32.mrb[11].mxu1 }
 0xf79   :  { %v999_v21 = vsub.f32 0.0, %v997_v19 }
 0xf7b   :  { %v1000_v22 = vmul.f32 1.442695, %v999_v21 }
 0xf7d   :  { %6074 = vpow2.f32 %v1000_v22 }
 0xf7e   :  { %6076 = vtanh.f32 %v997_v19  ;;  %v330_v19 = vadd.f32 %v6888_v40, %v6776_v23 }
 0xf87   :  { %v6075_v24 = vpop.eup %6074 }
 0xf88   :  { %v1002_v25 = vadd.f32 1.0, %v6075_v24  ;;  %v6077_v26 = vpop.eup %6076 }
 0xf8a   :  { %6078 = vrcp.f32 %v1002_v25 }
 0xf94   :  { %v6079_v27 = vpop.eup %6078 }
 0xf95   :  { %v1005_v28 = vsel %vm6779_vm4, %v6077_v26, %v6079_v27 }
 0xf96   :  { %1008 = vrot.lane.b32.xlu0 %v1005_v28, %s6536_s6  ;;  %v1006_v31 = vmul.f32 %v1005_v28, %v910_v10  ;;  %v6941_v10 = vpop.f32.mrb[10].mxu0 }
 0xf97   :  { %v6943_v11 = vpop.f32.mrb[11].mxu0 }
 0xf98   :  { %v6945_v13 = vpop.f32.mrb[12].mxu0 }
 0xf99   :  { %v6947_v14 = vpop.f32.mrb[13].mxu0 }
 0xf9a   :  { %v6949_v15 = vpop.f32.mrb[14].mxu0 }
 0xf9b   :  { %v6951_v16 = vpop.f32.mrb[15].mxu0 }
0x1008   :  { %v1009_v29 = vpop.permute.xlu0 %1008 }
0x1009   :  { %v1011_v30 = vmul.f32 %v1009_v29, %v1005_v28 }
0x100b   :  { %1013 = vrot.lane.b32.xlu1 %v1011_v30, %s6537_s30 }
0x107d   :  { %v1014_v32 = vpop.permute.xlu1 %1013 }
0x107e   :  { %v1016_v33 = vadd.f32 %v1014_v32, %v1006_v31 }
0x1080   :  { %6080 = vtanh.f32 %v1016_v33 }
0x108a   :  { %v6081_v37 = vpop.eup %6080 }
0x108b   :  { %1019 = vrot.lane.b32.xlu0 %v6081_v37, %s6536_s6 }
0x10fd   :  { %v1020_v38 = vpop.permute.xlu0 %1019 }
0x10fe   :  { %v1022_v39 = vmul.f32 %v1020_v38, %v1005_v28 }
0x1100   :  { %1024 = vrot.lane.b32.xlu1 %v1022_v39, %s6537_s30 }
0x1172   :  { %v1025_v42 = vpop.permute.xlu1 %1024 }
0x1173   :  { %1028 = vst.msk [vmem:[#allocation2 + $0x28] sm:$0xff] %vm394_vm5, %v1025_v42  ;;  %5352 = vmatmul.mubr.msk.f32.vlgmr.msra.gmra.mrb[12].mxu1 %vm394_vm5, %v1025_v42 }
0x1174   :  { %5825 = vmatpush3.bf16.msra.mxu1 %v6748_v12  ;;  %5373 = vmatprep.mubr.msk.f32.mxu1 %vm6534_vm0, %v6535_v3 }
0x1175   :  { %5826 = vmatprep.subr.bf16.mxu1 %v6533_v2 }
0x1178   :  { %5828 = vmatpush3.bf16.msra.mxu1 %v6755_v18 }
0x1179   :  { %5835 = vmatprep.subr.bf16.mxu1 %v6533_v2 }
0x1246   :  { %v1099_v44 = vpop.f32.mrb[12].mxu1 }
0x1247   :  { %v1103_v45 = vadd.f32 %v1099_v44, %v325_v43  ;;  %v5353_v46 = vpop.f32.mrb[13].mxu1 }
0x1249   :  { %v1105_v47 = vsub.f32 0.0, %v1103_v45 }
0x124b   :  { %v1106_v48 = vmul.f32 1.442695, %v1105_v47 }
0x124d   :  { %6082 = vpow2.f32 %v1106_v48 }
0x124e   :  { %6084 = vtanh.f32 %v1103_v45 }
0x1257   :  { %v6083_v49 = vpop.eup %6082 }
0x1258   :  { %v1108_v50 = vadd.f32 1.0, %v6083_v49  ;;  %v6085_v51 = vpop.eup %6084 }
0x125a   :  { %6086 = vrcp.f32 %v1108_v50 }
0x1264   :  { %v6087_v52 = vpop.eup %6086 }
0x1265   :  { %v1111_v53 = vsel %vm6779_vm4, %v6085_v51, %v6087_v52 }
0x1266   :  { %1114 = vrot.lane.b32.xlu0 %v1111_v53, %s6536_s6  ;;  %v1112_v56 = vmul.f32 %v1111_v53, %v1016_v33 }
0x12d8   :  { %v1115_v54 = vpop.permute.xlu0 %1114 }
0x12d9   :  { %v1117_v55 = vmul.f32 %v1115_v54, %v1111_v53 }
0x12db   :  { %1119 = vrot.lane.b32.xlu1 %v1117_v55, %s6537_s30 }
0x134d   :  { %v1120_v57 = vpop.permute.xlu1 %1119 }
0x134e   :  { %v1122_v58 = vadd.f32 %v1120_v57, %v1112_v56 }
0x1350   :  { %6088 = vtanh.f32 %v1122_v58 }
0x135a   :  { %v6089_v4 = vpop.eup %6088 }
0x135b   :  { %1125 = vrot.lane.b32.xlu0 %v6089_v4, %s6536_s6 }
0x13cd   :  { %v1126_v6 = vpop.permute.xlu0 %1125 }
0x13ce   :  { %v1128_v7 = vmul.f32 %v1126_v6, %v1111_v53 }
0x13d0   :  { %1130 = vrot.lane.b32.xlu1 %v1128_v7, %s6537_s30 }
0x1442   :  { %v1131_v17 = vpop.permute.xlu1 %1130 }
0x1443   :  { %1134 = vst.msk [vmem:[#allocation2 + $0x30] sm:$0xff] %vm394_vm5, %v1131_v17  ;;  %5363 = vmatmul.mubr.msk.f32.vlgmr.msra.gmra.mrb[16].mxu0 %vm394_vm5, %v1131_v17 }
0x1444   :  { %5831 = vmatpush3.bf16.msra.mxu0 %v6748_v12  ;;  %5384 = vmatprep.mubr.msk.f32.mxu0 %vm6534_vm0, %v6535_v3 }
0x1445   :  { %5832 = vmatprep.subr.bf16.mxu0 %v6533_v2 }
0x1448   :  { %5834 = vmatpush3.bf16.msra.mxu0 %v6755_v18 }
0x1449   :  { %5841 = vmatprep.subr.bf16.mxu0 %v6533_v2 }
0x1516   :  { %v1205_v20 = vpop.f32.mrb[16].mxu0 }
0x1517   :  { %v1209_v21 = vadd.f32 %v1205_v20, %v330_v19  ;;  %v5364_v22 = vpop.f32.mrb[17].mxu0 }
0x1519   :  { %v1211_v24 = vsub.f32 0.0, %v1209_v21 }
0x151b   :  { %v1212_v25 = vmul.f32 1.442695, %v1211_v24 }
0x151d   :  { %6090 = vpow2.f32 %v1212_v25 }
0x151e   :  { %6092 = vtanh.f32 %v1209_v21 }
0x1527   :  { %v6091_v26 = vpop.eup %6090 }
0x1528   :  { %v1214_v27 = vadd.f32 1.0, %v6091_v26  ;;  %v6093_v28 = vpop.eup %6092 }
0x152a   :  { %6094 = vrcp.f32 %v1214_v27 }
0x1534   :  { %v6095_v29 = vpop.eup %6094 }
0x1535   :  { %v1217_v30 = vsel %vm6779_vm4, %v6093_v28, %v6095_v29  ;;  %v345_v28 = vadd.f32 %v6776_v23, %v6943_v11 }
0x1536   :  { %1220 = vrot.lane.b32.xlu0 %v1217_v30, %s6536_s6  ;;  %v1218_v33 = vmul.f32 %v1217_v30, %v1122_v58 }
0x15a8   :  { %v1221_v31 = vpop.permute.xlu0 %1220 }
0x15a9   :  { %v1223_v32 = vmul.f32 %v1221_v31, %v1217_v30 }
0x15ab   :  { %1225 = vrot.lane.b32.xlu1 %v1223_v32, %s6537_s30 }
0x161d   :  { %v1226_v35 = vpop.permute.xlu1 %1225 }
0x161e   :  { %v1228_v36 = vadd.f32 %v1226_v35, %v1218_v33 }
0x1620   :  { %6096 = vtanh.f32 %v1228_v36 }
0x162a   :  { %v6097_v37 = vpop.eup %6096 }
0x162b   :  { %1231 = vrot.lane.b32.xlu0 %v6097_v37, %s6536_s6 }
0x169d   :  { %v1232_v38 = vpop.permute.xlu0 %1231 }
0x169e   :  { %v1234_v39 = vmul.f32 %v1232_v38, %v1217_v30 }
0x16a0   :  { %1236 = vrot.lane.b32.xlu1 %v1234_v39, %s6537_s30 }
0x1712   :  { %v1237_v40 = vpop.permute.xlu1 %1236 }
0x1713   :  { %1240 = vst.msk [vmem:[#allocation2 + $0x38] sm:$0xff] %vm394_vm5, %v1237_v40  ;;  %5374 = vmatmul.mubr.msk.f32.vlgmr.msra.gmra.mrb[14].mxu1 %vm394_vm5, %v1237_v40 }
0x1714   :  { %5837 = vmatpush3.bf16.msra.mxu1 %v6748_v12  ;;  %5395 = vmatprep.mubr.msk.f32.mxu1 %vm6534_vm0, %v6535_v3 }
0x1715   :  { %5838 = vmatprep.subr.bf16.mxu1 %v6533_v2 }
0x1718   :  { %5840 = vmatpush3.bf16.msra.mxu1 %v6755_v18 }
0x1719   :  { %5847 = vmatprep.subr.bf16.mxu1 %v6533_v2 }
0x17e6   :  { %v1311_v42 = vpop.f32.mrb[14].mxu1 }
0x17e7   :  { %v1315_v43 = vadd.f32 %v1311_v42, %v335_v41  ;;  %v5375_v44 = vpop.f32.mrb[15].mxu1 }
0x17e9   :  { %v1317_v45 = vsub.f32 0.0, %v1315_v43 }
0x17eb   :  { %v1318_v46 = vmul.f32 1.442695, %v1317_v45 }
0x17ed   :  { %6098 = vpow2.f32 %v1318_v46 }
0x17ee   :  { %6100 = vtanh.f32 %v1315_v43 }
0x17f7   :  { %v6099_v47 = vpop.eup %6098 }
0x17f8   :  { %v1320_v48 = vadd.f32 1.0, %v6099_v47  ;;  %v6101_v49 = vpop.eup %6100 }
0x17fa   :  { %6102 = vrcp.f32 %v1320_v48  ;;  %v350_v48 = vadd.f32 %v6941_v10, %v6776_v23 }
0x1804   :  { %v6103_v50 = vpop.eup %6102 }
0x1805   :  { %v1323_v51 = vsel %vm6779_vm4, %v6101_v49, %v6103_v50 }
0x1806   :  { %1326 = vrot.lane.b32.xlu0 %v1323_v51, %s6536_s6  ;;  %v1324_v54 = vmul.f32 %v1323_v51, %v1228_v36 }
0x1878   :  { %v1327_v52 = vpop.permute.xlu0 %1326 }
0x1879   :  { %v1329_v53 = vmul.f32 %v1327_v52, %v1323_v51 }
0x187b   :  { %1331 = vrot.lane.b32.xlu1 %v1329_v53, %s6537_s30 }
0x18ed   :  { %v1332_v55 = vpop.permute.xlu1 %1331 }
0x18ee   :  { %v1334_v56 = vadd.f32 %v1332_v55, %v1324_v54 }
0x18f0   :  { %6104 = vtanh.f32 %v1334_v56 }
0x18fa   :  { %v6105_v57 = vpop.eup %6104 }
0x18fb   :  { %1337 = vrot.lane.b32.xlu0 %v6105_v57, %s6536_s6 }
0x196d   :  { %v1338_v58 = vpop.permute.xlu0 %1337 }
0x196e   :  { %v1340_v59 = vmul.f32 %v1338_v58, %v1323_v51 }
0x1970   :  { %1342 = vrot.lane.b32.xlu1 %v1340_v59, %s6537_s30 }
0x19e2   :  { %v1343_v60 = vpop.permute.xlu1 %1342 }
0x19e3   :  { %1346 = vst.msk [vmem:[#allocation2 + $0x40] sm:$0xff] %vm394_vm5, %v1343_v60  ;;  %5385 = vmatmul.mubr.msk.f32.vlgmr.msra.gmra.mrb[18].mxu0 %vm394_vm5, %v1343_v60 }
0x19e4   :  { %5843 = vmatpush3.bf16.msra.mxu0 %v6748_v12  ;;  %5406 = vmatprep.mubr.msk.f32.mxu0 %vm6534_vm0, %v6535_v3 }
0x19e5   :  { %5844 = vmatprep.subr.bf16.mxu0 %v6533_v2 }
0x19e8   :  { %5846 = vmatpush3.bf16.msra.mxu0 %v6755_v18 }
0x19e9   :  { %5853 = vmatprep.subr.bf16.mxu0 %v6533_v2 }
0x1ab6   :  { %v1417_v62 = vpop.f32.mrb[18].mxu0 }
0x1ab7   :  { %v1421_v63 = vadd.f32 %v1417_v62, %v340_v61  ;;  %v5386_v0 = vpop.f32.mrb[19].mxu0 }
0x1ab9   :  { %v1423_v1 = vsub.f32 0.0, %v1421_v63 }
0x1abb   :  { %v1424_v4 = vmul.f32 1.442695, %v1423_v1 }
0x1abd   :  { %6106 = vpow2.f32 %v1424_v4 }
0x1abe   :  { %6108 = vtanh.f32 %v1421_v63 }
0x1ac7   :  { %v6107_v5 = vpop.eup %6106 }
0x1ac8   :  { %v1426_v6 = vadd.f32 1.0, %v6107_v5  ;;  %v6109_v7 = vpop.eup %6108  ;;  %v355_v5 = vadd.f32 %v6776_v23, %v6947_v14 }
0x1aca   :  { %6110 = vrcp.f32 %v1426_v6 }
0x1ad4   :  { %v6111_v9 = vpop.eup %6110 }
0x1ad5   :  { %v1429_v17 = vsel %vm6779_vm4, %v6109_v7, %v6111_v9 }
0x1ad6   :  { %1432 = vrot.lane.b32.xlu0 %v1429_v17, %s6536_s6  ;;  %v1430_v8 = vmul.f32 %v1429_v17, %v1334_v56 }
0x1b48   :  { %v1433_v19 = vpop.permute.xlu0 %1432 }
0x1b49   :  { %v1435_v20 = vmul.f32 %v1433_v19, %v1429_v17 }
0x1b4b   :  { %1437 = vrot.lane.b32.xlu1 %v1435_v20, %s6537_s30 }
0x1bbd   :  { %v1438_v21 = vpop.permute.xlu1 %1437 }
0x1bbe   :  { %v1440_v22 = vadd.f32 %v1438_v21, %v1430_v8 }
0x1bc0   :  { %6112 = vtanh.f32 %v1440_v22 }
0x1bca   :  { %v6113_v24 = vpop.eup %6112 }
0x1bcb   :  { %1443 = vrot.lane.b32.xlu0 %v6113_v24, %s6536_s6 }
0x1c3d   :  { %v1444_v25 = vpop.permute.xlu0 %1443 }
0x1c3e   :  { %v1446_v26 = vmul.f32 %v1444_v25, %v1429_v17 }
0x1c40   :  { %1448 = vrot.lane.b32.xlu1 %v1446_v26, %s6537_s30 }
0x1cb2   :  { %v1449_v27 = vpop.permute.xlu1 %1448 }
0x1cb3   :  { %1452 = vst.msk [vmem:[#allocation2 + $0x48] sm:$0xff] %vm394_vm5, %v1449_v27  ;;  %5396 = vmatmul.mubr.msk.f32.vlgmr.msra.gmra.mrb[16].mxu1 %vm394_vm5, %v1449_v27 }
0x1cb4   :  { %5849 = vmatpush3.bf16.msra.mxu1 %v6748_v12  ;;  %5417 = vmatprep.mubr.msk.f32.mxu1 %vm6534_vm0, %v6535_v3 }
0x1cb5   :  { %5850 = vmatprep.subr.bf16.mxu1 %v6533_v2 }
0x1cb8   :  { %5852 = vmatpush3.bf16.msra.mxu1 %v6755_v18 }
0x1cb9   :  { %5859 = vmatprep.subr.bf16.mxu1 %v6533_v2 }
0x1d86   :  { %v1523_v29 = vpop.f32.mrb[16].mxu1 }
0x1d87   :  { %v1527_v30 = vadd.f32 %v1523_v29, %v345_v28  ;;  %v5397_v31 = vpop.f32.mrb[17].mxu1 }
0x1d89   :  { %v1529_v32 = vsub.f32 0.0, %v1527_v30 }
0x1d8b   :  { %v1530_v33 = vmul.f32 1.442695, %v1529_v32 }
0x1d8d   :  { %6114 = vpow2.f32 %v1530_v33  ;;  %v360_v33 = vadd.f32 %v6945_v13, %v6776_v23 }
0x1d8e   :  { %6116 = vtanh.f32 %v1527_v30 }
0x1d97   :  { %v6115_v35 = vpop.eup %6114 }
0x1d98   :  { %v1532_v36 = vadd.f32 1.0, %v6115_v35  ;;  %v6117_v37 = vpop.eup %6116 }
0x1d9a   :  { %6118 = vrcp.f32 %v1532_v36 }
0x1da4   :  { %v6119_v38 = vpop.eup %6118 }
0x1da5   :  { %v1535_v39 = vsel %vm6779_vm4, %v6117_v37, %v6119_v38 }
0x1da6   :  { %1538 = vrot.lane.b32.xlu0 %v1535_v39, %s6536_s6  ;;  %v1536_v11 = vmul.f32 %v1535_v39, %v1440_v22 }
0x1e18   :  { %v1539_v40 = vpop.permute.xlu0 %1538 }
0x1e19   :  { %v1541_v41 = vmul.f32 %v1539_v40, %v1535_v39 }
0x1e1b   :  { %1543 = vrot.lane.b32.xlu1 %v1541_v41, %s6537_s30 }
0x1e8d   :  { %v1544_v42 = vpop.permute.xlu1 %1543 }
0x1e8e   :  { %v1546_v43 = vadd.f32 %v1544_v42, %v1536_v11 }
0x1e90   :  { %6120 = vtanh.f32 %v1546_v43 }
0x1e9a   :  { %v6121_v44 = vpop.eup %6120 }
0x1e9b   :  { %1549 = vrot.lane.b32.xlu0 %v6121_v44, %s6536_s6 }
0x1f0d   :  { %v1550_v45 = vpop.permute.xlu0 %1549 }
0x1f0e   :  { %v1552_v46 = vmul.f32 %v1550_v45, %v1535_v39  ;;  %v2105_v45 = vld [vmem:[#allocation11] sm:$0xff] }
0x1f10   :  { %1554 = vrot.lane.b32.xlu1 %v1552_v46, %s6537_s30  ;;  %v2106_v46 = vld [vmem:[#allocation11 + $0x8] sm:$0xff] }
0x1f82   :  { %v1555_v47 = vpop.permute.xlu1 %1554 }
0x1f83   :  { %1558 = vst.msk [vmem:[#allocation2 + $0x50] sm:$0xff] %vm394_vm5, %v1555_v47  ;;  %5407 = vmatmul.mubr.msk.f32.vlgmr.msra.gmra.mrb[20].mxu0 %vm394_vm5, %v1555_v47  ;;  %v5871_v47 = vpack.c.bf16 %v2106_v46, %v2105_v45  ;;  %v2327_v45 = vld [vmem:[#allocation13 + $0x10] sm:$0xff]  ;;  %v2328_v46 = vld [vmem:[#allocation13 + $0x18] sm:$0xff] }
0x1f84   :  { %5855 = vmatpush3.bf16.msra.mxu0 %v6748_v12  ;;  %5428 = vmatprep.mubr.msk.f32.mxu0 %vm6534_vm0, %v6535_v3 }
0x1f85   :  { %5856 = vmatprep.subr.bf16.mxu0 %v6533_v2 }
0x1f88   :  { %5858 = vmatpush3.bf16.msra.mxu0 %v6755_v18 }
0x1f89   :  { %5865 = vmatprep.subr.bf16.mxu0 %v6533_v2 }
0x2056   :  { %v1629_v49 = vpop.f32.mrb[20].mxu0 }
0x2057   :  { %v1633_v50 = vadd.f32 %v1629_v49, %v350_v48  ;;  %v5408_v51 = vpop.f32.mrb[21].mxu0 }
0x2058   :  { %v2107_v51 = vld [vmem:[#allocation11 + $0x10] sm:$0xff] }
0x2059   :  { %v1635_v52 = vsub.f32 0.0, %v1633_v50 }
0x205b   :  { %v1636_v53 = vmul.f32 1.442695, %v1635_v52  ;;  %v2108_v52 = vld [vmem:[#allocation11 + $0x18] sm:$0xff] }
0x205d   :  { %6122 = vpow2.f32 %v1636_v53  ;;  %v5875_v53 = vpack.c.bf16 %v2108_v52, %v2107_v51 }
0x205e   :  { %6124 = vtanh.f32 %v1633_v50 }
0x2067   :  { %v6123_v54 = vpop.eup %6122 }
0x2068   :  { %v1638_v55 = vadd.f32 1.0, %v6123_v54  ;;  %v6125_v56 = vpop.eup %6124 }
0x206a   :  { %6126 = vrcp.f32 %v1638_v55  ;;  %v2089_v55 = vld [vmem:[#allocation2] sm:$0xff] }
0x2074   :  { %v6127_v57 = vpop.eup %6126 }
0x2075   :  { %v1641_v58 = vsel %vm6779_vm4, %v6125_v56, %v6127_v57  ;;  %v2090_v56 = vld [vmem:[#allocation2 + $0x8] sm:$0xff]  ;;  %v2091_v57 = vld [vmem:[#allocation2 + $0x10] sm:$0xff] }
0x2076   :  { %1644 = vrot.lane.b32.xlu0 %v1641_v58, %s6536_s6  ;;  %v1642_v10 = vmul.f32 %v1641_v58, %v1546_v43 }
0x20e8   :  { %v1645_v59 = vpop.permute.xlu0 %1644 }
0x20e9   :  { %v1647_v60 = vmul.f32 %v1645_v59, %v1641_v58  ;;  %v2093_v59 = vld [vmem:[#allocation2 + $0x20] sm:$0xff] }
0x20eb   :  { %1649 = vrot.lane.b32.xlu1 %v1647_v60, %s6537_s30  ;;  %v2094_v60 = vld [vmem:[#allocation2 + $0x28] sm:$0xff] }
0x215d   :  { %v1650_v61 = vpop.permute.xlu1 %1649 }
0x215e   :  { %v1652_v62 = vadd.f32 %v1650_v61, %v1642_v10  ;;  %v2095_v10 = vld [vmem:[#allocation2 + $0x30] sm:$0xff]  ;;  %v2096_v61 = vld [vmem:[#allocation2 + $0x38] sm:$0xff] }
0x2160   :  { %6128 = vtanh.f32 %v1652_v62 }
0x216a   :  { %v6129_v63 = vpop.eup %6128 }
0x216b   :  { %1655 = vrot.lane.b32.xlu0 %v6129_v63, %s6536_s6  ;;  %v2098_v63 = vld [vmem:[#allocation2 + $0x48] sm:$0xff] }
0x21dd   :  { %v1656_v0 = vpop.permute.xlu0 %1655 }
0x21de   :  { %v1658_v1 = vmul.f32 %v1656_v0, %v1641_v58  ;;  %v2092_v58 = vld [vmem:[#allocation2 + $0x18] sm:$0xff]  ;;  %v2099_v0 = vld [vmem:[#allocation2 + $0x50] sm:$0xff] }
0x21e0   :  { %1660 = vrot.lane.b32.xlu1 %v1658_v1, %s6537_s30 }
0x2252   :  { %v1661_v4 = vpop.permute.xlu1 %1660 }
0x2253   :  { %1664 = vst.msk [vmem:[#allocation2 + $0x58] sm:$0xff] %vm394_vm5, %v1661_v4  ;;  %5418 = vmatmul.mubr.msk.f32.vlgmr.msra.gmra.mrb[18].mxu1 %vm394_vm5, %v1661_v4 }
0x2254   :  { %5861 = vmatpush3.bf16.msra.mxu1 %v6748_v12  ;;  %5439 = vmatprep.mubr.msk.f32.mxu1 %vm6534_vm0, %v6535_v3 }
0x2255   :  { %5862 = vmatprep.subr.bf16.mxu1 %v6533_v2 }
0x2258   :  { %5864 = vmatpush3.bf16.msra.mxu1 %v6755_v18 }
0x2259   :  { %5872 = vmatprep.subr.bf16.mxu1 %v5871_v47 }
0x225a   :  { %v2100_v1 = vld [vmem:[#allocation2 + $0x58] sm:$0xff] }
0x2326   :  { %v1735_v6 = vpop.f32.mrb[18].mxu1 }
0x2327   :  { %v1739_v7 = vadd.f32 %v1735_v6, %v355_v5  ;;  %v5419_v9 = vpop.f32.mrb[19].mxu1  ;;  %v7083_v6 = vld [vmem:[#allocation10] ss:$0 sm:$0xff] }
0x2328   :  { %v370_v51 = vadd.f32 %v7083_v6, %v6949_v15 }
0x2329   :  { %v1741_v17 = vsub.f32 0.0, %v1739_v7 }
0x232b   :  { %v1742_v19 = vmul.f32 1.442695, %v1741_v17 }
0x232d   :  { %6130 = vpow2.f32 %v1742_v19 }
0x232e   :  { %6132 = vtanh.f32 %v1739_v7  ;;  %v365_v7 = vadd.f32 %v7083_v6, %v6951_v16 }
0x2337   :  { %v6131_v20 = vpop.eup %6130 }
0x2338   :  { %v1744_v8 = vadd.f32 1.0, %v6131_v20  ;;  %v6133_v21 = vpop.eup %6132 }
0x233a   :  { %6134 = vrcp.f32 %v1744_v8 }
0x2344   :  { %v6135_v22 = vpop.eup %6134 }
0x2345   :  { %v1747_v24 = vsel %vm6779_vm4, %v6133_v21, %v6135_v22 }
0x2346   :  { %1750 = vrot.lane.b32.xlu0 %v1747_v24, %s6536_s6  ;;  %v1748_v14 = vmul.f32 %v1747_v24, %v1652_v62  ;;  %v2097_v62 = vld [vmem:[#allocation2 + $0x40] sm:$0xff] }
0x23b8   :  { %v1751_v25 = vpop.permute.xlu0 %1750 }
0x23b9   :  { %v1753_v26 = vmul.f32 %v1751_v25, %v1747_v24 }
0x23bb   :  { %1755 = vrot.lane.b32.xlu1 %v1753_v26, %s6537_s30 }
0x242d   :  { %v1756_v27 = vpop.permute.xlu1 %1755 }
0x242e   :  { %v1758_v28 = vadd.f32 %v1756_v27, %v1748_v14 }
0x2430   :  { %6136 = vtanh.f32 %v1758_v28 }
0x243a   :  { %v6137_v29 = vpop.eup %6136 }
0x243b   :  { %1761 = vrot.lane.b32.xlu0 %v6137_v29, %s6536_s6 }
0x24ad   :  { %v1762_v30 = vpop.permute.xlu0 %1761 }
0x24ae   :  { %v1764_v31 = vmul.f32 %v1762_v30, %v1747_v24 }
0x24b0   :  { %1766 = vrot.lane.b32.xlu1 %v1764_v31, %s6537_s30 }
0x2522   :  { %v1767_v32 = vpop.permute.xlu1 %1766 }
0x2523   :  { %1770 = vst.msk [vmem:[#allocation2 + $0x60] sm:$0xff] %vm394_vm5, %v1767_v32  ;;  %5429 = vmatmul.mubr.msk.f32.vlgmr.msra.gmra.mrb[22].mxu0 %vm394_vm5, %v1767_v32 }
0x2524   :  { %5867 = vmatpush3.bf16.msra.mxu0 %v6748_v12  ;;  %5450 = vmatprep.mubr.msk.f32.mxu0 %vm6534_vm0, %v6535_v3 }
0x2525   :  { %5868 = vmatprep.subr.bf16.mxu0 %v6533_v2 }
0x2528   :  { %5870 = vmatpush3.bf16.msra.mxu0 %v6755_v18 }
0x2529   :  { %5879 = vmatprep.subr.bf16.mxu0 %v6533_v2 }
0x252a   :  { %v2101_v4 = vld [vmem:[#allocation2 + $0x60] sm:$0xff] }
0x25f6   :  { %v1841_v35 = vpop.f32.mrb[22].mxu0 }
0x25f7   :  { %v1845_v36 = vadd.f32 %v1841_v35, %v360_v33  ;;  %v5430_v37 = vpop.f32.mrb[23].mxu0 }
0x25f9   :  { %v1847_v38 = vsub.f32 0.0, %v1845_v36 }
0x25fb   :  { %v1848_v39 = vmul.f32 1.442695, %v1847_v38 }
0x25fd   :  { %6138 = vpow2.f32 %v1848_v39 }
0x25fe   :  { %6140 = vtanh.f32 %v1845_v36 }
0x2607   :  { %v6139_v40 = vpop.eup %6138 }
0x2608   :  { %v1850_v12 = vadd.f32 1.0, %v6139_v40  ;;  %v6141_v41 = vpop.eup %6140 }
0x260a   :  { %6142 = vrcp.f32 %v1850_v12 }
0x2614   :  { %v6143_v11 = vpop.eup %6142 }
0x2615   :  { %v1853_v18 = vsel %vm6779_vm4, %v6141_v41, %v6143_v11 }
0x2616   :  { %1856 = vrot.lane.b32.xlu0 %v1853_v18, %s6536_s6  ;;  %v1854_v23 = vmul.f32 %v1853_v18, %v1758_v28 }
0x2688   :  { %v1857_v42 = vpop.permute.xlu0 %1856 }
0x2689   :  { %v1859_v43 = vmul.f32 %v1857_v42, %v1853_v18 }
0x268b   :  { %1861 = vrot.lane.b32.xlu1 %v1859_v43, %s6537_s30  ;;  %v2325_v43 = vld [vmem:[#allocation13] sm:$0xff] }
0x26fd   :  { %v1862_v13 = vpop.permute.xlu1 %1861 }
0x26fe   :  { %v7061_v44 = vadd.f32 %v1862_v13, %v1854_v23  ;;  %v2326_v23 = vld [vmem:[#allocation13 + $0x8] sm:$0xff] }
0x26ff   :  { %v7124_v13 = vpack.c.bf16 %v2326_v23, %v2325_v43 }
0x2700   :  { %6144 = vtanh.f32 %v7061_v44 }
0x270a   :  { %v6145_v48 = vpop.eup %6144 }
0x270b   :  { %1867 = vrot.lane.b32.xlu0 %v6145_v48, %s6536_s6 }
0x277d   :  { %v1868_v49 = vpop.permute.xlu0 %1867 }
0x277e   :  { %v1870_v50 = vmul.f32 %v1868_v49, %v1853_v18 }
0x2780   :  { %1872 = vrot.lane.b32.xlu1 %v1870_v50, %s6537_s30 }
0x27f2   :  { %v1873_v54 = vpop.permute.xlu1 %1872 }
0x27f3   :  { %1876 = vst.msk [vmem:[#allocation2 + $0x68] sm:$0xff] %vm394_vm5, %v1873_v54  ;;  %5440 = vmatmul.mubr.msk.f32.vlgmr.msra.gmra.mrb[20].mxu1 %vm394_vm5, %v1873_v54 }
0x27f4   :  { %5874 = vmatpush3.bf16.msra.mxu1 %v5871_v47  ;;  %5461 = vmatprep.mubr.msk.f32.mxu1 %vm394_vm5, %v2089_v55  ;;  %v7128_v47 = vpack.c.bf16 %v2328_v46, %v2327_v45  ;;  %v7153_v55 = vld [vmem:[#allocation14] ss:$0 sm:$0xff] }
0x27f5   :  { %5876 = vmatprep.subr.bf16.mxu1 %v5875_v53 }
0x27f8   :  { %5878 = vmatpush3.bf16.msra.mxu1 %v5875_v53 }
0x27f9   :  { %5903 = vmatprep.subr.bf16.mxu1 %v6533_v2 }
0x27fa   :  { %v2102_v5 = vld [vmem:[#allocation2 + $0x68] sm:$0xff] }
0x27fb   :  { %5462 = vmatmul.mubr.msk.f32.vlgmr.msra.gmra.mrb[22].mxu1 %vm394_vm5, %v2090_v56 }
0x27fc   :  { %5464 = vmatprep.mubr.msk.f32.mxu1 %vm394_vm5, %v2091_v57  ;;  %5905 = vmatpush3.bf16.msra.mxu1 %v7124_v13 }
0x27fd   :  { %5906 = vmatprep.subr.bf16.mxu1 %v6533_v2 }
0x27ff   :  { %5465 = vmatmul.mubr.msk.f32.gmra.mrb[24].mxu1 %vm394_vm5, %v2092_v58 }
0x2800   :  { %5467 = vmatprep.mubr.msk.f32.mxu1 %vm394_vm5, %v2093_v59  ;;  %5908 = vmatpush3.bf16.msra.mxu1 %v7128_v47 }
0x2801   :  { %5915 = vmatprep.subr.bf16.mxu1 %v6533_v2 }
0x2803   :  { %5468 = vmatmul.mubr.msk.f32.gmra.mrb[26].mxu1 %vm394_vm5, %v2094_v60 }
0x2804   :  { %5470 = vmatprep.mubr.msk.f32.mxu1 %vm394_vm5, %v2095_v10 }
0x2807   :  { %5471 = vmatmul.mubr.msk.f32.gmra.mrb[28].mxu1 %vm394_vm5, %v2096_v61 }
0x2808   :  { %5473 = vmatprep.mubr.msk.f32.mxu1 %vm394_vm5, %v2097_v62 }
0x280b   :  { %5474 = vmatmul.mubr.msk.f32.gmra.mrb[30].mxu1 %vm394_vm5, %v2098_v63 }
0x280c   :  { %5476 = vmatprep.mubr.msk.f32.mxu1 %vm394_vm5, %v2099_v0 }
0x280f   :  { %5477 = vmatmul.mubr.msk.f32.gmra.mrb[32].mxu1 %vm394_vm5, %v2100_v1 }
0x2810   :  { %5479 = vmatprep.mubr.msk.f32.mxu1 %vm394_vm5, %v2101_v4 }
0x2813   :  { %5480 = vmatmul.mubr.msk.f32.gmra.mrb[34].mxu1 %vm394_vm5, %v2102_v5 }
0x28c6   :  { %v1947_v9 = vpop.f32.mrb[20].mxu1 }
0x28c7   :  { %v1951_v17 = vadd.f32 %v1947_v9, %v365_v7  ;;  %v5441_v19 = vpop.f32.mrb[21].mxu1 }
0x28c9   :  { %v1953_v20 = vsub.f32 0.0, %v1951_v17 }
0x28cb   :  { %v1954_v8 = vmul.f32 1.442695, %v1953_v20 }
0x28cd   :  { %6146 = vpow2.f32 %v1954_v8 }
0x28ce   :  { %v7087_v21 = vpop.f32.mrb[22].mxu1  ;;  %6148 = vtanh.f32 %v1951_v17 }
0x28cf   :  { %v7089_v22 = vpop.f32.mrb[23].mxu1  ;;  %v2236_v8 = vadd.f32 %v7087_v21, %v7153_v55 }
0x28d0   :  { %v2231_v56 = vadd.f32 %v7153_v55, %v7089_v22 }
0x28d2   :  { %v7091_v24 = vpop.f32.mrb[24].mxu1 }
0x28d3   :  { %v7093_v25 = vpop.f32.mrb[25].mxu1 }
0x28d6   :  { %v7095_v26 = vpop.f32.mrb[26].mxu1 }
0x28d7   :  { %v6147_v14 = vpop.eup %6146  ;;  %v7097_v27 = vpop.f32.mrb[27].mxu1 }
0x28d8   :  { %v1956_v16 = vadd.f32 1.0, %v6147_v14  ;;  %v6149_v33 = vpop.eup %6148 }
0x28da   :  { %6150 = vrcp.f32 %v1956_v16  ;;  %v7099_v28 = vpop.f32.mrb[28].mxu1 }
0x28db   :  { %v7101_v29 = vpop.f32.mrb[29].mxu1 }
0x28de   :  { %v7103_v30 = vpop.f32.mrb[30].mxu1 }
0x28df   :  { %v7105_v31 = vpop.f32.mrb[31].mxu1 }
0x28e2   :  { %v7107_v32 = vpop.f32.mrb[32].mxu1 }
0x28e3   :  { %v7109_v35 = vpop.f32.mrb[33].mxu1 }
0x28e4   :  { %v6151_v36 = vpop.eup %6150 }
0x28e5   :  { %v1959_v37 = vsel %vm6779_vm4, %v6149_v33, %v6151_v36 }
0x28e6   :  { %v7113_v38 = vpop.f32.mrb[34].mxu1  ;;  %1962 = vrot.lane.b32.xlu0 %v1959_v37, %s6536_s6  ;;  %v1960_v41 = vmul.f32 %v1959_v37, %v7061_v44 }
0x28e7   :  { %v7116_v39 = vpop.f32.mrb[35].mxu1 }
0x2958   :  { %v1963_v40 = vpop.permute.xlu0 %1962 }
0x2959   :  { %v1965_v12 = vmul.f32 %v1963_v40, %v1959_v37 }
0x295b   :  { %1967 = vrot.lane.b32.xlu1 %v1965_v12, %s6537_s30 }
0x29cd   :  { %v1968_v11 = vpop.permute.xlu1 %1967 }
0x29ce   :  { %v7120_v18 = vadd.f32 %v1968_v11, %v1960_v41 }
0x29d0   :  { %6152 = vtanh.f32 %v7120_v18 }
0x29da   :  { %v6153_v42 = vpop.eup %6152 }
0x29db   :  { %1973 = vrot.lane.b32.xlu0 %v6153_v42, %s6536_s6 }
0x2a4d   :  { %v1974_v44 = vpop.permute.xlu0 %1973 }
0x2a4e   :  { %v1976_v48 = vmul.f32 %v1974_v44, %v1959_v37 }
0x2a50   :  { %1978 = vrot.lane.b32.xlu1 %v1976_v48, %s6537_s30 }
0x2ac2   :  { %v1979_v49 = vpop.permute.xlu1 %1978 }
0x2ac3   :  { %1982 = vst.msk [vmem:[#allocation2 + $0x70] sm:$0xff] %vm394_vm5, %v1979_v49  ;;  %5451 = vmatmul.mubr.msk.f32.vlgmr.msra.gmra.mrb[24].mxu0 %vm394_vm5, %v1979_v49 }
0x2ac4   :  { %5881 = vmatpush3.bf16.msra.mxu0 %v7124_v13  ;;  %5493 = vmatprep.mubr.msk.f32.mxu0 %vm6534_vm0, %v6535_v3 }
0x2ac5   :  { %5882 = vmatprep.subr.bf16.mxu0 %v6533_v2 }
0x2ac8   :  { %5884 = vmatpush3.bf16.msra.mxu0 %v7128_v47 }
0x2ac9   :  { %5885 = vmatprep.subr.bf16.mxu0 %v6533_v2 }
0x2aca   :  { %v2103_v50 = vld [vmem:[#allocation2 + $0x70] sm:$0xff] }
0x2acb   :  { %5494 = vmatmul.mubr.f32.vlgmr.msra.gmra.mrb[26].mxu0 %v6535_v3  ;;  %5482 = vmatprep.mubr.msk.f32.mxu1 %vm394_vm5, %v2103_v50  ;;  %v2241_v50 = vadd.f32 %v7153_v55, %v7093_v25 }
0x2acc   :  { %5887 = vmatpush3.bf16.msra.mxu0 %v7124_v13  ;;  %5504 = vmatprep.mubr.msk.f32.mxu0 %vm6534_vm0, %v6535_v3 }
0x2acd   :  { %5888 = vmatprep.subr.bf16.mxu0 %v6533_v2 }
0x2ad0   :  { %5890 = vmatpush3.bf16.msra.mxu0 %v7128_v47 }
0x2ad1   :  { %5891 = vmatprep.subr.bf16.mxu0 %v6533_v2 }
0x2b96   :  { %v2053_v52 = vpop.f32.mrb[24].mxu0 }
0x2b97   :  { %v7151_v53 = vadd.f32 %v2053_v52, %v370_v51  ;;  %v5452_v54 = vpop.f32.mrb[25].mxu0 }
0x2b99   :  { %v2059_v25 = vsub.f32 0.0, %v7151_v53 }
0x2b9e   :  { %v2396_v57 = vpop.f32.mrb[26].mxu0 }
0x2b9f   :  { %v2400_v58 = vadd.f32 %v2396_v57, %v2231_v56  ;;  %v5495_v59 = vpop.f32.mrb[27].mxu0 }
0x2ba1   :  { %v2402_v60 = vsub.f32 0.0, %v2400_v58 }
0x2ba3   :  { %v2403_v10 = vmul.f32 1.442695, %v2402_v60 }
0x2ba5   :  { %6154 = vpow2.f32 %v2403_v10 }
0x2ba6   :  { %6156 = vtanh.f32 %v2400_v58 }
0x2baf   :  { %v6155_v61 = vpop.eup %6154 }
0x2bb0   :  { %v2405_v62 = vadd.f32 1.0, %v6155_v61  ;;  %v6157_v15 = vpop.eup %6156 }
0x2bb2   :  { %6158 = vrcp.f32 %v2405_v62 }
0x2bbc   :  { %v6159_v63 = vpop.eup %6158 }
0x2bbd   :  { %v2408_v0 = vsel %vm6779_vm4, %v6157_v15, %v6159_v63  ;;  %v2060_v63 = vmul.f32 1.442695, %v2059_v25 }
0x2bbe   :  { %2411 = vrot.lane.b32.xlu0 %v2408_v0, %s6536_s6  ;;  %v2409_v5 = vmul.f32 0.0, %v2408_v0 }
0x2c30   :  { %v2412_v1 = vpop.permute.xlu0 %2411 }
0x2c31   :  { %v2414_v4 = vmul.f32 %v2412_v1, %v2408_v0 }
0x2c33   :  { %2416 = vrot.lane.b32.xlu1 %v2414_v4, %s6537_s30 }
0x2ca5   :  { %v2417_v6 = vpop.permute.xlu1 %2416 }
0x2ca6   :  { %v2419_v7 = vadd.f32 %v2417_v6, %v2409_v5 }
0x2ca8   :  { %6160 = vtanh.f32 %v2419_v7 }
0x2cb2   :  { %v6161_v9 = vpop.eup %6160 }
0x2cb3   :  { %2422 = vrot.lane.b32.xlu0 %v6161_v9, %s6536_s6 }
0x2d25   :  { %v2423_v17 = vpop.permute.xlu0 %2422 }
0x2d26   :  { %v2425_v19 = vmul.f32 %v2423_v17, %v2408_v0 }
0x2d28   :  { %2427 = vrot.lane.b32.xlu1 %v2425_v19, %s6537_s30 }
0x2d9a   :  { %v2428_v20 = vpop.permute.xlu1 %2427 }
0x2d9b   :  { %2430 = vst.msk [vmem:[#allocation2] sm:$0xff] %vm394_vm5, %v2428_v20  ;;  %5505 = vmatmul.mubr.msk.f32.vlgmr.msra.gmra.mrb[28].mxu0 %vm394_vm5, %v2428_v20 }
0x2d9c   :  { %5893 = vmatpush3.bf16.msra.mxu0 %v7124_v13  ;;  %5515 = vmatprep.mubr.msk.f32.mxu0 %vm6534_vm0, %v6535_v3 }
0x2d9d   :  { %5894 = vmatprep.subr.bf16.mxu0 %v6533_v2 }
0x2da0   :  { %5896 = vmatpush3.bf16.msra.mxu0 %v7128_v47 }
0x2da1   :  { %5897 = vmatprep.subr.bf16.mxu0 %v6533_v2 }
0x2e6e   :  { %v2500_v22 = vpop.f32.mrb[28].mxu0 }
0x2e6f   :  { %v2504_v14 = vadd.f32 %v2500_v22, %v2236_v8  ;;  %v5506_v16 = vpop.f32.mrb[29].mxu0 }
0x2e71   :  { %v2506_v33 = vsub.f32 0.0, %v2504_v14 }
0x2e73   :  { %v2507_v36 = vmul.f32 1.442695, %v2506_v33 }
0x2e75   :  { %6162 = vpow2.f32 %v2507_v36 }
0x2e76   :  { %6164 = vtanh.f32 %v2504_v14 }
0x2e7f   :  { %v6163_v37 = vpop.eup %6162 }
0x2e80   :  { %v2509_v40 = vadd.f32 1.0, %v6163_v37  ;;  %v6165_v12 = vpop.eup %6164 }
0x2e82   :  { %6166 = vrcp.f32 %v2509_v40 }
0x2e8c   :  { %v6167_v41 = vpop.eup %6166 }
0x2e8d   :  { %v2512_v11 = vsel %vm6779_vm4, %v6165_v12, %v6167_v41  ;;  %v2246_v41 = vadd.f32 %v7091_v24, %v7153_v55 }
0x2e8e   :  { %2515 = vrot.lane.b32.xlu0 %v2512_v11, %s6536_s6  ;;  %v2513_v21 = vmul.f32 %v2512_v11, %v2419_v7 }
0x2f00   :  { %v2516_v42 = vpop.permute.xlu0 %2515 }
0x2f01   :  { %v2518_v43 = vmul.f32 %v2516_v42, %v2512_v11 }
0x2f03   :  { %2520 = vrot.lane.b32.xlu1 %v2518_v43, %s6537_s30 }
0x2f75   :  { %v2521_v23 = vpop.permute.xlu1 %2520 }
0x2f76   :  { %v2523_v45 = vadd.f32 %v2521_v23, %v2513_v21 }
0x2f78   :  { %6168 = vtanh.f32 %v2523_v45 }
0x2f82   :  { %v6169_v46 = vpop.eup %6168 }
0x2f83   :  { %2526 = vrot.lane.b32.xlu0 %v6169_v46, %s6536_s6 }
0x2ff5   :  { %v2527_v44 = vpop.permute.xlu0 %2526 }
0x2ff6   :  { %v2529_v48 = vmul.f32 %v2527_v44, %v2512_v11 }
0x2ff8   :  { %2531 = vrot.lane.b32.xlu1 %v2529_v48, %s6537_s30 }
0x306a   :  { %v2532_v49 = vpop.permute.xlu1 %2531 }
0x306b   :  { %2534 = vst.msk [vmem:[#allocation2 + $0x8] sm:$0xff] %vm394_vm5, %v2532_v49  ;;  %5516 = vmatmul.mubr.msk.f32.vlgmr.msra.gmra.mrb[30].mxu0 %vm394_vm5, %v2532_v49 }
0x306c   :  { %5899 = vmatpush3.bf16.msra.mxu0 %v7124_v13  ;;  %5526 = vmatprep.mubr.msk.f32.mxu0 %vm6534_vm0, %v6535_v3 }
0x306d   :  { %5900 = vmatprep.subr.bf16.mxu0 %v6533_v2 }
0x3070   :  { %5902 = vmatpush3.bf16.msra.mxu0 %v7128_v47 }
0x3071   :  { %5909 = vmatprep.subr.bf16.mxu0 %v6533_v2 }
0x313e   :  { %v2604_v51 = vpop.f32.mrb[30].mxu0 }
0x313f   :  { %v2608_v52 = vadd.f32 %v2604_v51, %v2241_v50  ;;  %v5517_v54 = vpop.f32.mrb[31].mxu0 }
0x3141   :  { %v2610_v56 = vsub.f32 0.0, %v2608_v52 }
0x3143   :  { %v2611_v57 = vmul.f32 1.442695, %v2610_v56 }
0x3145   :  { %6170 = vpow2.f32 %v2611_v57 }
0x3146   :  { %6172 = vtanh.f32 %v2608_v52 }
0x314f   :  { %v6171_v58 = vpop.eup %6170 }
0x3150   :  { %v2613_v59 = vadd.f32 1.0, %v6171_v58  ;;  %v6173_v60 = vpop.eup %6172 }
0x3152   :  { %6174 = vrcp.f32 %v2613_v59 }
0x3153   :  { %6176 = vpow2.f32 %v2060_v63 }
0x315c   :  { %v6175_v10 = vpop.eup %6174 }
0x315d   :  { %v2616_v61 = vsel %vm6779_vm4, %v6173_v60, %v6175_v10  ;;  %v6177_v0 = vpop.eup %6176 }
0x315e   :  { %2619 = vrot.lane.b32.xlu0 %v2616_v61, %s6536_s6  ;;  %v2617_v1 = vmul.f32 %v2616_v61, %v2523_v45  ;;  %v2062_v4 = vadd.f32 1.0, %v6177_v0 }
0x31d0   :  { %v2620_v62 = vpop.permute.xlu0 %2619 }
0x31d1   :  { %v2622_v15 = vmul.f32 %v2620_v62, %v2616_v61  ;;  %v2251_v62 = vadd.f32 %v7153_v55, %v7097_v27 }
0x31d3   :  { %2624 = vrot.lane.b32.xlu1 %v2622_v15, %s6537_s30 }
0x3245   :  { %v2625_v5 = vpop.permute.xlu1 %2624 }
0x3246   :  { %v2627_v6 = vadd.f32 %v2625_v5, %v2617_v1 }
0x3248   :  { %6178 = vtanh.f32 %v2627_v6 }
0x3249   :  { %6180 = vrcp.f32 %v2062_v4 }
0x324a   :  { %6182 = vtanh.f32 %v7151_v53 }
0x3252   :  { %v6179_v7 = vpop.eup %6178 }
0x3253   :  { %v6181_v9 = vpop.eup %6180  ;;  %2630 = vrot.lane.b32.xlu0 %v6179_v7, %s6536_s6 }
0x3254   :  { %v6183_v17 = vpop.eup %6182 }
0x3255   :  { %v2065_v19 = vsel %vm6779_vm4, %v6183_v17, %v6181_v9 }
0x3256   :  { %v2066_v53 = vmul.f32 %v2065_v19, %v7120_v18 }
0x3257   :  { %2068 = vrot.lane.b32.xlu0 %v2065_v19, %s6536_s6 }
0x32c5   :  { %v2631_v20 = vpop.permute.xlu0 %2630 }
0x32c6   :  { %v2633_v8 = vmul.f32 %v2631_v20, %v2616_v61 }
0x32c8   :  { %2635 = vrot.lane.b32.xlu1 %v2633_v8, %s6537_s30 }
0x32c9   :  { %v2069_v22 = vpop.permute.xlu0 %2068 }
0x32ca   :  { %v2071_v14 = vmul.f32 %v2069_v22, %v2065_v19 }
0x32cc   :  { %2073 = vrot.lane.b32.xlu0 %v2071_v14, %s6537_s30 }
0x333a   :  { %v2636_v16 = vpop.permute.xlu1 %2635 }
0x333b   :  { %2638 = vst.msk [vmem:[#allocation2 + $0x10] sm:$0xff] %vm394_vm5, %v2636_v16  ;;  %5527 = vmatmul.mubr.msk.f32.vlgmr.msra.gmra.mrb[32].mxu0 %vm394_vm5, %v2636_v16 }
0x333c   :  { %5911 = vmatpush3.bf16.msra.mxu0 %v7124_v13  ;;  %5548 = vmatprep.mubr.msk.f32.mxu0 %vm6534_vm0, %v6535_v3 }
0x333d   :  { %5912 = vmatprep.subr.bf16.mxu0 %v6533_v2 }
0x333e   :  { %v2074_v33 = vpop.permute.xlu0 %2073 }
0x333f   :  { %v2076_v36 = vadd.f32 %v2074_v33, %v2066_v53  ;;  %v2256_v33 = vadd.f32 %v7095_v26, %v7153_v55 }
0x3340   :  { %5914 = vmatpush3.bf16.msra.mxu0 %v7128_v47 }
0x3341   :  { %6184 = vtanh.f32 %v2076_v36  ;;  %5921 = vmatprep.subr.bf16.mxu0 %v6533_v2 }
0x334b   :  { %v6185_v37 = vpop.eup %6184 }
0x334c   :  { %2079 = vrot.lane.b32.xlu0 %v6185_v37, %s6536_s6 }
0x33be   :  { %v2080_v40 = vpop.permute.xlu0 %2079 }
0x33bf   :  { %v2082_v12 = vmul.f32 %v2080_v40, %v2065_v19 }
0x33c1   :  { %2084 = vrot.lane.b32.xlu0 %v2082_v12, %s6537_s30 }
0x340e   :  { %v2708_v18 = vpop.f32.mrb[32].mxu0 }
0x340f   :  { %v2712_v11 = vadd.f32 %v2708_v18, %v2246_v41  ;;  %v5528_v42 = vpop.f32.mrb[33].mxu0 }
0x3411   :  { %v2714_v43 = vsub.f32 0.0, %v2712_v11 }
0x3413   :  { %v2715_v21 = vmul.f32 1.442695, %v2714_v43 }
0x3415   :  { %6186 = vpow2.f32 %v2715_v21 }
0x3416   :  { %6188 = vtanh.f32 %v2712_v11 }
0x341f   :  { %v6187_v23 = vpop.eup %6186 }
0x3420   :  { %v2717_v45 = vadd.f32 1.0, %v6187_v23  ;;  %v6189_v46 = vpop.eup %6188 }
0x3422   :  { %6190 = vrcp.f32 %v2717_v45 }
0x342c   :  { %v6191_v44 = vpop.eup %6190 }
0x342d   :  { %v2720_v48 = vsel %vm6779_vm4, %v6189_v46, %v6191_v44 }
0x342e   :  { %2723 = vrot.lane.b32.xlu1 %v2720_v48, %s6536_s6  ;;  %v2721_v56 = vmul.f32 %v2720_v48, %v2627_v6 }
0x3433   :  { %v2085_v49 = vpop.permute.xlu0 %2084 }
0x3434   :  { %2088 = vst.msk [vmem:[#allocation2 + $0x78] sm:$0xff] %vm394_vm5, %v2085_v49 }
0x343b   :  { %v2104_v24 = vld [vmem:[#allocation2 + $0x78] sm:$0xff] }
0x343c   :  { %5483 = vmatmul.mubr.msk.f32.gmra.mrb[36].mxu1 %vm394_vm5, %v2104_v24 }
0x343d   :  { %5537 = vmatprep.mubr.msk.f32.mxu1 %vm6534_vm0, %v6535_v3 }
0x34a0   :  { %v2724_v50 = vpop.permute.xlu1 %2723 }
0x34a1   :  { %v2726_v51 = vmul.f32 %v2724_v50, %v2720_v48 }
0x34a3   :  { %2728 = vrot.lane.b32.xlu1 %v2726_v51, %s6537_s30  ;;  %v2261_v51 = vadd.f32 %v7153_v55, %v7101_v29 }
0x350f   :  { %v7222_v52 = vpop.f32.mrb[36].mxu1 }
0x3510   :  { %v7224_v54 = vpop.f32.mrb[37].mxu1 }
0x3515   :  { %v2729_v57 = vpop.permute.xlu1 %2728 }
0x3516   :  { %v2731_v58 = vadd.f32 %v2729_v57, %v2721_v56 }
0x3518   :  { %6192 = vtanh.f32 %v2731_v58 }
0x3522   :  { %v6193_v59 = vpop.eup %6192 }
0x3523   :  { %2734 = vrot.lane.b32.xlu1 %v6193_v59, %s6536_s6 }
0x3595   :  { %v2735_v60 = vpop.permute.xlu1 %2734 }
0x3596   :  { %v2737_v10 = vmul.f32 %v2735_v60, %v2720_v48 }
0x3598   :  { %2739 = vrot.lane.b32.xlu1 %v2737_v10, %s6537_s30 }
0x360a   :  { %v2740_v61 = vpop.permute.xlu1 %2739 }
0x360b   :  { %2742 = vst.msk [vmem:[#allocation2 + $0x18] sm:$0xff] %vm394_vm5, %v2740_v61  ;;  %5538 = vmatmul.mubr.msk.f32.vlgmr.msra.gmra.mrb[38].mxu1 %vm394_vm5, %v2740_v61 }
0x360c   :  { %5917 = vmatpush3.bf16.msra.mxu1 %v7124_v13  ;;  %5559 = vmatprep.mubr.msk.f32.mxu1 %vm6534_vm0, %v6535_v3 }
0x360d   :  { %5918 = vmatprep.subr.bf16.mxu1 %v6533_v2 }
0x3610   :  { %5920 = vmatpush3.bf16.msra.mxu1 %v7128_v47 }
0x3611   :  { %5927 = vmatprep.subr.bf16.mxu1 %v6533_v2 }
0x36de   :  { %v2812_v15 = vpop.f32.mrb[38].mxu1 }
0x36df   :  { %v2816_v25 = vadd.f32 %v2812_v15, %v2251_v62  ;;  %v5539_v63 = vpop.f32.mrb[39].mxu1 }
0x36e1   :  { %v2818_v0 = vsub.f32 0.0, %v2816_v25 }
0x36e3   :  { %v2819_v1 = vmul.f32 1.442695, %v2818_v0 }
0x36e5   :  { %6194 = vpow2.f32 %v2819_v1 }
0x36e6   :  { %6196 = vtanh.f32 %v2816_v25 }
0x36ef   :  { %v6195_v4 = vpop.eup %6194 }
0x36f0   :  { %v2821_v5 = vadd.f32 1.0, %v6195_v4  ;;  %v6197_v6 = vpop.eup %6196 }
0x36f2   :  { %6198 = vrcp.f32 %v2821_v5 }
0x36fc   :  { %v6199_v7 = vpop.eup %6198 }
0x36fd   :  { %v2824_v9 = vsel %vm6779_vm4, %v6197_v6, %v6199_v7 }
0x36fe   :  { %2827 = vrot.lane.b32.xlu0 %v2824_v9, %s6536_s6  ;;  %v2825_v27 = vmul.f32 %v2824_v9, %v2731_v58 }
0x3770   :  { %v2828_v17 = vpop.permute.xlu0 %2827 }
0x3771   :  { %v2830_v19 = vmul.f32 %v2828_v17, %v2824_v9  ;;  %v2266_v17 = vadd.f32 %v7099_v28, %v7153_v55 }
0x3773   :  { %2832 = vrot.lane.b32.xlu1 %v2830_v19, %s6537_s30 }
0x37e5   :  { %v2833_v20 = vpop.permute.xlu1 %2832 }
0x37e6   :  { %v2835_v8 = vadd.f32 %v2833_v20, %v2825_v27 }
0x37e8   :  { %6200 = vtanh.f32 %v2835_v8 }
0x37f2   :  { %v6201_v22 = vpop.eup %6200 }
0x37f3   :  { %2838 = vrot.lane.b32.xlu0 %v6201_v22, %s6536_s6 }
0x3865   :  { %v2839_v14 = vpop.permute.xlu0 %2838 }
0x3866   :  { %v2841_v16 = vmul.f32 %v2839_v14, %v2824_v9 }
0x3868   :  { %2843 = vrot.lane.b32.xlu1 %v2841_v16, %s6537_s30 }
0x38da   :  { %v2844_v53 = vpop.permute.xlu1 %2843 }
0x38db   :  { %2846 = vst.msk [vmem:[#allocation2 + $0x20] sm:$0xff] %vm394_vm5, %v2844_v53  ;;  %5549 = vmatmul.mubr.msk.f32.vlgmr.msra.gmra.mrb[34].mxu0 %vm394_vm5, %v2844_v53 }
0x38dc   :  { %5923 = vmatpush3.bf16.msra.mxu0 %v7124_v13  ;;  %5570 = vmatprep.mubr.msk.f32.mxu0 %vm6534_vm0, %v6535_v3 }
0x38dd   :  { %5924 = vmatprep.subr.bf16.mxu0 %v6533_v2 }
0x38e0   :  { %5926 = vmatpush3.bf16.msra.mxu0 %v7128_v47 }
0x38e1   :  { %5933 = vmatprep.subr.bf16.mxu0 %v6533_v2 }
0x39ae   :  { %v2916_v36 = vpop.f32.mrb[34].mxu0 }
0x39af   :  { %v2920_v37 = vadd.f32 %v2916_v36, %v2256_v33  ;;  %v5550_v40 = vpop.f32.mrb[35].mxu0 }
0x39b1   :  { %v2922_v12 = vsub.f32 0.0, %v2920_v37 }
0x39b3   :  { %v2923_v41 = vmul.f32 1.442695, %v2922_v12 }
0x39b5   :  { %6202 = vpow2.f32 %v2923_v41 }
0x39b6   :  { %6204 = vtanh.f32 %v2920_v37 }
0x39bf   :  { %v6203_v18 = vpop.eup %6202 }
0x39c0   :  { %v2925_v11 = vadd.f32 1.0, %v6203_v18  ;;  %v6205_v42 = vpop.eup %6204 }
0x39c2   :  { %6206 = vrcp.f32 %v2925_v11 }
0x39cc   :  { %v6207_v43 = vpop.eup %6206 }
0x39cd   :  { %v2928_v21 = vsel %vm6779_vm4, %v6205_v42, %v6207_v43 }
0x39ce   :  { %2931 = vrot.lane.b32.xlu0 %v2928_v21, %s6536_s6  ;;  %v2929_v26 = vmul.f32 %v2928_v21, %v2835_v8 }
0x3a40   :  { %v2932_v23 = vpop.permute.xlu0 %2931 }
0x3a41   :  { %v2934_v45 = vmul.f32 %v2932_v23, %v2928_v21 }
0x3a43   :  { %2936 = vrot.lane.b32.xlu1 %v2934_v45, %s6537_s30 }
0x3ab5   :  { %v2937_v46 = vpop.permute.xlu1 %2936 }
0x3ab6   :  { %v2939_v44 = vadd.f32 %v2937_v46, %v2929_v26 }
0x3ab8   :  { %6208 = vtanh.f32 %v2939_v44 }
0x3ac2   :  { %v6209_v48 = vpop.eup %6208 }
0x3ac3   :  { %2942 = vrot.lane.b32.xlu0 %v6209_v48, %s6536_s6 }
0x3b35   :  { %v2943_v49 = vpop.permute.xlu0 %2942 }
0x3b36   :  { %v2945_v24 = vmul.f32 %v2943_v49, %v2928_v21  ;;  %v2271_v21 = vadd.f32 %v7153_v55, %v7105_v31 }
0x3b38   :  { %2947 = vrot.lane.b32.xlu1 %v2945_v24, %s6537_s30 }
0x3baa   :  { %v2948_v50 = vpop.permute.xlu1 %2947 }
0x3bab   :  { %2950 = vst.msk [vmem:[#allocation2 + $0x28] sm:$0xff] %vm394_vm5, %v2948_v50  ;;  %5560 = vmatmul.mubr.msk.f32.vlgmr.msra.gmra.mrb[40].mxu1 %vm394_vm5, %v2948_v50 }
0x3bac   :  { %5929 = vmatpush3.bf16.msra.mxu1 %v7124_v13  ;;  %5581 = vmatprep.mubr.msk.f32.mxu1 %vm6534_vm0, %v6535_v3 }
0x3bad   :  { %5930 = vmatprep.subr.bf16.mxu1 %v6533_v2 }
0x3bb0   :  { %5932 = vmatpush3.bf16.msra.mxu1 %v7128_v47 }
0x3bb1   :  { %5939 = vmatprep.subr.bf16.mxu1 %v6533_v2 }
0x3c7e   :  { %v3020_v56 = vpop.f32.mrb[40].mxu1 }
0x3c7f   :  { %v3024_v57 = vadd.f32 %v3020_v56, %v2261_v51  ;;  %v5561_v58 = vpop.f32.mrb[41].mxu1 }
0x3c81   :  { %v3026_v59 = vsub.f32 0.0, %v3024_v57 }
0x3c83   :  { %v3027_v60 = vmul.f32 1.442695, %v3026_v59 }
0x3c85   :  { %6210 = vpow2.f32 %v3027_v60 }
0x3c86   :  { %6212 = vtanh.f32 %v3024_v57 }
0x3c8f   :  { %v6211_v10 = vpop.eup %6210 }
0x3c90   :  { %v3029_v61 = vadd.f32 1.0, %v6211_v10  ;;  %v6213_v62 = vpop.eup %6212 }
0x3c92   :  { %6214 = vrcp.f32 %v3029_v61 }
0x3c9c   :  { %v6215_v15 = vpop.eup %6214 }
0x3c9d   :  { %v3032_v25 = vsel %vm6779_vm4, %v6213_v62, %v6215_v15  ;;  %v2276_v15 = vadd.f32 %v7103_v30, %v7153_v55 }
0x3c9e   :  { %3035 = vrot.lane.b32.xlu0 %v3032_v25, %s6536_s6  ;;  %v3033_v29 = vmul.f32 %v3032_v25, %v2939_v44 }
0x3d10   :  { %v3036_v63 = vpop.permute.xlu0 %3035 }
0x3d11   :  { %v3038_v0 = vmul.f32 %v3036_v63, %v3032_v25 }
0x3d13   :  { %3040 = vrot.lane.b32.xlu1 %v3038_v0, %s6537_s30 }
0x3d85   :  { %v3041_v1 = vpop.permute.xlu1 %3040 }
0x3d86   :  { %v3043_v4 = vadd.f32 %v3041_v1, %v3033_v29 }
0x3d88   :  { %6216 = vtanh.f32 %v3043_v4 }
0x3d92   :  { %v6217_v5 = vpop.eup %6216 }
0x3d93   :  { %3046 = vrot.lane.b32.xlu0 %v6217_v5, %s6536_s6 }
0x3e05   :  { %v3047_v6 = vpop.permute.xlu0 %3046 }
0x3e06   :  { %v3049_v7 = vmul.f32 %v3047_v6, %v3032_v25 }
0x3e08   :  { %3051 = vrot.lane.b32.xlu1 %v3049_v7, %s6537_s30 }
0x3e7a   :  { %v3052_v9 = vpop.permute.xlu1 %3051 }
0x3e7b   :  { %3054 = vst.msk [vmem:[#allocation2 + $0x30] sm:$0xff] %vm394_vm5, %v3052_v9  ;;  %5571 = vmatmul.mubr.msk.f32.vlgmr.msra.gmra.mrb[36].mxu0 %vm394_vm5, %v3052_v9 }
0x3e7c   :  { %5935 = vmatpush3.bf16.msra.mxu0 %v7124_v13  ;;  %5592 = vmatprep.mubr.msk.f32.mxu0 %vm6534_vm0, %v6535_v3 }
0x3e7d   :  { %5936 = vmatprep.subr.bf16.mxu0 %v6533_v2 }
0x3e80   :  { %5938 = vmatpush3.bf16.msra.mxu0 %v7128_v47 }
0x3e81   :  { %5945 = vmatprep.subr.bf16.mxu0 %v6533_v2 }
0x3f4e   :  { %v3124_v19 = vpop.f32.mrb[36].mxu0 }
0x3f4f   :  { %v3128_v27 = vadd.f32 %v3124_v19, %v2266_v17  ;;  %v5572_v20 = vpop.f32.mrb[37].mxu0 }
0x3f51   :  { %v3130_v8 = vsub.f32 0.0, %v3128_v27 }
0x3f53   :  { %v3131_v22 = vmul.f32 1.442695, %v3130_v8 }
0x3f55   :  { %6218 = vpow2.f32 %v3131_v22 }
0x3f56   :  { %6220 = vtanh.f32 %v3128_v27 }
0x3f5f   :  { %v6219_v14 = vpop.eup %6218 }
0x3f60   :  { %v3133_v16 = vadd.f32 1.0, %v6219_v14  ;;  %v6221_v53 = vpop.eup %6220 }
0x3f62   :  { %6222 = vrcp.f32 %v3133_v16 }
0x3f6c   :  { %v6223_v33 = vpop.eup %6222 }
0x3f6d   :  { %v3136_v36 = vsel %vm6779_vm4, %v6221_v53, %v6223_v33  ;;  %v2281_v53 = vadd.f32 %v7153_v55, %v7109_v35 }
0x3f6e   :  { %3139 = vrot.lane.b32.xlu0 %v3136_v36, %s6536_s6  ;;  %v3137_v28 = vmul.f32 %v3136_v36, %v3043_v4 }
0x3fe0   :  { %v3140_v37 = vpop.permute.xlu0 %3139 }
0x3fe1   :  { %v3142_v40 = vmul.f32 %v3140_v37, %v3136_v36 }
0x3fe3   :  { %3144 = vrot.lane.b32.xlu1 %v3142_v40, %s6537_s30 }
0x4055   :  { %v3145_v12 = vpop.permute.xlu1 %3144 }
0x4056   :  { %v3147_v41 = vadd.f32 %v3145_v12, %v3137_v28 }
0x4058   :  { %6224 = vtanh.f32 %v3147_v41 }
0x4062   :  { %v6225_v18 = vpop.eup %6224 }
0x4063   :  { %3150 = vrot.lane.b32.xlu0 %v6225_v18, %s6536_s6 }
0x40d5   :  { %v3151_v11 = vpop.permute.xlu0 %3150 }
0x40d6   :  { %v3153_v42 = vmul.f32 %v3151_v11, %v3136_v36 }
0x40d8   :  { %3155 = vrot.lane.b32.xlu1 %v3153_v42, %s6537_s30 }
0x414a   :  { %v3156_v43 = vpop.permute.xlu1 %3155 }
0x414b   :  { %3158 = vst.msk [vmem:[#allocation2 + $0x38] sm:$0xff] %vm394_vm5, %v3156_v43  ;;  %5582 = vmatmul.mubr.msk.f32.vlgmr.msra.gmra.mrb[42].mxu1 %vm394_vm5, %v3156_v43 }
0x414c   :  { %5941 = vmatpush3.bf16.msra.mxu1 %v7124_v13  ;;  %5603 = vmatprep.mubr.msk.f32.mxu1 %vm6534_vm0, %v6535_v3 }
0x414d   :  { %5942 = vmatprep.subr.bf16.mxu1 %v6533_v2 }
0x4150   :  { %5944 = vmatpush3.bf16.msra.mxu1 %v7128_v47 }
0x4151   :  { %5951 = vmatprep.subr.bf16.mxu1 %v6533_v2 }
0x421e   :  { %v3228_v23 = vpop.f32.mrb[42].mxu1 }
0x421f   :  { %v3232_v45 = vadd.f32 %v3228_v23, %v2271_v21  ;;  %v5583_v26 = vpop.f32.mrb[43].mxu1 }
0x4221   :  { %v3234_v46 = vsub.f32 0.0, %v3232_v45 }
0x4223   :  { %v3235_v44 = vmul.f32 1.442695, %v3234_v46 }
0x4225   :  { %6226 = vpow2.f32 %v3235_v44 }
0x4226   :  { %6228 = vtanh.f32 %v3232_v45 }
0x422f   :  { %v6227_v48 = vpop.eup %6226 }
0x4230   :  { %v3237_v49 = vadd.f32 1.0, %v6227_v48  ;;  %v6229_v24 = vpop.eup %6228 }
0x4232   :  { %6230 = vrcp.f32 %v3237_v49  ;;  %v2286_v49 = vadd.f32 %v7107_v32, %v7153_v55 }
0x423c   :  { %v6231_v50 = vpop.eup %6230 }
0x423d   :  { %v3240_v51 = vsel %vm6779_vm4, %v6229_v24, %v6231_v50 }
0x423e   :  { %3243 = vrot.lane.b32.xlu0 %v3240_v51, %s6536_s6  ;;  %v3241_v31 = vmul.f32 %v3240_v51, %v3147_v41 }
0x42b0   :  { %v3244_v56 = vpop.permute.xlu0 %3243 }
0x42b1   :  { %v3246_v57 = vmul.f32 %v3244_v56, %v3240_v51 }
0x42b3   :  { %3248 = vrot.lane.b32.xlu1 %v3246_v57, %s6537_s30 }
0x4325   :  { %v3249_v58 = vpop.permute.xlu1 %3248 }
0x4326   :  { %v3251_v59 = vadd.f32 %v3249_v58, %v3241_v31 }
0x4328   :  { %6232 = vtanh.f32 %v3251_v59 }
0x4332   :  { %v6233_v60 = vpop.eup %6232 }
0x4333   :  { %3254 = vrot.lane.b32.xlu0 %v6233_v60, %s6536_s6 }
0x43a5   :  { %v3255_v10 = vpop.permute.xlu0 %3254 }
0x43a6   :  { %v3257_v61 = vmul.f32 %v3255_v10, %v3240_v51 }
0x43a8   :  { %3259 = vrot.lane.b32.xlu1 %v3257_v61, %s6537_s30 }
0x441a   :  { %v3260_v62 = vpop.permute.xlu1 %3259 }
0x441b   :  { %3262 = vst.msk [vmem:[#allocation2 + $0x40] sm:$0xff] %vm394_vm5, %v3260_v62  ;;  %5593 = vmatmul.mubr.msk.f32.vlgmr.msra.gmra.mrb[38].mxu0 %vm394_vm5, %v3260_v62 }
0x441c   :  { %5947 = vmatpush3.bf16.msra.mxu0 %v7124_v13  ;;  %5614 = vmatprep.mubr.msk.f32.mxu0 %vm6534_vm0, %v6535_v3 }
0x441d   :  { %5948 = vmatprep.subr.bf16.mxu0 %v6533_v2 }
0x4420   :  { %5950 = vmatpush3.bf16.msra.mxu0 %v7128_v47 }
0x4421   :  { %5957 = vmatprep.subr.bf16.mxu0 %v6533_v2 }
0x44ee   :  { %v3332_v25 = vpop.f32.mrb[38].mxu0 }
0x44ef   :  { %v3336_v63 = vadd.f32 %v3332_v25, %v2276_v15  ;;  %v5594_v0 = vpop.f32.mrb[39].mxu0 }
0x44f1   :  { %v3338_v29 = vsub.f32 0.0, %v3336_v63 }
0x44f3   :  { %v3339_v1 = vmul.f32 1.442695, %v3338_v29 }
0x44f5   :  { %6234 = vpow2.f32 %v3339_v1 }
0x44f6   :  { %6236 = vtanh.f32 %v3336_v63 }
0x44ff   :  { %v6235_v4 = vpop.eup %6234 }
0x4500   :  { %v3341_v5 = vadd.f32 1.0, %v6235_v4  ;;  %v6237_v6 = vpop.eup %6236  ;;  %v2291_v4 = vadd.f32 %v7153_v55, %v7116_v39 }
0x4502   :  { %6238 = vrcp.f32 %v3341_v5 }
0x450c   :  { %v6239_v7 = vpop.eup %6238 }
0x450d   :  { %v3344_v9 = vsel %vm6779_vm4, %v6237_v6, %v6239_v7 }
0x450e   :  { %3347 = vrot.lane.b32.xlu0 %v3344_v9, %s6536_s6  ;;  %v3345_v30 = vmul.f32 %v3344_v9, %v3251_v59 }
0x4580   :  { %v3348_v17 = vpop.permute.xlu0 %3347 }
0x4581   :  { %v3350_v19 = vmul.f32 %v3348_v17, %v3344_v9 }
0x4583   :  { %3352 = vrot.lane.b32.xlu1 %v3350_v19, %s6537_s30 }
0x45f5   :  { %v3353_v27 = vpop.permute.xlu1 %3352 }
0x45f6   :  { %v3355_v20 = vadd.f32 %v3353_v27, %v3345_v30 }
0x45f8   :  { %6240 = vtanh.f32 %v3355_v20 }
0x4602   :  { %v6241_v8 = vpop.eup %6240 }
0x4603   :  { %3358 = vrot.lane.b32.xlu0 %v6241_v8, %s6536_s6 }
0x4675   :  { %v3359_v22 = vpop.permute.xlu0 %3358 }
0x4676   :  { %v3361_v14 = vmul.f32 %v3359_v22, %v3344_v9 }
0x4678   :  { %3363 = vrot.lane.b32.xlu1 %v3361_v14, %s6537_s30 }
0x46ea   :  { %v3364_v16 = vpop.permute.xlu1 %3363 }
0x46eb   :  { %3366 = vst.msk [vmem:[#allocation2 + $0x48] sm:$0xff] %vm394_vm5, %v3364_v16  ;;  %5604 = vmatmul.mubr.msk.f32.vlgmr.msra.gmra.mrb[44].mxu1 %vm394_vm5, %v3364_v16 }
0x46ec   :  { %5953 = vmatpush3.bf16.msra.mxu1 %v7124_v13  ;;  %5625 = vmatprep.mubr.msk.f32.mxu1 %vm6534_vm0, %v6535_v3 }
0x46ed   :  { %5954 = vmatprep.subr.bf16.mxu1 %v6533_v2 }
0x46f0   :  { %5956 = vmatpush3.bf16.msra.mxu1 %v7128_v47 }
0x46f1   :  { %5963 = vmatprep.subr.bf16.mxu1 %v6533_v2 }
0x47be   :  { %v3436_v33 = vpop.f32.mrb[44].mxu1 }
0x47bf   :  { %v3440_v36 = vadd.f32 %v3436_v33, %v2281_v53  ;;  %v5605_v37 = vpop.f32.mrb[45].mxu1 }
0x47c1   :  { %v3442_v40 = vsub.f32 0.0, %v3440_v36 }
0x47c3   :  { %v3443_v28 = vmul.f32 1.442695, %v3442_v40 }
0x47c5   :  { %6242 = vpow2.f32 %v3443_v28  ;;  %v2296_v28 = vadd.f32 %v7113_v38, %v7153_v55 }
0x47c6   :  { %6244 = vtanh.f32 %v3440_v36 }
0x47cf   :  { %v6243_v12 = vpop.eup %6242 }
0x47d0   :  { %v3445_v41 = vadd.f32 1.0, %v6243_v12  ;;  %v6245_v18 = vpop.eup %6244 }
0x47d2   :  { %6246 = vrcp.f32 %v3445_v41 }
0x47dc   :  { %v6247_v11 = vpop.eup %6246 }
0x47dd   :  { %v3448_v42 = vsel %vm6779_vm4, %v6245_v18, %v6247_v11 }
0x47de   :  { %3451 = vrot.lane.b32.xlu0 %v3448_v42, %s6536_s6  ;;  %v3449_v35 = vmul.f32 %v3448_v42, %v3355_v20 }
0x4850   :  { %v3452_v43 = vpop.permute.xlu0 %3451 }
0x4851   :  { %v3454_v21 = vmul.f32 %v3452_v43, %v3448_v42 }
0x4853   :  { %3456 = vrot.lane.b32.xlu1 %v3454_v21, %s6537_s30 }
0x48c5   :  { %v3457_v23 = vpop.permute.xlu1 %3456 }
0x48c6   :  { %v3459_v45 = vadd.f32 %v3457_v23, %v3449_v35 }
0x48c8   :  { %6248 = vtanh.f32 %v3459_v45 }
0x48d2   :  { %v6249_v26 = vpop.eup %6248 }
0x48d3   :  { %3462 = vrot.lane.b32.xlu0 %v6249_v26, %s6536_s6 }
0x4945   :  { %v3463_v46 = vpop.permute.xlu0 %3462 }
0x4946   :  { %v3465_v44 = vmul.f32 %v3463_v46, %v3448_v42  ;;  %v4007_v46 = vld [vmem:[%s7800_s7] sm:$0xff] }
0x4948   :  { %3467 = vrot.lane.b32.xlu1 %v3465_v44, %s6537_s30  ;;  %v4008_v44 = vld [vmem:[%s7800_s7 + $0x8] sm:$0xff] }
0x49ba   :  { %v3468_v48 = vpop.permute.xlu1 %3467 }
0x49bb   :  { %3470 = vst.msk [vmem:[#allocation2 + $0x50] sm:$0xff] %vm394_vm5, %v3468_v48  ;;  %5615 = vmatmul.mubr.msk.f32.vlgmr.msra.gmra.mrb[40].mxu0 %vm394_vm5, %v3468_v48  ;;  %v5975_v48 = vpack.c.bf16 %v4008_v44, %v4007_v46  ;;  %v7499_v44 = vld [vmem:[%s7801_s8] ss:$0 sm:$0xff] }
0x49bc   :  { %5959 = vmatpush3.bf16.msra.mxu0 %v7124_v13  ;;  %5636 = vmatprep.mubr.msk.f32.mxu0 %vm6534_vm0, %v6535_v3 }
0x49bd   :  { %5960 = vmatprep.subr.bf16.mxu0 %v6533_v2 }
0x49c0   :  { %5962 = vmatpush3.bf16.msra.mxu0 %v7128_v47 }
0x49c1   :  { %5969 = vmatprep.subr.bf16.mxu0 %v6533_v2 }
0x4a8e   :  { %v3540_v24 = vpop.f32.mrb[40].mxu0 }
0x4a8f   :  { %v3544_v50 = vadd.f32 %v3540_v24, %v2286_v49  ;;  %v5616_v51 = vpop.f32.mrb[41].mxu0 }
0x4a90   :  { %v4009_v51 = vld [vmem:[%s7800_s7 + $0x10] sm:$0xff] }
0x4a91   :  { %v3546_v56 = vsub.f32 0.0, %v3544_v50 }
0x4a93   :  { %v3547_v57 = vmul.f32 1.442695, %v3546_v56  ;;  %v4010_v56 = vld [vmem:[%s7800_s7 + $0x18] sm:$0xff] }
0x4a95   :  { %6250 = vpow2.f32 %v3547_v57  ;;  %v5979_v57 = vpack.c.bf16 %v4010_v56, %v4009_v51  ;;  %v4231_v56 = vld [vmem:[%s7802_s9 + $0x20] sm:$0xff] }
0x4a96   :  { %6252 = vtanh.f32 %v3544_v50 }
0x4a9f   :  { %v6251_v31 = vpop.eup %6250 }
0x4aa0   :  { %v3549_v58 = vadd.f32 1.0, %v6251_v31  ;;  %v6253_v59 = vpop.eup %6252 }
0x4aa2   :  { %6254 = vrcp.f32 %v3549_v58  ;;  %v7403_v58 = vld [vmem:[#allocation2] sm:$0xff] }
0x4aac   :  { %v6255_v60 = vpop.eup %6254 }
0x4aad   :  { %v3552_v10 = vsel %vm6779_vm4, %v6253_v59, %v6255_v60  ;;  %v7408_v59 = vld [vmem:[#allocation2 + $0x8] sm:$0xff]  ;;  %v7412_v60 = vld [vmem:[#allocation2 + $0x10] sm:$0xff] }
0x4aae   :  { %3555 = vrot.lane.b32.xlu0 %v3552_v10, %s6536_s6  ;;  %v3553_v32 = vmul.f32 %v3552_v10, %v3459_v45 }
0x4b20   :  { %v3556_v61 = vpop.permute.xlu0 %3555 }
0x4b21   :  { %v3558_v62 = vmul.f32 %v3556_v61, %v3552_v10  ;;  %v7420_v61 = vld [vmem:[#allocation2 + $0x20] sm:$0xff] }
0x4b23   :  { %3560 = vrot.lane.b32.xlu1 %v3558_v62, %s6537_s30  ;;  %v7424_v62 = vld [vmem:[#allocation2 + $0x28] sm:$0xff] }
0x4b95   :  { %v3561_v15 = vpop.permute.xlu1 %3560 }
0x4b96   :  { %v3563_v25 = vadd.f32 %v3561_v15, %v3553_v32  ;;  %v7428_v32 = vld [vmem:[#allocation2 + $0x30] sm:$0xff]  ;;  %v7432_v15 = vld [vmem:[#allocation2 + $0x38] sm:$0xff] }
0x4b98   :  { %6256 = vtanh.f32 %v3563_v25 }
0x4ba2   :  { %v6257_v63 = vpop.eup %6256 }
0x4ba3   :  { %3566 = vrot.lane.b32.xlu0 %v6257_v63, %s6536_s6  ;;  %v7440_v63 = vld [vmem:[#allocation2 + $0x48] sm:$0xff] }
0x4c15   :  { %v3567_v0 = vpop.permute.xlu0 %3566 }
0x4c16   :  { %v3569_v29 = vmul.f32 %v3567_v0, %v3552_v10  ;;  %v7416_v10 = vld [vmem:[#allocation2 + $0x18] sm:$0xff]  ;;  %v7444_v0 = vld [vmem:[#allocation2 + $0x50] sm:$0xff] }
0x4c18   :  { %3571 = vrot.lane.b32.xlu1 %v3569_v29, %s6537_s30 }
0x4c8a   :  { %v3572_v1 = vpop.permute.xlu1 %3571 }
0x4c8b   :  { %3574 = vst.msk [vmem:[#allocation2 + $0x58] sm:$0xff] %vm394_vm5, %v3572_v1  ;;  %5626 = vmatmul.mubr.msk.f32.vlgmr.msra.gmra.mrb[46].mxu1 %vm394_vm5, %v3572_v1 }
0x4c8c   :  { %5965 = vmatpush3.bf16.msra.mxu1 %v7124_v13  ;;  %5647 = vmatprep.mubr.msk.f32.mxu1 %vm6534_vm0, %v6535_v3 }
0x4c8d   :  { %5966 = vmatprep.subr.bf16.mxu1 %v6533_v2 }
0x4c90   :  { %5968 = vmatpush3.bf16.msra.mxu1 %v7128_v47 }
0x4c91   :  { %5976 = vmatprep.subr.bf16.mxu1 %v5975_v48 }
0x4c92   :  { %v7448_v29 = vld [vmem:[#allocation2 + $0x58] sm:$0xff] }
0x4d5e   :  { %v3644_v5 = vpop.f32.mrb[46].mxu1 }
0x4d5f   :  { %v3648_v6 = vadd.f32 %v3644_v5, %v2291_v4  ;;  %v5627_v7 = vpop.f32.mrb[47].mxu1  ;;  %v7460_v5 = vld [vmem:[#allocation14] ss:$0 sm:$0xff] }
0x4d61   :  { %v3650_v9 = vsub.f32 0.0, %v3648_v6 }
0x4d63   :  { %v3651_v17 = vmul.f32 1.442695, %v3650_v9 }
0x4d65   :  { %6258 = vpow2.f32 %v3651_v17 }
0x4d66   :  { %6260 = vtanh.f32 %v3648_v6  ;;  %v2301_v6 = vadd.f32 %v7460_v5, %v7224_v54 }
0x4d6f   :  { %v6259_v19 = vpop.eup %6258 }
0x4d70   :  { %v3653_v30 = vadd.f32 1.0, %v6259_v19  ;;  %v6261_v27 = vpop.eup %6260 }
0x4d72   :  { %6262 = vrcp.f32 %v3653_v30 }
0x4d7c   :  { %v6263_v20 = vpop.eup %6262 }
0x4d7d   :  { %v3656_v8 = vsel %vm6779_vm4, %v6261_v27, %v6263_v20 }
0x4d7e   :  { %3659 = vrot.lane.b32.xlu0 %v3656_v8, %s6536_s6  ;;  %v3657_v39 = vmul.f32 %v3656_v8, %v3563_v25  ;;  %v7436_v25 = vld [vmem:[#allocation2 + $0x40] sm:$0xff] }
0x4df0   :  { %v3660_v22 = vpop.permute.xlu0 %3659 }
0x4df1   :  { %v3662_v14 = vmul.f32 %v3660_v22, %v3656_v8 }
0x4df3   :  { %3664 = vrot.lane.b32.xlu1 %v3662_v14, %s6537_s30 }
0x4e65   :  { %v3665_v16 = vpop.permute.xlu1 %3664 }
0x4e66   :  { %v3667_v53 = vadd.f32 %v3665_v16, %v3657_v39 }
0x4e68   :  { %6264 = vtanh.f32 %v3667_v53 }
0x4e72   :  { %v6265_v33 = vpop.eup %6264 }
0x4e73   :  { %3670 = vrot.lane.b32.xlu0 %v6265_v33, %s6536_s6 }
0x4ee5   :  { %v3671_v36 = vpop.permute.xlu0 %3670 }
0x4ee6   :  { %v3673_v37 = vmul.f32 %v3671_v36, %v3656_v8 }
0x4ee8   :  { %3675 = vrot.lane.b32.xlu1 %v3673_v37, %s6537_s30 }
0x4f5a   :  { %v3676_v40 = vpop.permute.xlu1 %3675 }
0x4f5b   :  { %3678 = vst.msk [vmem:[#allocation2 + $0x60] sm:$0xff] %vm394_vm5, %v3676_v40  ;;  %5637 = vmatmul.mubr.msk.f32.vlgmr.msra.gmra.mrb[42].mxu0 %vm394_vm5, %v3676_v40 }
0x4f5c   :  { %5971 = vmatpush3.bf16.msra.mxu0 %v7124_v13  ;;  %5658 = vmatprep.mubr.msk.f32.mxu0 %vm6534_vm0, %v6535_v3 }
0x4f5d   :  { %5972 = vmatprep.subr.bf16.mxu0 %v6533_v2 }
0x4f60   :  { %5974 = vmatpush3.bf16.msra.mxu0 %v7128_v47 }
0x4f62   :  { %v7452_v1 = vld [vmem:[#allocation2 + $0x60] sm:$0xff] }
0x502e   :  { %v3748_v12 = vpop.f32.mrb[42].mxu0 }
0x502f   :  { %v3752_v41 = vadd.f32 %v3748_v12, %v2296_v28  ;;  %v5638_v18 = vpop.f32.mrb[43].mxu0 }
0x5031   :  { %v3754_v11 = vsub.f32 0.0, %v3752_v41 }
0x5033   :  { %v3755_v42 = vmul.f32 1.442695, %v3754_v11 }
0x5035   :  { %6266 = vpow2.f32 %v3755_v42 }
0x5036   :  { %6268 = vtanh.f32 %v3752_v41 }
0x503f   :  { %v6267_v43 = vpop.eup %6266 }
0x5040   :  { %v3757_v21 = vadd.f32 1.0, %v6267_v43  ;;  %v6269_v13 = vpop.eup %6268 }
0x5042   :  { %6270 = vrcp.f32 %v3757_v21 }
0x504c   :  { %v6271_v35 = vpop.eup %6270 }
0x504d   :  { %v3760_v23 = vsel %vm6779_vm4, %v6269_v13, %v6271_v35 }
0x504e   :  { %3763 = vrot.lane.b32.xlu0 %v3760_v23, %s6536_s6  ;;  %v3761_v38 = vmul.f32 %v3760_v23, %v3667_v53 }
0x50c0   :  { %v3764_v47 = vpop.permute.xlu0 %3763 }
0x50c1   :  { %v3766_v45 = vmul.f32 %v3764_v47, %v3760_v23  ;;  %v4227_v47 = vld [vmem:[%s7802_s9] sm:$0xff] }
0x50c3   :  { %3768 = vrot.lane.b32.xlu1 %v3766_v45, %s6537_s30  ;;  %v4228_v45 = vld [vmem:[%s7802_s9 + $0x8] sm:$0xff] }
0x5135   :  { %v3769_v55 = vpop.permute.xlu1 %3768 }
0x5136   :  { %v7384_v26 = vadd.f32 %v3769_v55, %v3761_v38  ;;  %v5983_v38 = vpack.c.bf16 %v4228_v45, %v4227_v47 }
0x5138   :  { %6272 = vtanh.f32 %v7384_v26  ;;  %5984 = vmatprep.subr.bf16.mxu0 %v5983_v38 }
0x5142   :  { %v6273_v49 = vpop.eup %6272 }
0x5143   :  { %3774 = vrot.lane.b32.xlu0 %v6273_v49, %s6536_s6  ;;  %v4229_v49 = vld [vmem:[%s7802_s9 + $0x10] sm:$0xff] }
0x51b5   :  { %v3775_v24 = vpop.permute.xlu0 %3774 }
0x51b6   :  { %v3777_v50 = vmul.f32 %v3775_v24, %v3760_v23  ;;  %v4230_v24 = vld [vmem:[%s7802_s9 + $0x18] sm:$0xff] }
0x51b8   :  { %3779 = vrot.lane.b32.xlu1 %v3777_v50, %s6537_s30  ;;  %v5987_v50 = vpack.c.bf16 %v4230_v24, %v4229_v49 }
0x522a   :  { %v3780_v31 = vpop.permute.xlu1 %3779 }
0x522b   :  { %3782 = vst.msk [vmem:[#allocation2 + $0x68] sm:$0xff] %vm394_vm5, %v3780_v31  ;;  %5648 = vmatmul.mubr.msk.f32.vlgmr.msra.gmra.mrb[48].mxu1 %vm394_vm5, %v3780_v31 }
0x522c   :  { %5978 = vmatpush3.bf16.msra.mxu1 %v5975_v48  ;;  %5669 = vmatprep.mubr.msk.f32.mxu1 %vm394_vm5, %v7403_v58 }
0x522d   :  { %5980 = vmatprep.subr.bf16.mxu1 %v5979_v57 }
0x5230   :  { %5982 = vmatpush3.bf16.msra.mxu1 %v5979_v57  ;;  %v4232_v57 = vld [vmem:[%s7802_s9 + $0x28] sm:$0xff] }
0x5231   :  { %5999 = vmatprep.subr.bf16.mxu1 %v6533_v2 }
0x5232   :  { %v7456_v4 = vld [vmem:[#allocation2 + $0x68] sm:$0xff] }
0x5233   :  { %5670 = vmatmul.mubr.msk.f32.vlgmr.msra.gmra.mrb[50].mxu1 %vm394_vm5, %v7408_v59 }
0x5234   :  { %5672 = vmatprep.mubr.msk.f32.mxu1 %vm394_vm5, %v7412_v60 }
0x5237   :  { %5673 = vmatmul.mubr.msk.f32.gmra.mrb[52].mxu1 %vm394_vm5, %v7416_v10 }
0x5238   :  { %5675 = vmatprep.mubr.msk.f32.mxu1 %vm394_vm5, %v7420_v61 }
0x523b   :  { %5676 = vmatmul.mubr.msk.f32.gmra.mrb[54].mxu1 %vm394_vm5, %v7424_v62 }
0x523c   :  { %5678 = vmatprep.mubr.msk.f32.mxu1 %vm394_vm5, %v7428_v32 }
0x523f   :  { %5679 = vmatmul.mubr.msk.f32.gmra.mrb[56].mxu1 %vm394_vm5, %v7432_v15 }
0x5240   :  { %5681 = vmatprep.mubr.msk.f32.mxu1 %vm394_vm5, %v7436_v25 }
0x5243   :  { %5682 = vmatmul.mubr.msk.f32.gmra.mrb[58].mxu1 %vm394_vm5, %v7440_v63 }
0x5244   :  { %5684 = vmatprep.mubr.msk.f32.mxu1 %vm394_vm5, %v7444_v0 }
0x5247   :  { %5685 = vmatmul.mubr.msk.f32.gmra.mrb[60].mxu1 %vm394_vm5, %v7448_v29 }
0x5248   :  { %5687 = vmatprep.mubr.msk.f32.mxu1 %vm394_vm5, %v7452_v1 }
0x524b   :  { %5688 = vmatmul.mubr.msk.f32.gmra.mrb[62].mxu1 %vm394_vm5, %v7456_v4 }
0x52fe   :  { %v3852_v7 = vpop.f32.mrb[48].mxu1 }
0x52ff   :  { %v3856_v9 = vadd.f32 %v3852_v7, %v2301_v6  ;;  %v5649_v17 = vpop.f32.mrb[49].mxu1 }
0x5300   :  { %v4233_v17 = vld [vmem:[%s7802_s9 + $0x30] sm:$0xff] }
0x5301   :  { %v3858_v19 = vsub.f32 0.0, %v3856_v9 }
0x5303   :  { %v3859_v30 = vmul.f32 1.442695, %v3858_v19  ;;  %v4234_v19 = vld [vmem:[%s7802_s9 + $0x38] sm:$0xff] }
0x5305   :  { %6274 = vpow2.f32 %v3859_v30 }
0x5306   :  { %v5671_v27 = vpop.f32.mrb[50].mxu1  ;;  %6276 = vtanh.f32 %v3856_v9  ;;  %v5991_v9 = vpack.c.bf16 %v4232_v57, %v4231_v56  ;;  %v7564_v57 = vld [vmem:[#allocation4] ss:$0 sm:$0xff] }
0x5307   :  { %v4132_v20 = vpop.f32.mrb[51].mxu1  ;;  %v4138_v6 = vadd.f32 %v5671_v27, %v7499_v44 }
0x5308   :  { %v4133_v48 = vadd.f32 %v7499_v44, %v4132_v20  ;;  %v5995_v20 = vpack.c.bf16 %v4234_v19, %v4233_v17 }
0x530a   :  { %v5674_v8 = vpop.f32.mrb[52].mxu1 }
0x530b   :  { %v4142_v22 = vpop.f32.mrb[53].mxu1  ;;  %v4148_v30 = vadd.f32 %v5674_v8, %v7499_v44 }
0x530c   :  { %v4143_v7 = vadd.f32 %v7499_v44, %v4142_v22 }
0x530e   :  { %v7464_v14 = vpop.f32.mrb[54].mxu1 }
0x530f   :  { %v6275_v39 = vpop.eup %6274  ;;  %v4152_v16 = vpop.f32.mrb[55].mxu1 }
0x5310   :  { %v3861_v53 = vadd.f32 1.0, %v6275_v39  ;;  %v6277_v28 = vpop.eup %6276  ;;  %v4153_v27 = vadd.f32 %v7499_v44, %v4152_v16  ;;  %v4158_v39 = vadd.f32 %v7464_v14, %v7499_v44 }
0x5312   :  { %6278 = vrcp.f32 %v3861_v53  ;;  %v7466_v33 = vpop.f32.mrb[56].mxu1 }
0x5313   :  { %v4162_v54 = vpop.f32.mrb[57].mxu1  ;;  %v4168_v8 = vadd.f32 %v7466_v33, %v7499_v44 }
0x5314   :  { %v4163_v53 = vadd.f32 %v7499_v44, %v4162_v54 }
0x5316   :  { %v7468_v36 = vpop.f32.mrb[58].mxu1 }
0x5317   :  { %v7470_v37 = vpop.f32.mrb[59].mxu1  ;;  %v4178_v14 = vadd.f32 %v7468_v36, %v7499_v44 }
0x5318   :  { %v4173_v16 = vadd.f32 %v7499_v44, %v7470_v37 }
0x531a   :  { %v7472_v40 = vpop.f32.mrb[60].mxu1 }
0x531b   :  { %v7474_v12 = vpop.f32.mrb[61].mxu1  ;;  %v4188_v37 = vadd.f32 %v7472_v40, %v7499_v44 }
0x531c   :  { %v6279_v41 = vpop.eup %6278  ;;  %v4183_v33 = vadd.f32 %v7499_v44, %v7474_v12 }
0x531d   :  { %v3864_v18 = vsel %vm6779_vm4, %v6277_v28, %v6279_v41 }
0x531e   :  { %v7478_v11 = vpop.f32.mrb[62].mxu1  ;;  %3867 = vrot.lane.b32.xlu0 %v3864_v18, %s6536_s6  ;;  %v3865_v13 = vmul.f32 %v3864_v18, %v7384_v26 }
0x531f   :  { %v7481_v42 = vpop.f32.mrb[63].mxu1  ;;  %v4198_v12 = vadd.f32 %v7478_v11, %v7499_v44 }
0x5320   :  { %v4193_v36 = vadd.f32 %v7499_v44, %v7481_v42 }
0x5390   :  { %v3868_v43 = vpop.permute.xlu0 %3867 }
0x5391   :  { %v3870_v21 = vmul.f32 %v3868_v43, %v3864_v18 }
0x5393   :  { %3872 = vrot.lane.b32.xlu1 %v3870_v21, %s6537_s30 }
0x5405   :  { %v3873_v35 = vpop.permute.xlu1 %3872 }
0x5406   :  { %v7485_v23 = vadd.f32 %v3873_v35, %v3865_v13 }
0x5408   :  { %6280 = vtanh.f32 %v7485_v23 }
0x5409   :  { %6282 = vtanh.f32 %v4133_v48 }
0x540a   :  { %6284 = vtanh.f32 %v4138_v6 }
0x540b   :  { %6286 = vtanh.f32 %v4143_v7 }
0x540c   :  { %6288 = vtanh.f32 %v4148_v30 }
0x540d   :  { %6290 = vtanh.f32 %v4153_v27 }
0x540e   :  { %6292 = vtanh.f32 %v4158_v39 }
0x540f   :  { %6294 = vtanh.f32 %v4163_v53 }
0x5410   :  { %6296 = vtanh.f32 %v4168_v8 }
0x5411   :  { %6298 = vtanh.f32 %v4173_v16 }
0x5412   :  { %v6281_v55 = vpop.eup %6280  ;;  %6300 = vtanh.f32 %v4178_v14 }
0x5413   :  { %3878 = vrot.lane.b32.xlu0 %v6281_v55, %s6536_s6  ;;  %v6283_v31 = vpop.eup %6282  ;;  %6302 = vtanh.f32 %v4183_v33 }
0x5414   :  { %v6285_v28 = vpop.eup %6284  ;;  %6304 = vtanh.f32 %v4188_v37 }
0x5415   :  { %v6287_v41 = vpop.eup %6286  ;;  %6306 = vtanh.f32 %v4193_v36 }
0x5416   :  { %v6289_v54 = vpop.eup %6288  ;;  %6308 = vtanh.f32 %v4198_v12 }
0x5485   :  { %v3879_v46 = vpop.permute.xlu0 %3878 }
0x5486   :  { %v3881_v26 = vmul.f32 %v3879_v46, %v3864_v18  ;;  %v6291_v18 = vpop.eup %6290 }
0x5487   :  { %v6293_v43 = vpop.eup %6292 }
0x5488   :  { %3883 = vrot.lane.b32.xlu1 %v3881_v26, %s6537_s30  ;;  %v6295_v21 = vpop.eup %6294 }
0x5489   :  { %v6297_v13 = vpop.eup %6296 }
0x548a   :  { %v6299_v35 = vpop.eup %6298 }
0x548b   :  { %v6301_v40 = vpop.eup %6300 }
0x548c   :  { %v6303_v42 = vpop.eup %6302 }
0x548d   :  { %v6305_v47 = vpop.eup %6304 }
0x548e   :  { %v6307_v45 = vpop.eup %6306 }
0x548f   :  { %v6309_v11 = vpop.eup %6308 }
0x54fa   :  { %v3884_v51 = vpop.permute.xlu1 %3883 }
0x54fb   :  { %3886 = vst.msk [vmem:[#allocation2 + $0x70] sm:$0xff] %vm394_vm5, %v3884_v51  ;;  %5659 = vmatmul.mubr.msk.f32.vlgmr.msra.gmra.mrb[44].mxu0 %vm394_vm5, %v3884_v51 }
0x54fc   :  { %5986 = vmatpush3.bf16.msra.mxu0 %v5983_v38  ;;  %5709 = vmatprep.mubr.msk.f32.mxu0 %vm4242_vm6, %v6283_v31  ;;  %v2306_v38 = vadd.f32 %v7460_v5, %v7222_v52 }
0x54fd   :  { %5988 = vmatprep.subr.bf16.mxu0 %v5987_v50 }
0x5500   :  { %5990 = vmatpush3.bf16.msra.mxu0 %v5987_v50 }
0x5501   :  { %5992 = vmatprep.subr.bf16.mxu0 %v5991_v9 }
0x5502   :  { %v7527_v22 = vld [vmem:[#allocation2 + $0x70] sm:$0xff] }
0x5503   :  { %5690 = vmatprep.mubr.msk.f32.mxu1 %vm394_vm5, %v7527_v22 }
0x5504   :  { %5994 = vmatpush3.bf16.msra.mxu0 %v5991_v9 }
0x5505   :  { %5996 = vmatprep.subr.bf16.mxu0 %v5995_v20 }
0x5508   :  { %5998 = vmatpush3.bf16.msra.mxu0 %v5995_v20 }
0x5509   :  { %6005 = vmatprep.subr.bf16.mxu0 %v6533_v2 }
0x550b   :  { %5710 = vmatmul.mubr.msk.f32.vlgmr.msra.gmra.mrb[46].mxu0 %vm4242_vm6, %v6285_v28 }
0x550c   :  { %5712 = vmatprep.mubr.msk.f32.mxu0 %vm4242_vm6, %v6287_v41 }
0x550f   :  { %5713 = vmatmul.mubr.msk.f32.gmra.mrb[48].mxu0 %vm4242_vm6, %v6289_v54 }
0x5510   :  { %5715 = vmatprep.mubr.msk.f32.mxu0 %vm4242_vm6, %v6291_v18 }
0x5513   :  { %5716 = vmatmul.mubr.msk.f32.gmra.mrb[50].mxu0 %vm4242_vm6, %v6293_v43 }
0x5514   :  { %5718 = vmatprep.mubr.msk.f32.mxu0 %vm4242_vm6, %v6295_v21 }
0x5517   :  { %5719 = vmatmul.mubr.msk.f32.gmra.mrb[52].mxu0 %vm4242_vm6, %v6297_v13 }
0x5518   :  { %5721 = vmatprep.mubr.msk.f32.mxu0 %vm4242_vm6, %v6299_v35 }
0x551b   :  { %5722 = vmatmul.mubr.msk.f32.gmra.mrb[54].mxu0 %vm4242_vm6, %v6301_v40 }
0x551c   :  { %5724 = vmatprep.mubr.msk.f32.mxu0 %vm4242_vm6, %v6303_v42 }
0x551f   :  { %5725 = vmatmul.mubr.msk.f32.gmra.mrb[56].mxu0 %vm4242_vm6, %v6305_v47 }
0x5520   :  { %5727 = vmatprep.mubr.msk.f32.mxu0 %vm4242_vm6, %v6307_v45 }
0x5523   :  { %5728 = vmatmul.mubr.msk.f32.gmra.mrb[58].mxu0 %vm4242_vm6, %v6309_v11 }
0x55ce   :  { %v3956_v55 = vpop.f32.mrb[44].mxu0 }
0x55cf   :  { %v3960_v46 = vadd.f32 %v3956_v55, %v2306_v38  ;;  %v5660_v26 = vpop.f32.mrb[45].mxu0 }
0x55d1   :  { %v3962_v48 = vsub.f32 0.0, %v3960_v46 }
0x55d3   :  { %v3963_v49 = vmul.f32 1.442695, %v3962_v48 }
0x55d5   :  { %6310 = vpow2.f32 %v3963_v49 }
0x55d6   :  { %6312 = vtanh.f32 %v3960_v46 }
0x55de   :  { %v5711_v24 = vpop.f32.mrb[46].mxu0 }
0x55df   :  { %v6311_v50 = vpop.eup %6310  ;;  %v4357_v51 = vpop.f32.mrb[47].mxu0  ;;  %v7567_v7 = vadd.f32 %v5711_v24, %v7564_v57 }
0x55e0   :  { %v3965_v56 = vadd.f32 1.0, %v6311_v50  ;;  %v7570_v52 = vadd.f32 %v7564_v57, %v4357_v51  ;;  %v6313_v41 = vpop.eup %6312 }
0x55e1   :  { %v4438_v30 = vsel %vm4436_vm7, %v7567_v7, -inf }
0x55e2   :  { %6314 = vrcp.f32 %v3965_v56  ;;  %v5714_v31 = vpop.f32.mrb[48].mxu0  ;;  %v4437_v39 = vsel %vm4436_vm7, %v7570_v52, -inf }
0x55e3   :  { %v4367_v6 = vpop.f32.mrb[49].mxu0  ;;  %v7581_v27 = vadd.f32 %v5714_v31, %v7564_v57 }
0x55e4   :  { %v7588_v53 = vadd.f32 %v7564_v57, %v4367_v6 }
0x55e5   :  { %v4440_v36 = vsel %vm4436_vm7, %v7581_v27, -inf }
0x55e6   :  { %v5717_v5 = vpop.f32.mrb[50].mxu0  ;;  %v4439_v12 = vsel %vm4436_vm7, %v7588_v53, -inf }
0x55e7   :  { %v7573_v9 = vadd.f32 %v5717_v5, %v7564_v57  ;;  %v4377_v17 = vpop.f32.mrb[51].mxu0 }
0x55e8   :  { %v7576_v19 = vadd.f32 %v7564_v57, %v4377_v17 }
0x55e9   :  { %v4443_v20 = vsel %vm4436_vm7, %v7573_v9, -inf }
0x55ea   :  { %v4444_v8 = vmax.f32 %v4438_v30, %v4443_v20  ;;  %v4441_v16 = vsel %vm4436_vm7, %v7576_v19, -inf  ;;  %v5720_v28 = vpop.f32.mrb[52].mxu0 }
0x55eb   :  { %v4442_v14 = vmax.f32 %v4437_v39, %v4441_v16  ;;  %v7593_v33 = vadd.f32 %v5720_v28, %v7564_v57  ;;  %v4387_v54 = vpop.f32.mrb[53].mxu0 }
0x55ec   :  { %v6315_v18 = vpop.eup %6314  ;;  %v7596_v37 = vadd.f32 %v7564_v57, %v4387_v54 }
0x55ed   :  { %v4447_v43 = vsel %vm4436_vm7, %v7593_v33, -inf  ;;  %v3968_v21 = vsel %vm6779_vm4, %v6313_v41, %v6315_v18 }
0x55ee   :  { %v4448_v13 = vmax.f32 %v4440_v36, %v4447_v43  ;;  %v4445_v35 = vsel %vm4436_vm7, %v7596_v37, -inf  ;;  %v5723_v40 = vpop.f32.mrb[54].mxu0  ;;  %3971 = vrot.lane.b32.xlu0 %v3968_v21, %s6536_s6  ;;  %v3969_v54 = vmul.f32 %v3968_v21, %v7485_v23 }
0x55ef   :  { %v4446_v42 = vmax.f32 %v4439_v12, %v4445_v35  ;;  %v7610_v47 = vadd.f32 %v5723_v40, %v7564_v57  ;;  %v4397_v45 = vpop.f32.mrb[55].mxu0 }
0x55f0   :  { %v7613_v11 = vadd.f32 %v7564_v57, %v4397_v45 }
0x55f1   :  { %v4451_v34 = vsel %vm4436_vm7, %v7610_v47, -inf }
0x55f2   :  { %v4452_v38 = vmax.f32 %v4444_v8, %v4451_v34  ;;  %v4449_v55 = vsel %vm4436_vm7, %v7613_v11, -inf  ;;  %v5726_v46 = vpop.f32.mrb[56].mxu0 }
0x55f3   :  { %v4450_v26 = vmax.f32 %v4442_v14, %v4449_v55  ;;  %v7620_v48 = vadd.f32 %v5726_v46, %v7564_v57  ;;  %v4407_v49 = vpop.f32.mrb[57].mxu0  ;;  %v6538_v55 = vmov 0  }
0x55f4   :  { %v7623_v24 = vadd.f32 %v7564_v57, %v4407_v49  ;;  %6033 = vset.pattern.permute.xlu1 %v6538_v55  ;;  %6032 = vset.pattern.permute.xlu0 %v6538_v55 }
0x55f5   :  { %v4455_v50 = vsel %vm4436_vm7, %v7620_v48, -inf }
0x55f6   :  { %v4456_v51 = vmax.f32 %v4448_v13, %v4455_v50  ;;  %v4453_v56 = vsel %vm4436_vm7, %v7623_v24, -inf  ;;  %v5729_v31 = vpop.f32.mrb[58].mxu0 }
0x55f7   :  { %v4454_v6 = vmax.f32 %v4446_v42, %v4453_v56  ;;  %v7630_v5 = vadd.f32 %v5729_v31, %v7564_v57  ;;  %v4417_v17 = vpop.f32.mrb[59].mxu0 }
0x55f8   :  { %v7633_v30 = vadd.f32 %v7564_v57, %v4417_v17 }
0x55f9   :  { %v4459_v20 = vsel %vm4436_vm7, %v7630_v5, -inf }
0x55fa   :  { %v4460_v39 = vmax.f32 %v4452_v38, %v4459_v20  ;;  %v4457_v8 = vsel %vm4436_vm7, %v7633_v30, -inf }
0x55fb   :  { %v4458_v16 = vmax.f32 %v4450_v26, %v4457_v8 }
0x55fd   :  { %v4465_v28 = vmax.f32 %v4458_v16, %v4460_v39 }
0x5660   :  { %v3972_v41 = vpop.permute.xlu0 %3971 }
0x5661   :  { %v3974_v14 = vmul.f32 %v3972_v41, %v3968_v21 }
0x5663   :  { %3976 = vrot.lane.b32.xlu1 %v3974_v14, %s6537_s30 }
0x56d5   :  { %v3977_v18 = vpop.permute.xlu1 %3976 }
0x56d6   :  { %v3979_v36 = vadd.f32 %v3977_v18, %v3969_v54 }
0x56d8   :  { %6316 = vtanh.f32 %v3979_v36 }
0x56e2   :  { %v6317_v43 = vpop.eup %6316 }
0x56e3   :  { %3982 = vrot.lane.b32.xlu0 %v6317_v43, %s6536_s6 }
0x5755   :  { %v3983_v12 = vpop.permute.xlu0 %3982 }
0x5756   :  { %v3985_v13 = vmul.f32 %v3983_v12, %v3968_v21 }
0x5758   :  { %3987 = vrot.lane.b32.xlu1 %v3985_v13, %s6537_s30 }
0x57ca   :  { %v3988_v35 = vpop.permute.xlu1 %3987 }
0x57cb   :  { %3990 = vst.msk [vmem:[#allocation2 + $0x78] sm:$0xff] %vm394_vm5, %v3988_v35 }
0x57d2   :  { %v7644_v40 = vld [vmem:[#allocation2 + $0x78] sm:$0xff] }
0x57d3   :  { %5691 = vmatmul.mubr.msk.f32.gmra.mrb[64].mxu1 %vm394_vm5, %v7644_v40 }
0x57d4   :  { %5741 = vmatprep.mubr.msk.f32.mxu1 %vm6534_vm0, %v6535_v3 }
0x58a6   :  { %v5692_v23 = vpop.f32.mrb[64].mxu1 }
0x58a7   :  { %v4208_v42 = vadd.f32 %v5692_v23, %v7499_v44  ;;  %v4202_v45 = vpop.f32.mrb[65].mxu1 }
0x58a8   :  { %v4203_v34 = vadd.f32 %v7499_v44, %v4202_v45 }
0x58aa   :  { %6318 = vtanh.f32 %v4203_v34 }
0x58ab   :  { %6320 = vtanh.f32 %v4208_v42 }
0x58b4   :  { %v6319_v21 = vpop.eup %6318 }
0x58b5   :  { %v6321_v38 = vpop.eup %6320  ;;  %5730 = vmatprep.mubr.msk.f32.mxu0 %vm4242_vm6, %v6319_v21 }
0x58b6   :  { %5731 = vmatmul.mubr.msk.f32.gmra.mrb[60].mxu0 %vm4242_vm6, %v6321_v38 }
0x58b7   :  { %5760 = vmatprep.mubr.msk.f32.mxu0 %vm6534_vm0, %v6535_v3 }
0x5989   :  { %v5732_v46 = vpop.f32.mrb[60].mxu0 }
0x598a   :  { %v7657_v26 = vadd.f32 %v5732_v46, %v7564_v57  ;;  %v4427_v49 = vpop.f32.mrb[61].mxu0 }
0x598b   :  { %v7660_v44 = vadd.f32 %v7564_v57, %v4427_v49 }
0x598c   :  { %v4463_v50 = vsel %vm4436_vm7, %v7657_v26, -inf }
0x598d   :  { %v4464_v56 = vmax.f32 %v4456_v51, %v4463_v50  ;;  %v4461_v31 = vsel %vm4436_vm7, %v7660_v44, -inf }
0x598e   :  { %v4462_v17 = vmax.f32 %v4454_v6, %v4461_v31 }
0x5990   :  { %v4466_v3 = vmax.f32 %v4462_v17, %v4464_v56 }
0x5992   :  { %v7666_v20 = vmax.f32 %v4465_v28, %v4466_v3 }
0x5994   :  { %v4468_v39 = vsub.f32 %v7570_v52, %v7666_v20  ;;  %v4469_v8 = vsub.f32 %v7567_v7, %v7666_v20  ;;  %v4470_v57 = vsub.f32 %v7588_v53, %v7666_v20  ;;  %v4471_v16 = vsub.f32 %v7581_v27, %v7666_v20 }
0x5995   :  { %v4472_v51 = vsub.f32 %v7576_v19, %v7666_v20  ;;  %v4473_v6 = vsub.f32 %v7573_v9, %v7666_v20  ;;  %v4474_v28 = vsub.f32 %v7596_v37, %v7666_v20  ;;  %v4475_v52 = vsub.f32 %v7593_v33, %v7666_v20 }
0x5996   :  { %v4476_v7 = vsub.f32 %v7613_v11, %v7666_v20  ;;  %v4477_v53 = vsub.f32 %v7610_v47, %v7666_v20  ;;  %v4478_v27 = vsub.f32 %v7623_v24, %v7666_v20  ;;  %v4479_v19 = vsub.f32 %v7620_v48, %v7666_v20 }
0x5997   :  { %v4480_v9 = vsub.f32 %v7633_v30, %v7666_v20  ;;  %v4481_v37 = vsub.f32 %v7630_v5, %v7666_v20  ;;  %v4482_v33 = vsub.f32 %v7660_v44, %v7666_v20  ;;  %v4483_v11 = vsub.f32 %v7657_v26, %v7666_v20 }
0x5998   :  { %v4484_v41 = vmul.f32 1.442695, %v4468_v39  ;;  %v4486_v47 = vmul.f32 1.442695, %v4469_v8  ;;  %v4488_v14 = vmul.f32 1.442695, %v4470_v57 }
0x5999   :  { %v4490_v54 = vmul.f32 1.442695, %v4471_v16  ;;  %v4492_v24 = vmul.f32 1.442695, %v4472_v51  ;;  %v4494_v48 = vmul.f32 1.442695, %v4473_v6 }
0x599a   :  { %6322 = vpow2.f32 %v4484_v41  ;;  %v4496_v30 = vmul.f32 1.442695, %v4474_v28  ;;  %v4498_v5 = vmul.f32 1.442695, %v4475_v52  ;;  %v4500_v18 = vmul.f32 1.442695, %v4476_v7 }
0x599b   :  { %6324 = vpow2.f32 %v4486_v47  ;;  %v4502_v12 = vmul.f32 1.442695, %v4477_v53  ;;  %v4504_v45 = vmul.f32 1.442695, %v4478_v27  ;;  %v4506_v55 = vmul.f32 1.442695, %v4479_v19 }
0x599c   :  { %6326 = vpow2.f32 %v4488_v14  ;;  %v4508_v44 = vmul.f32 1.442695, %v4480_v9  ;;  %v4510_v17 = vmul.f32 1.442695, %v4481_v37  ;;  %v4512_v8 = vmul.f32 1.442695, %v4482_v33 }
0x599d   :  { %6328 = vpow2.f32 %v4490_v54  ;;  %v4514_v6 = vmul.f32 1.442695, %v4483_v11 }
0x599e   :  { %6330 = vpow2.f32 %v4492_v24 }
0x599f   :  { %6332 = vpow2.f32 %v4494_v48 }
0x59a0   :  { %6334 = vpow2.f32 %v4496_v30 }
0x59a1   :  { %6336 = vpow2.f32 %v4498_v5 }
0x59a2   :  { %6338 = vpow2.f32 %v4500_v18 }
0x59a3   :  { %6340 = vpow2.f32 %v4502_v12 }
0x59a4   :  { %v7700_v36 = vpop.eup %6322  ;;  %6342 = vpow2.f32 %v4504_v45 }
0x59a5   :  { %v7702_v43 = vpop.eup %6324  ;;  %v4516_v13 = vsel %vm4436_vm7, %v7700_v36, 0.0  ;;  %6344 = vpow2.f32 %v4506_v55 }
0x59a6   :  { %v6327_v35 = vpop.eup %6326  ;;  %v4517_v23 = vsel %vm4436_vm7, %v7702_v43, 0.0  ;;  %6346 = vpow2.f32 %v4508_v44 }
0x59a7   :  { %v6329_v42 = vpop.eup %6328  ;;  %v4518_v34 = vadd.f32 %v4517_v23, %v4516_v13  ;;  %v4519_v21 = vsel %vm4436_vm7, %v6327_v35, 0.0  ;;  %6348 = vpow2.f32 %v4510_v17 }
0x59a8   :  { %v6331_v38 = vpop.eup %6330  ;;  %v4521_v26 = vsel %vm4436_vm7, %v6329_v42, 0.0  ;;  %6350 = vpow2.f32 %v4512_v8 }
0x59a9   :  { %v4520_v46 = vadd.f32 %v4519_v21, %v4518_v34  ;;  %v6333_v49 = vpop.eup %6332  ;;  %v4523_v56 = vsel %vm4436_vm7, %v6331_v38, 0.0  ;;  %6352 = vpow2.f32 %v4514_v6 }
0x59aa   :  { %v6335_v31 = vpop.eup %6334  ;;  %v4525_v20 = vsel %vm4436_vm7, %v6333_v49, 0.0 }
0x59ab   :  { %v4522_v50 = vadd.f32 %v4521_v26, %v4520_v46  ;;  %v6337_v39 = vpop.eup %6336  ;;  %v4527_v16 = vsel %vm4436_vm7, %v6335_v31, 0.0 }
0x59ac   :  { %v6339_v51 = vpop.eup %6338  ;;  %v4529_v52 = vsel %vm4436_vm7, %v6337_v39, 0.0 }
0x59ad   :  { %v4524_v3 = vadd.f32 %v4523_v56, %v4522_v50  ;;  %v6341_v7 = vpop.eup %6340  ;;  %v4531_v27 = vsel %vm4436_vm7, %v6339_v51, 0.0 }
0x59ae   :  { %v6343_v19 = vpop.eup %6342  ;;  %v4533_v37 = vsel %vm4436_vm7, %v6341_v7, 0.0 }
0x59af   :  { %v4526_v57 = vadd.f32 %v4525_v20, %v4524_v3  ;;  %v6345_v33 = vpop.eup %6344  ;;  %v4535_v47 = vsel %vm4436_vm7, %v6343_v19, 0.0 }
0x59b0   :  { %v6347_v14 = vpop.eup %6346  ;;  %v4537_v11 = vsel %vm4436_vm7, %v6345_v33, 0.0 }
0x59b1   :  { %v4528_v28 = vadd.f32 %v4527_v16, %v4526_v57  ;;  %v6349_v24 = vpop.eup %6348  ;;  %v4539_v30 = vsel %vm4436_vm7, %v6347_v14, 0.0 }
0x59b2   :  { %v6351_v5 = vpop.eup %6350  ;;  %v4541_v12 = vsel %vm4436_vm7, %v6349_v24, 0.0 }
0x59b3   :  { %v4530_v53 = vadd.f32 %v4529_v52, %v4528_v28  ;;  %v6353_v13 = vpop.eup %6352  ;;  %v4543_v45 = vsel %vm4436_vm7, %v6351_v5, 0.0 }
0x59b4   :  { %v4545_v21 = vsel %vm4436_vm7, %v6353_v13, 0.0 }
0x59b5   :  { %v4532_v9 = vadd.f32 %v4531_v27, %v4530_v53 }
0x59b7   :  { %v4534_v41 = vadd.f32 %v4533_v37, %v4532_v9  ;;  %v4691_v37 = vld [vmem:[#allocation16] sm:$0xff] }
0x59b9   :  { %v4536_v54 = vadd.f32 %v4535_v47, %v4534_v41  ;;  %v4781_v41 = vld [vmem:[%s7806_s13 + $0x28] sm:$0xff] }
0x59bb   :  { %v4538_v48 = vadd.f32 %v4537_v11, %v4536_v54  ;;  %v4783_v54 = vld [vmem:[%s7806_s13 + $0x38] sm:$0xff] }
0x59bd   :  { %v4540_v18 = vadd.f32 %v4539_v30, %v4538_v48 }
0x59bf   :  { %v4542_v23 = vadd.f32 %v4541_v12, %v4540_v18 }
0x59c1   :  { %v4544_v34 = vadd.f32 %v4543_v45, %v4542_v23 }
0x59c3   :  { %v4546_v55 = vadd.f32 %v4545_v21, %v4544_v34 }
0x59c5   :  { %6354 = vrcp.f32 %v4546_v55 }
0x59cf   :  { %v6355_v46 = vpop.eup %6354 }
0x59d0   :  { %v4549_v26 = vmul.f32 %v6355_v46, %v7702_v43  ;;  %v4548_v44 = vmul.f32 %v6355_v46, %v7700_v36  ;;  %v4550_v50 = vmul.f32 %v6355_v46, %v6327_v35  ;;  %v4551_v56 = vmul.f32 %v6355_v46, %v6329_v42  ;;  %v4692_v43 = vld [vmem:[#allocation16 + $0x8] sm:$0xff]  ;;  %v4693_v35 = vld [vmem:[#allocation16 + $0x10] sm:$0xff]  ;;  %v4694_v42 = vld [vmem:[#allocation16 + $0x18] sm:$0xff] }
0x59d1   :  { %v4552_v17 = vmul.f32 %v6355_v46, %v6331_v38  ;;  %v4553_v3 = vmul.f32 %v6355_v46, %v6333_v49  ;;  %v4554_v20 = vmul.f32 %v6355_v46, %v6335_v31  ;;  %v4555_v8 = vmul.f32 %v6355_v46, %v6337_v39  ;;  %v4776_v49 = vld [vmem:[%s7806_s13] sm:$0xff]  ;;  %v4777_v31 = vld [vmem:[%s7806_s13 + $0x8] sm:$0xff]  ;;  %v4778_v39 = vld [vmem:[%s7806_s13 + $0x10] sm:$0xff] }
0x59d2   :  { %4571 = vperm.xlu1 %6033, %v4549_v26   ;;  %4566 = vperm.xlu0 %6032, %v4548_v44   ;;  %v4556_v57 = vmul.f32 %v6355_v46, %v6339_v51  ;;  %v4557_v16 = vmul.f32 %v6355_v46, %v6341_v7  ;;  %v4558_v6 = vmul.f32 %v6355_v46, %v6343_v19  ;;  %v4779_v7 = vld [vmem:[%s7806_s13 + $0x18] sm:$0xff] }
0x59d3   :  { %v4559_v28 = vmul.f32 %v6355_v46, %v6345_v33  ;;  %v4560_v52 = vmul.f32 %v6355_v46, %v6347_v14  ;;  %v4561_v53 = vmul.f32 %v6355_v46, %v6349_v24  ;;  %v4562_v27 = vmul.f32 %v6355_v46, %v6351_v5  ;;  %v4780_v33 = vld [vmem:[%s7806_s13 + $0x20] sm:$0xff]  ;;  %v4782_v14 = vld [vmem:[%s7806_s13 + $0x30] sm:$0xff] }
0x59d4   :  { %v4563_v9 = vmul.f32 %v6355_v46, %v6353_v13  ;;  %v6000_v36 = vpack.c.bf16 %v4692_v43, %v4691_v37  ;;  %v6003_v38 = vpack.c.bf16 %v4694_v42, %v4693_v35  ;;  %v6006_v51 = vpack.c.bf16 %v4777_v31, %v4776_v49 }
0x59d5   :  { %v6009_v19 = vpack.c.bf16 %v4779_v7, %v4778_v39  ;;  %v6012_v47 = vpack.c.bf16 %v4781_v41, %v4780_v33  ;;  %v6015_v11 = vpack.c.bf16 %v4783_v54, %v4782_v14 }
0x59d6   :  { %4576 = vperm.xlu1 %6033, %v4550_v50   ;;  %4581 = vperm.xlu0 %6032, %v4551_v56  }
0x59d7   :  { %6001 = vmatpush3.bf16.msra.mxu1 %v6000_v36  ;;  %6007 = vmatpush3.bf16.msra.mxu0 %v6006_v51 }
0x59d8   :  { %6002 = vmatprep.subr.bf16.mxu1 %v6533_v2  ;;  %6008 = vmatprep.subr.bf16.mxu0 %v6533_v2 }
0x59da   :  { %4586 = vperm.xlu1 %6033, %v4552_v17   ;;  %4591 = vperm.xlu0 %6032, %v4553_v3  }
0x59db   :  { %6004 = vmatpush3.bf16.msra.mxu1 %v6003_v38  ;;  %6010 = vmatpush3.bf16.msra.mxu0 %v6009_v19 }
0x59dc   :  { %6011 = vmatprep.subr.bf16.mxu0 %v6533_v2 }
0x59de   :  { %4596 = vperm.xlu1 %6033, %v4554_v20   ;;  %4601 = vperm.xlu0 %6032, %v4555_v8  }
0x59df   :  { %6013 = vmatpush3.bf16.msra.mxu0 %v6012_v47 }
0x59e0   :  { %6014 = vmatprep.subr.bf16.mxu0 %v6533_v2 }
0x59e2   :  { %4606 = vperm.xlu1 %6033, %v4556_v57   ;;  %4611 = vperm.xlu0 %6032, %v4557_v16  }
0x59e3   :  { %6016 = vmatpush3.bf16.msra.mxu0 %v6015_v11 }
0x59e6   :  { %4616 = vperm.xlu1 %6033, %v4558_v6   ;;  %4621 = vperm.xlu0 %6032, %v4559_v28  }
0x59ea   :  { %4626 = vperm.xlu1 %6033, %v4560_v52   ;;  %4631 = vperm.xlu0 %6032, %v4561_v53  }
0x59ee   :  { %4636 = vperm.xlu1 %6033, %v4562_v27   ;;  %4641 = vperm.xlu0 %6032, %v4563_v9  }
0x5a51   :  { %v4572_v24 = vpop.permute.xlu1 %4571  ;;  %v4567_v48 = vpop.permute.xlu0 %4566 }
0x5a52   :  { %v4645_v30 = vmul.f32 %v4572_v24, %v7408_v59  ;;  %v4644_v5 = vmul.f32 %v4567_v48, %v7403_v58 }
0x5a54   :  { %v4661_v18 = vsel %vm394_vm5, %v4645_v30, 0.0  ;;  %v4660_v12 = vsel %vm394_vm5, %v4644_v5, 0.0 }
0x5a55   :  { %v4577_v13 = vpop.permute.xlu1 %4576  ;;  %v4582_v23 = vpop.permute.xlu0 %4581  ;;  %v4662_v21 = vadd.f32 %v4661_v18, %v4660_v12 }
0x5a56   :  { %v4646_v45 = vmul.f32 %v4577_v13, %v7412_v60  ;;  %v4647_v34 = vmul.f32 %v4582_v23, %v7416_v10 }
0x5a58   :  { %v4663_v2 = vsel %vm394_vm5, %v4646_v45, 0.0  ;;  %v4665_v59 = vsel %vm394_vm5, %v4647_v34, 0.0 }
0x5a59   :  { %v4664_v55 = vadd.f32 %v4663_v2, %v4662_v21  ;;  %v4587_v46 = vpop.permute.xlu1 %4586  ;;  %v4592_v26 = vpop.permute.xlu0 %4591 }
0x5a5a   :  { %v4648_v58 = vmul.f32 %v4587_v46, %v7420_v61  ;;  %v4649_v44 = vmul.f32 %v4592_v26, %v7424_v62 }
0x5a5b   :  { %v4666_v50 = vadd.f32 %v4665_v59, %v4664_v55 }
0x5a5c   :  { %v4667_v56 = vsel %vm394_vm5, %v4648_v58, 0.0  ;;  %v4669_v10 = vsel %vm394_vm5, %v4649_v44, 0.0 }
0x5a5d   :  { %v4668_v17 = vadd.f32 %v4667_v56, %v4666_v50  ;;  %v4597_v3 = vpop.permute.xlu1 %4596  ;;  %v4602_v60 = vpop.permute.xlu0 %4601 }
0x5a5e   :  { %v4650_v20 = vmul.f32 %v4597_v3, %v7428_v32  ;;  %v4651_v8 = vmul.f32 %v4602_v60, %v7432_v15 }
0x5a5f   :  { %v4670_v57 = vadd.f32 %v4669_v10, %v4668_v17 }
0x5a60   :  { %v4671_v16 = vsel %vm394_vm5, %v4650_v20, 0.0  ;;  %v4673_v62 = vsel %vm394_vm5, %v4651_v8, 0.0 }
0x5a61   :  { %v4672_v6 = vadd.f32 %v4671_v16, %v4670_v57  ;;  %v4607_v28 = vpop.permute.xlu1 %4606  ;;  %v4612_v61 = vpop.permute.xlu0 %4611 }
0x5a62   :  { %v4652_v52 = vmul.f32 %v4607_v28, %v7436_v25  ;;  %v4653_v53 = vmul.f32 %v4612_v61, %v7440_v63 }
0x5a63   :  { %v4674_v27 = vadd.f32 %v4673_v62, %v4672_v6 }
0x5a64   :  { %v4675_v9 = vsel %vm394_vm5, %v4652_v52, 0.0  ;;  %v4677_v15 = vsel %vm394_vm5, %v4653_v53, 0.0 }
0x5a65   :  { %v4676_v37 = vadd.f32 %v4675_v9, %v4674_v27  ;;  %v4617_v43 = vpop.permute.xlu1 %4616  ;;  %v4622_v32 = vpop.permute.xlu0 %4621 }
0x5a66   :  { %v4654_v36 = vmul.f32 %v4617_v43, %v7444_v0  ;;  %v4655_v35 = vmul.f32 %v4622_v32, %v7448_v29 }
0x5a67   :  { %v4678_v42 = vadd.f32 %v4677_v15, %v4676_v37 }
0x5a68   :  { %v4679_v38 = vsel %vm394_vm5, %v4654_v36, 0.0  ;;  %v4681_v63 = vsel %vm394_vm5, %v4655_v35, 0.0 }
0x5a69   :  { %v4680_v49 = vadd.f32 %v4679_v38, %v4678_v42  ;;  %v4627_v31 = vpop.permute.xlu1 %4626  ;;  %v4632_v25 = vpop.permute.xlu0 %4631 }
0x5a6a   :  { %v4656_v39 = vmul.f32 %v4627_v31, %v7452_v1  ;;  %v4657_v51 = vmul.f32 %v4632_v25, %v7456_v4  ;;  %v4977_v4 = vld [vmem:[%s7805_s12] ss:$0 sm:$0xff] }
0x5a6b   :  { %v4682_v7 = vadd.f32 %v4681_v63, %v4680_v49 }
0x5a6c   :  { %v4683_v19 = vsel %vm394_vm5, %v4656_v39, 0.0  ;;  %v4685_v29 = vsel %vm394_vm5, %v4657_v51, 0.0 }
0x5a6d   :  { %v4684_v33 = vadd.f32 %v4683_v19, %v4682_v7  ;;  %v4637_v41 = vpop.permute.xlu1 %4636  ;;  %v4642_v0 = vpop.permute.xlu0 %4641 }
0x5a6e   :  { %v4658_v47 = vmul.f32 %v4637_v41, %v7527_v22  ;;  %v4659_v14 = vmul.f32 %v4642_v0, %v7644_v40  ;;  %v4979_v22 = vld [vmem:[#allocation5] ss:$0 sm:$0xff] }
0x5a6f   :  { %v4686_v54 = vadd.f32 %v4685_v29, %v4684_v33 }
0x5a70   :  { %v4687_v11 = vsel %vm394_vm5, %v4658_v47, 0.0  ;;  %v4689_v1 = vsel %vm394_vm5, %v4659_v14, 0.0 }
0x5a71   :  { %v4688_v24 = vadd.f32 %v4687_v11, %v4686_v54 }
0x5a73   :  { %v4690_v48 = vadd.f32 %v4689_v1, %v4688_v24 }
0x5a75   :  { %5742 = vmatmul.mubr.msk.f32.vlgmr.msra.gmra.mrb[66].mxu1 %vm394_vm5, %v4690_v48 }
0x5b48   :  { %v4771_v30 = vpop.f32.mrb[66].mxu1 }
0x5b49   :  { %v4772_v5 = vadd.f32 %v4977_v4, %v4771_v30  ;;  %v5743_v18 = vpop.f32.mrb[67].mxu1 }
0x5b4b   :  { %v4775_v12 = vmax.f32 %v4772_v5, 0.0 }
0x5b4d   :  { %5761 = vmatmul.mubr.msk.f32.vlgmr.msra.gmra.mrb[62].mxu0 %vm4242_vm6, %v4775_v12 }
0x5c20   :  { %v4860_v40 = vpop.f32.mrb[62].mxu0 }
0x5c21   :  { %v4861_v13 = vadd.f32 %v4979_v22, %v4860_v40  ;;  %v5762_v23 = vpop.f32.mrb[63].mxu0 }
0x5c23   :  { %v4864_v45 = vsub.f32 0.0, %v4861_v13 }
0x5c25   :  { %v4865_v34 = vmul.f32 1.442695, %v4864_v45 }
0x5c27   :  { %6356 = vpow2.f32 %v4865_v34 }
0x5c31   :  { %v6357_v21 = vpop.eup %6356 }
0x5c32   :  { %v4867_v2 = vadd.f32 1.0, %v6357_v21 }
0x5c34   :  { %6358 = vrcp.f32 %v4867_v2 }
0x5c3e   :  { %v6359_v55 = vpop.eup %6358 }
0x5c3f   :  { %4870 = vst.msk [vmem:[%s7807_s15] sm:$0xff] %vm4436_vm7, %v6359_v55 }
0x5c40   :  { %4875 = vsyncpa [#allocation7], 1 }
0x5c41   :  { %4876 = vsyncpa [#allocation9], 1 }
0x5c42   :  { %4877 = vsyncpa [#allocation12], 1 }
0x5c43   :  { %4878 = vsyncpa [#allocation15], 1 }

</bundles_post_ra>
